<compile_context>
chip_gen: v5e
topology: v5e:2x2
jax: 0.10.0
libtpu: 0.0.40
codegen_flags: <defaults>
</compile_context>

<pallas_src>
import numpy as np
import jax
import jax.numpy as jnp
from jax.experimental import pallas as pl
from jax.experimental.pallas import tpu as pltpu


# (kind, param prefix, Cin, Cout) for the six layers of AutoEncoder16.
_LAYERS = (
    ("conv",   "e1", 3, 8),
    ("conv",   "e2", 8, 16),
    ("conv",   "e3", 16, 32),
    ("deconv", "d1", 32, 16),
    ("deconv", "d2", 16, 8),
    ("deconv", "d3", 8, 3),
)
_ACTS = ("relu", "relu", "relu", "relu", "relu", "tanh")


def _pad8(n):
    return -(-n // 8) * 8


# ----------------------------------------------------------------------------
# Fused Pallas kernel: the whole forward pass in one invocation (no grid).
# Arguments: x_ref, then (S_l, W_l, b_l) for l = 1..6, then out_ref.
#   x_ref : (3, M0p)        bf16  channel-major input pixels
#   S_l   : (4, Mi_p, Mo_p) bf16  0/1 selection matrix per kernel tap k
#   W_l   : (4, Cout, Cin)  bf16  weight slice per kernel tap k
#   b_l   : (Cout, 1)       f32
#   out   : (3, M6p)        f32
# ----------------------------------------------------------------------------
def _ae16_kernel(x_ref, *refs):
    out_ref = refs[-1]
    prm = refs[:-1]
    x = x_ref[...]                                    # (Cin, Mi_p) bf16
    h = None
    for l in range(6):                                # static unroll: 6 layers
        s_ref, w_ref, b_ref = prm[3 * l], prm[3 * l + 1], prm[3 * l + 2]
        acc = None
        for k in range(4):                            # static unroll: 4 kernel taps
            # Gather the input pixels feeding tap k (exact 0/1 matmul on MXU).
            sel = jnp.dot(x, s_ref[k], preferred_element_type=jnp.float32)
            # Apply the (Cout, Cin) weight slice for tap k, accumulate in f32.
            term = jnp.dot(w_ref[k], sel.astype(jnp.bfloat16),
                           preferred_element_type=jnp.float32)
            acc = term if acc is None else acc + term
        acc = acc + b_ref[...]                        # bias broadcast over pixel lanes
        h = jnp.tanh(acc) if _ACTS[l] == "tanh" else jnp.maximum(acc, 0.0)
        x = h.astype(jnp.bfloat16)                    # bf16 operand for next layer
    out_ref[...] = h.astype(out_ref.dtype)


# ----------------------------------------------------------------------------
# Host-side constant construction (selection matrices + weight repacking).
# ----------------------------------------------------------------------------
def _selection_t(kind, B, H, W, Ho, Wo):
    """S[k, mi, mo] = 1 iff input pixel mi feeds output pixel mo at kernel tap k."""
    Mi, Mo = B * H * W, B * Ho * Wo
    st = np.zeros((4, _pad8(Mi), _pad8(Mo)), np.float32)
    for b in range(B):
        for ki in range(2):
            for kj in range(2):
                k = ki * 2 + kj
                if kind == "conv":         # out (i,j) reads in (2i+ki-1, 2j+kj-1)
                    for i in range(Ho):
                        r = 2 * i + ki - 1
                        if not (0 <= r < H):
                            continue
                        for j in range(Wo):
                            c = 2 * j + kj - 1
                            if not (0 <= c < W):
                                continue
                            st[k, b * H * W + r * W + c,
                               b * Ho * Wo + i * Wo + j] = 1.0
                else:                      # in (ih,iw) writes out (2ih+ki-1, 2iw+kj-1)
                    for ih in range(H):
                        oh = 2 * ih + ki - 1
                        if not (0 <= oh < Ho):
                            continue
                        for iw in range(W):
                            ow = 2 * iw + kj - 1
                            if not (0 <= ow < Wo):
                                continue
                            st[k, b * H * W + ih * W + iw,
                               b * Ho * Wo + oh * Wo + ow] = 1.0
    return st


def prepare_inputs(params, B, Hin=16, Win=16):
    """Build kernel-layout constants + repacked weights once (outside jit)."""
    flat = []
    H, W = Hin, Win
    for kind, name, cin, cout in _LAYERS:
        if kind == "conv":
            Ho, Wo = H // 2 + 1, W // 2 + 1           # (H + 2*1 - 2)//2 + 1
        else:
            Ho, Wo = 2 * H - 2, 2 * W - 2             # (H-1)*2 - 2*1 + 2
        st = _selection_t(kind, B, H, W, Ho, Wo)
        w, b = params[name + "_w"], params[name + "_b"]
        if kind == "conv":   # (Cout, Cin, 2, 2) -> (4, Cout, Cin), k = ki*2+kj
            wk = jnp.transpose(w, (2, 3, 0, 1)).reshape(4, cout, cin)
        else:                # (Cin, Cout, 2, 2) -> (4, Cout, Cin)
            wk = jnp.transpose(w, (2, 3, 1, 0)).reshape(4, cout, cin)
        flat += [jnp.asarray(st, jnp.bfloat16),
                 jnp.asarray(wk, jnp.bfloat16),
                 jnp.asarray(b, jnp.float32).reshape(cout, 1)]
        H, W = Ho, Wo
    meta = dict(B=B, Hin=Hin, Win=Win, Hout=H, Wout=W, Cout=_LAYERS[-1][3],
                M_in=B * Hin * Win, M_in_pad=_pad8(B * Hin * Win),
                M_out=B * H * W, M_out_pad=_pad8(B * H * W))
    return tuple(flat), meta


# ----------------------------------------------------------------------------
# Jitted wrapper: one transpose in, one fused pallas_call, one transpose out.
# ----------------------------------------------------------------------------
def make_forward(meta):
    B = meta["B"]
    Hf, Wf, Cf = meta["Hout"], meta["Wout"], meta["Cout"]
    M0, M0p = meta["M_in"], meta["M_in_pad"]
    Mo, Mop = meta["M_out"], meta["M_out_pad"]

    @jax.jit
    def forward(x, layer_inputs):
        # NCHW -> channel-major (C, B*H*W) pixel layout.
        x0 = jnp.transpose(x, (1, 0, 2, 3)).reshape(x.shape[1], -1)
        if M0p != M0:
            x0 = jnp.pad(x0, ((0, 0), (0, M0p - M0)))
        x0 = x0.astype(jnp.bfloat16)
        inputs = (x0,) + tuple(layer_inputs)

        flops = 0
        for l in range(6):
            st, wk = layer_inputs[3 * l], layer_inputs[3 * l + 1]
            _, mi_p, mo_p = st.shape
            _, co, ci = wk.shape
            flops += 4 * 2 * (ci * mi_p * mo_p + co * ci * mo_p)
        bytes_acc = sum(int(np.prod(a.shape)) * a.dtype.itemsize for a in inputs)
        bytes_acc += Cf * Mop * 4

        out = pl.pallas_call(
            _ae16_kernel,
            out_shape=jax.ShapeDtypeStruct((Cf, Mop), jnp.float32),
            in_specs=[pl.BlockSpec(memory_space=pltpu.MemorySpace.VMEM)] * len(inputs),
            out_specs=pl.BlockSpec(memory_space=pltpu.MemorySpace.VMEM),
            cost_estimate=pl.CostEstimate(flops=int(flops),
                                          transcendentals=int(Cf * Mop),
                                          bytes_accessed=int(bytes_acc)),
        )(*inputs)

        y = out[:, :Mo].reshape(Cf, B, Hf, Wf)
        return jnp.transpose(y, (1, 0, 2, 3))         # back to NCHW

    return forward


# ----------------------------------------------------------------------------
# Pure-JAX f32 reference (same math as the validated per-layer version).
# ----------------------------------------------------------------------------
def _reference_forward(params, x):
    def conv(x, w, b, act):
        B, Cin, H, W = x.shape
        Cout = w.shape[0]
        Ho, Wo = H // 2 + 1, W // 2 + 1
        xp = jnp.pad(x, ((0, 0), (0, 0), (1, 1), (1, 1)))
        patches = jnp.stack(
            [xp[:, :, ki:ki + 2 * Ho:2, kj:kj + 2 * Wo:2]
             for ki in range(2) for kj in range(2)], axis=-1)
        p = jnp.transpose(patches, (0, 2, 3, 1, 4)).reshape(B * Ho * Wo, Cin * 4)
        wm = jnp.transpose(w, (1, 2, 3, 0)).reshape(Cin * 4, Cout)
        y = p @ wm + b
        y = jnp.maximum(y, 0.0) if act == "relu" else jnp.tanh(y)
        return jnp.transpose(y.reshape(B, Ho, Wo, Cout), (0, 3, 1, 2))

    def deconv(x, w, b, act):
        B, Cin, H, W = x.shape
        Cout = w.shape[1]
        y = (jnp.transpose(x, (0, 2, 3, 1)).reshape(B * H * W, Cin)
             @ w.reshape(Cin, Cout * 4) + jnp.repeat(b, 4))
        y = jnp.maximum(y, 0.0) if act == "relu" else jnp.tanh(y)
        y = y.reshape(B, H, W, Cout, 2, 2)
        y = jnp.transpose(y, (0, 3, 1, 4, 2, 5)).reshape(B, Cout, 2 * H, 2 * W)
        return y[:, :, 1:-1, 1:-1]

    h = conv(x, params["e1_w"], params["e1_b"], "relu")
    h = conv(h, params["e2_w"], params["e2_b"], "relu")
    h = conv(h, params["e3_w"], params["e3_b"], "relu")
    h = deconv(h, params["d1_w"], params["d1_b"], "relu")
    h = deconv(h, params["d2_w"], params["d2_b"], "relu")
    h = deconv(h, params["d3_w"], params["d3_b"], "tanh")
    return h


# ----------------------------------------------------------------------------
# Deterministic parameter init (PyTorch-style uniform(-1/sqrt(fan_in), ...))
# ----------------------------------------------------------------------------
def _init_conv(key, cout, cin):
    kw, kb = jax.random.split(key)
    bound = 1.0 / (cin * 4) ** 0.5
    w = jax.random.uniform(kw, (cout, cin, 2, 2), jnp.float32, -bound, bound)
    b = jax.random.uniform(kb, (cout,), jnp.float32, -bound, bound)
    return w, b


def _init_deconv(key, cin, cout):
    kw, kb = jax.random.split(key)
    bound = 1.0 / (cout * 4) ** 0.5
    w = jax.random.uniform(kw, (cin, cout, 2, 2), jnp.float32, -bound, bound)
    b = jax.random.uniform(kb, (cout,), jnp.float32, -bound, bound)
    return w, b


def make_params(key):
    ks = jax.random.split(key, 6)
    p = {}
    p["e1_w"], p["e1_b"] = _init_conv(ks[0], 8, 3)
    p["e2_w"], p["e2_b"] = _init_conv(ks[1], 16, 8)
    p["e3_w"], p["e3_b"] = _init_conv(ks[2], 32, 16)
    p["d1_w"], p["d1_b"] = _init_deconv(ks[3], 32, 16)
    p["d2_w"], p["d2_b"] = _init_deconv(ks[4], 16, 8)
    p["d3_w"], p["d3_b"] = _init_deconv(ks[5], 8, 3)
    return p


if __name__ == "__main__":
    key = jax.random.PRNGKey(0)
    k_x, k_p = jax.random.split(key)
    B = 2
    x = jax.random.normal(k_x, (B, 3, 16, 16), dtype=jnp.float32)  # NCHW like PyTorch
    params = make_params(k_p)

    layer_inputs, meta = prepare_inputs(params, B)     # once, outside jit
    forward = make_forward(meta)
    out = forward(x, layer_inputs)
    jax.block_until_ready(out)

    # Shape trace mirrors the PyTorch module: 16 -> 9 -> 5 -> 3 -> 4 -> 6 -> 10
    assert out.shape == (B, 3, 10, 10), out.shape
    assert out.dtype == jnp.float32
    assert bool(jnp.all(jnp.abs(out) <= 1.0))          # final Tanh

    # Numerical check against the f32 pure-JAX reference (bf16 MXU tolerance).
    ref = _reference_forward(params, x)
    max_err = float(jnp.max(jnp.abs(out - ref)))
    assert max_err < 6e-2, f"max abs err {max_err}"

    print("KERNEL_OK")
</pallas_src>

<mosaic_0001>
module attributes {stable_mosaic.version = 11 : i64} {
  func.func @_ae16_kernel(%arg0: memref<3x512xbf16, #tpu.memory_space<vmem>>, %arg1: memref<4x512x168xbf16, #tpu.memory_space<vmem>>, %arg2: memref<4x8x3xbf16, #tpu.memory_space<vmem>>, %arg3: memref<8x1xf32, #tpu.memory_space<vmem>>, %arg4: memref<4x168x56xbf16, #tpu.memory_space<vmem>>, %arg5: memref<4x16x8xbf16, #tpu.memory_space<vmem>>, %arg6: memref<16x1xf32, #tpu.memory_space<vmem>>, %arg7: memref<4x56x24xbf16, #tpu.memory_space<vmem>>, %arg8: memref<4x32x16xbf16, #tpu.memory_space<vmem>>, %arg9: memref<32x1xf32, #tpu.memory_space<vmem>>, %arg10: memref<4x24x32xbf16, #tpu.memory_space<vmem>>, %arg11: memref<4x16x32xbf16, #tpu.memory_space<vmem>>, %arg12: memref<16x1xf32, #tpu.memory_space<vmem>>, %arg13: memref<4x32x72xbf16, #tpu.memory_space<vmem>>, %arg14: memref<4x8x16xbf16, #tpu.memory_space<vmem>>, %arg15: memref<8x1xf32, #tpu.memory_space<vmem>>, %arg16: memref<4x72x200xbf16, #tpu.memory_space<vmem>>, %arg17: memref<4x3x8xbf16, #tpu.memory_space<vmem>>, %arg18: memref<3x1xf32, #tpu.memory_space<vmem>>, %arg19: memref<3x200xf32, #tpu.memory_space<vmem>>) attributes {dimension_semantics = [], scalar_prefetch = 0 : i64, scratch_operands = 0 : i64, tpu.core_type = #tpu.core_type<tc>} {
    %c0 = arith.constant 0 : index
    %c0_0 = arith.constant 0 : index
    %0 = vector.load %arg0[%c0, %c0_0] : memref<3x512xbf16, #tpu.memory_space<vmem>>, vector<3x512xbf16>
    %c0_1 = arith.constant 0 : index
    %c0_2 = arith.constant 0 : index
    %c0_3 = arith.constant 0 : index
    %1 = vector.load %arg1[%c0_1, %c0_2, %c0_3] : memref<4x512x168xbf16, #tpu.memory_space<vmem>>, vector<1x512x168xbf16>
    %2 = vector.shape_cast %1 : vector<1x512x168xbf16> to vector<512x168xbf16>
    %cst = arith.constant dense<0.000000e+00> : vector<3x168xf32>
    %3 = tpu.matmul %0, %2, %cst {dimension_numbers = #tpu.dot_dimension_numbers<[1], [0], [0], [1], [0, 0, 1, 1], [], []>} : vector<3x512xbf16>, vector<512x168xbf16>, vector<3x168xf32> -> vector<3x168xf32>
    %c0_4 = arith.constant 0 : index
    %c0_5 = arith.constant 0 : index
    %c0_6 = arith.constant 0 : index
    %4 = vector.load %arg2[%c0_4, %c0_5, %c0_6] : memref<4x8x3xbf16, #tpu.memory_space<vmem>>, vector<1x8x3xbf16>
    %5 = vector.shape_cast %4 : vector<1x8x3xbf16> to vector<8x3xbf16>
    %6 = arith.truncf %3 : vector<3x168xf32> to vector<3x168xbf16>
    %cst_7 = arith.constant dense<0.000000e+00> : vector<8x168xf32>
    %7 = tpu.matmul %5, %6, %cst_7 {dimension_numbers = #tpu.dot_dimension_numbers<[1], [0], [0], [1], [0, 0, 1, 1], [], []>} : vector<8x3xbf16>, vector<3x168xbf16>, vector<8x168xf32> -> vector<8x168xf32>
    %c1 = arith.constant 1 : index
    %c0_8 = arith.constant 0 : index
    %c0_9 = arith.constant 0 : index
    %8 = vector.load %arg1[%c1, %c0_8, %c0_9] : memref<4x512x168xbf16, #tpu.memory_space<vmem>>, vector<1x512x168xbf16>
    %9 = vector.shape_cast %8 : vector<1x512x168xbf16> to vector<512x168xbf16>
    %cst_10 = arith.constant dense<0.000000e+00> : vector<3x168xf32>
    %10 = tpu.matmul %0, %9, %cst_10 {dimension_numbers = #tpu.dot_dimension_numbers<[1], [0], [0], [1], [0, 0, 1, 1], [], []>} : vector<3x512xbf16>, vector<512x168xbf16>, vector<3x168xf32> -> vector<3x168xf32>
    %c1_11 = arith.constant 1 : index
    %c0_12 = arith.constant 0 : index
    %c0_13 = arith.constant 0 : index
    %11 = vector.load %arg2[%c1_11, %c0_12, %c0_13] : memref<4x8x3xbf16, #tpu.memory_space<vmem>>, vector<1x8x3xbf16>
    %12 = vector.shape_cast %11 : vector<1x8x3xbf16> to vector<8x3xbf16>
    %13 = arith.truncf %10 : vector<3x168xf32> to vector<3x168xbf16>
    %cst_14 = arith.constant dense<0.000000e+00> : vector<8x168xf32>
    %14 = tpu.matmul %12, %13, %cst_14 {dimension_numbers = #tpu.dot_dimension_numbers<[1], [0], [0], [1], [0, 0, 1, 1], [], []>} : vector<8x3xbf16>, vector<3x168xbf16>, vector<8x168xf32> -> vector<8x168xf32>
    %15 = arith.addf %7, %14 : vector<8x168xf32>
    %c2 = arith.constant 2 : index
    %c0_15 = arith.constant 0 : index
    %c0_16 = arith.constant 0 : index
    %16 = vector.load %arg1[%c2, %c0_15, %c0_16] : memref<4x512x168xbf16, #tpu.memory_space<vmem>>, vector<1x512x168xbf16>
    %17 = vector.shape_cast %16 : vector<1x512x168xbf16> to vector<512x168xbf16>
    %cst_17 = arith.constant dense<0.000000e+00> : vector<3x168xf32>
    %18 = tpu.matmul %0, %17, %cst_17 {dimension_numbers = #tpu.dot_dimension_numbers<[1], [0], [0], [1], [0, 0, 1, 1], [], []>} : vector<3x512xbf16>, vector<512x168xbf16>, vector<3x168xf32> -> vector<3x168xf32>
    %c2_18 = arith.constant 2 : index
    %c0_19 = arith.constant 0 : index
    %c0_20 = arith.constant 0 : index
    %19 = vector.load %arg2[%c2_18, %c0_19, %c0_20] : memref<4x8x3xbf16, #tpu.memory_space<vmem>>, vector<1x8x3xbf16>
    %20 = vector.shape_cast %19 : vector<1x8x3xbf16> to vector<8x3xbf16>
    %21 = arith.truncf %18 : vector<3x168xf32> to vector<3x168xbf16>
    %cst_21 = arith.constant dense<0.000000e+00> : vector<8x168xf32>
    %22 = tpu.matmul %20, %21, %cst_21 {dimension_numbers = #tpu.dot_dimension_numbers<[1], [0], [0], [1], [0, 0, 1, 1], [], []>} : vector<8x3xbf16>, vector<3x168xbf16>, vector<8x168xf32> -> vector<8x168xf32>
    %23 = arith.addf %15, %22 : vector<8x168xf32>
    %c3 = arith.constant 3 : index
    %c0_22 = arith.constant 0 : index
    %c0_23 = arith.constant 0 : index
    %24 = vector.load %arg1[%c3, %c0_22, %c0_23] : memref<4x512x168xbf16, #tpu.memory_space<vmem>>, vector<1x512x168xbf16>
    %25 = vector.shape_cast %24 : vector<1x512x168xbf16> to vector<512x168xbf16>
    %cst_24 = arith.constant dense<0.000000e+00> : vector<3x168xf32>
    %26 = tpu.matmul %0, %25, %cst_24 {dimension_numbers = #tpu.dot_dimension_numbers<[1], [0], [0], [1], [0, 0, 1, 1], [], []>} : vector<3x512xbf16>, vector<512x168xbf16>, vector<3x168xf32> -> vector<3x168xf32>
    %c3_25 = arith.constant 3 : index
    %c0_26 = arith.constant 0 : index
    %c0_27 = arith.constant 0 : index
    %27 = vector.load %arg2[%c3_25, %c0_26, %c0_27] : memref<4x8x3xbf16, #tpu.memory_space<vmem>>, vector<1x8x3xbf16>
    %28 = vector.shape_cast %27 : vector<1x8x3xbf16> to vector<8x3xbf16>
    %29 = arith.truncf %26 : vector<3x168xf32> to vector<3x168xbf16>
    %cst_28 = arith.constant dense<0.000000e+00> : vector<8x168xf32>
    %30 = tpu.matmul %28, %29, %cst_28 {dimension_numbers = #tpu.dot_dimension_numbers<[1], [0], [0], [1], [0, 0, 1, 1], [], []>} : vector<8x3xbf16>, vector<3x168xbf16>, vector<8x168xf32> -> vector<8x168xf32>
    %31 = arith.addf %23, %30 : vector<8x168xf32>
    %c0_29 = arith.constant 0 : index
    %c0_30 = arith.constant 0 : index
    %32 = vector.load %arg3[%c0_29, %c0_30] : memref<8x1xf32, #tpu.memory_space<vmem>>, vector<8x1xf32>
    %33 = vector.broadcast %32 : vector<8x1xf32> to vector<8x168xf32>
    %34 = arith.addf %31, %33 : vector<8x168xf32>
    %cst_31 = arith.constant 0.000000e+00 : f32
    %35 = vector.broadcast %cst_31 : f32 to vector<8x168xf32>
    %36 = arith.maximumf %34, %35 : vector<8x168xf32>
    %37 = arith.truncf %36 : vector<8x168xf32> to vector<8x168xbf16>
    %c0_32 = arith.constant 0 : index
    %c0_33 = arith.constant 0 : index
    %c0_34 = arith.constant 0 : index
    %38 = vector.load %arg4[%c0_32, %c0_33, %c0_34] : memref<4x168x56xbf16, #tpu.memory_space<vmem>>, vector<1x168x56xbf16>
    %39 = vector.shape_cast %38 : vector<1x168x56xbf16> to vector<168x56xbf16>
    %cst_35 = arith.constant dense<0.000000e+00> : vector<8x56xf32>
    %40 = tpu.matmul %37, %39, %cst_35 {dimension_numbers = #tpu.dot_dimension_numbers<[1], [0], [0], [1], [0, 0, 1, 1], [], []>} : vector<8x168xbf16>, vector<168x56xbf16>, vector<8x56xf32> -> vector<8x56xf32>
    %c0_36 = arith.constant 0 : index
    %c0_37 = arith.constant 0 : index
    %c0_38 = arith.constant 0 : index
    %41 = vector.load %arg5[%c0_36, %c0_37, %c0_38] : memref<4x16x8xbf16, #tpu.memory_space<vmem>>, vector<1x16x8xbf16>
    %42 = vector.shape_cast %41 : vector<1x16x8xbf16> to vector<16x8xbf16>
    %43 = arith.truncf %40 : vector<8x56xf32> to vector<8x56xbf16>
    %cst_39 = arith.constant dense<0.000000e+00> : vector<16x56xf32>
    %44 = tpu.matmul %42, %43, %cst_39 {dimension_numbers = #tpu.dot_dimension_numbers<[1], [0], [0], [1], [0, 0, 1, 1], [], []>} : vector<16x8xbf16>, vector<8x56xbf16>, vector<16x56xf32> -> vector<16x56xf32>
    %c1_40 = arith.constant 1 : index
    %c0_41 = arith.constant 0 : index
    %c0_42 = arith.constant 0 : index
    %45 = vector.load %arg4[%c1_40, %c0_41, %c0_42] : memref<4x168x56xbf16, #tpu.memory_space<vmem>>, vector<1x168x56xbf16>
    %46 = vector.shape_cast %45 : vector<1x168x56xbf16> to vector<168x56xbf16>
    %cst_43 = arith.constant dense<0.000000e+00> : vector<8x56xf32>
    %47 = tpu.matmul %37, %46, %cst_43 {dimension_numbers = #tpu.dot_dimension_numbers<[1], [0], [0], [1], [0, 0, 1, 1], [], []>} : vector<8x168xbf16>, vector<168x56xbf16>, vector<8x56xf32> -> vector<8x56xf32>
    %c1_44 = arith.constant 1 : index
    %c0_45 = arith.constant 0 : index
    %c0_46 = arith.constant 0 : index
    %48 = vector.load %arg5[%c1_44, %c0_45, %c0_46] : memref<4x16x8xbf16, #tpu.memory_space<vmem>>, vector<1x16x8xbf16>
    %49 = vector.shape_cast %48 : vector<1x16x8xbf16> to vector<16x8xbf16>
    %50 = arith.truncf %47 : vector<8x56xf32> to vector<8x56xbf16>
    %cst_47 = arith.constant dense<0.000000e+00> : vector<16x56xf32>
    %51 = tpu.matmul %49, %50, %cst_47 {dimension_numbers = #tpu.dot_dimension_numbers<[1], [0], [0], [1], [0, 0, 1, 1], [], []>} : vector<16x8xbf16>, vector<8x56xbf16>, vector<16x56xf32> -> vector<16x56xf32>
    %52 = arith.addf %44, %51 : vector<16x56xf32>
    %c2_48 = arith.constant 2 : index
    %c0_49 = arith.constant 0 : index
    %c0_50 = arith.constant 0 : index
    %53 = vector.load %arg4[%c2_48, %c0_49, %c0_50] : memref<4x168x56xbf16, #tpu.memory_space<vmem>>, vector<1x168x56xbf16>
    %54 = vector.shape_cast %53 : vector<1x168x56xbf16> to vector<168x56xbf16>
    %cst_51 = arith.constant dense<0.000000e+00> : vector<8x56xf32>
    %55 = tpu.matmul %37, %54, %cst_51 {dimension_numbers = #tpu.dot_dimension_numbers<[1], [0], [0], [1], [0, 0, 1, 1], [], []>} : vector<8x168xbf16>, vector<168x56xbf16>, vector<8x56xf32> -> vector<8x56xf32>
    %c2_52 = arith.constant 2 : index
    %c0_53 = arith.constant 0 : index
    %c0_54 = arith.constant 0 : index
    %56 = vector.load %arg5[%c2_52, %c0_53, %c0_54] : memref<4x16x8xbf16, #tpu.memory_space<vmem>>, vector<1x16x8xbf16>
    %57 = vector.shape_cast %56 : vector<1x16x8xbf16> to vector<16x8xbf16>
    %58 = arith.truncf %55 : vector<8x56xf32> to vector<8x56xbf16>
    %cst_55 = arith.constant dense<0.000000e+00> : vector<16x56xf32>
    %59 = tpu.matmul %57, %58, %cst_55 {dimension_numbers = #tpu.dot_dimension_numbers<[1], [0], [0], [1], [0, 0, 1, 1], [], []>} : vector<16x8xbf16>, vector<8x56xbf16>, vector<16x56xf32> -> vector<16x56xf32>
    %60 = arith.addf %52, %59 : vector<16x56xf32>
    %c3_56 = arith.constant 3 : index
    %c0_57 = arith.constant 0 : index
    %c0_58 = arith.constant 0 : index
    %61 = vector.load %arg4[%c3_56, %c0_57, %c0_58] : memref<4x168x56xbf16, #tpu.memory_space<vmem>>, vector<1x168x56xbf16>
    %62 = vector.shape_cast %61 : vector<1x168x56xbf16> to vector<168x56xbf16>
    %cst_59 = arith.constant dense<0.000000e+00> : vector<8x56xf32>
    %63 = tpu.matmul %37, %62, %cst_59 {dimension_numbers = #tpu.dot_dimension_numbers<[1], [0], [0], [1], [0, 0, 1, 1], [], []>} : vector<8x168xbf16>, vector<168x56xbf16>, vector<8x56xf32> -> vector<8x56xf32>
    %c3_60 = arith.constant 3 : index
    %c0_61 = arith.constant 0 : index
    %c0_62 = arith.constant 0 : index
    %64 = vector.load %arg5[%c3_60, %c0_61, %c0_62] : memref<4x16x8xbf16, #tpu.memory_space<vmem>>, vector<1x16x8xbf16>
    %65 = vector.shape_cast %64 : vector<1x16x8xbf16> to vector<16x8xbf16>
    %66 = arith.truncf %63 : vector<8x56xf32> to vector<8x56xbf16>
    %cst_63 = arith.constant dense<0.000000e+00> : vector<16x56xf32>
    %67 = tpu.matmul %65, %66, %cst_63 {dimension_numbers = #tpu.dot_dimension_numbers<[1], [0], [0], [1], [0, 0, 1, 1], [], []>} : vector<16x8xbf16>, vector<8x56xbf16>, vector<16x56xf32> -> vector<16x56xf32>
    %68 = arith.addf %60, %67 : vector<16x56xf32>
    %c0_64 = arith.constant 0 : index
    %c0_65 = arith.constant 0 : index
    %69 = vector.load %arg6[%c0_64, %c0_65] : memref<16x1xf32, #tpu.memory_space<vmem>>, vector<16x1xf32>
    %70 = vector.broadcast %69 : vector<16x1xf32> to vector<16x56xf32>
    %71 = arith.addf %68, %70 : vector<16x56xf32>
    %cst_66 = arith.constant 0.000000e+00 : f32
    %72 = vector.broadcast %cst_66 : f32 to vector<16x56xf32>
    %73 = arith.maximumf %71, %72 : vector<16x56xf32>
    %74 = arith.truncf %73 : vector<16x56xf32> to vector<16x56xbf16>
    %c0_67 = arith.constant 0 : index
    %c0_68 = arith.constant 0 : index
    %c0_69 = arith.constant 0 : index
    %75 = vector.load %arg7[%c0_67, %c0_68, %c0_69] : memref<4x56x24xbf16, #tpu.memory_space<vmem>>, vector<1x56x24xbf16>
    %76 = vector.shape_cast %75 : vector<1x56x24xbf16> to vector<56x24xbf16>
    %cst_70 = arith.constant dense<0.000000e+00> : vector<16x24xf32>
    %77 = tpu.matmul %74, %76, %cst_70 {dimension_numbers = #tpu.dot_dimension_numbers<[1], [0], [0], [1], [0, 0, 1, 1], [], []>} : vector<16x56xbf16>, vector<56x24xbf16>, vector<16x24xf32> -> vector<16x24xf32>
    %c0_71 = arith.constant 0 : index
    %c0_72 = arith.constant 0 : index
    %c0_73 = arith.constant 0 : index
    %78 = vector.load %arg8[%c0_71, %c0_72, %c0_73] : memref<4x32x16xbf16, #tpu.memory_space<vmem>>, vector<1x32x16xbf16>
    %79 = vector.shape_cast %78 : vector<1x32x16xbf16> to vector<32x16xbf16>
    %80 = arith.truncf %77 : vector<16x24xf32> to vector<16x24xbf16>
    %cst_74 = arith.constant dense<0.000000e+00> : vector<32x24xf32>
    %81 = tpu.matmul %79, %80, %cst_74 {dimension_numbers = #tpu.dot_dimension_numbers<[1], [0], [0], [1], [0, 0, 1, 1], [], []>} : vector<32x16xbf16>, vector<16x24xbf16>, vector<32x24xf32> -> vector<32x24xf32>
    %c1_75 = arith.constant 1 : index
    %c0_76 = arith.constant 0 : index
    %c0_77 = arith.constant 0 : index
    %82 = vector.load %arg7[%c1_75, %c0_76, %c0_77] : memref<4x56x24xbf16, #tpu.memory_space<vmem>>, vector<1x56x24xbf16>
    %83 = vector.shape_cast %82 : vector<1x56x24xbf16> to vector<56x24xbf16>
    %cst_78 = arith.constant dense<0.000000e+00> : vector<16x24xf32>
    %84 = tpu.matmul %74, %83, %cst_78 {dimension_numbers = #tpu.dot_dimension_numbers<[1], [0], [0], [1], [0, 0, 1, 1], [], []>} : vector<16x56xbf16>, vector<56x24xbf16>, vector<16x24xf32> -> vector<16x24xf32>
    %c1_79 = arith.constant 1 : index
    %c0_80 = arith.constant 0 : index
    %c0_81 = arith.constant 0 : index
    %85 = vector.load %arg8[%c1_79, %c0_80, %c0_81] : memref<4x32x16xbf16, #tpu.memory_space<vmem>>, vector<1x32x16xbf16>
    %86 = vector.shape_cast %85 : vector<1x32x16xbf16> to vector<32x16xbf16>
    %87 = arith.truncf %84 : vector<16x24xf32> to vector<16x24xbf16>
    %cst_82 = arith.constant dense<0.000000e+00> : vector<32x24xf32>
    %88 = tpu.matmul %86, %87, %cst_82 {dimension_numbers = #tpu.dot_dimension_numbers<[1], [0], [0], [1], [0, 0, 1, 1], [], []>} : vector<32x16xbf16>, vector<16x24xbf16>, vector<32x24xf32> -> vector<32x24xf32>
    %89 = arith.addf %81, %88 : vector<32x24xf32>
    %c2_83 = arith.constant 2 : index
    %c0_84 = arith.constant 0 : index
    %c0_85 = arith.constant 0 : index
    %90 = vector.load %arg7[%c2_83, %c0_84, %c0_85] : memref<4x56x24xbf16, #tpu.memory_space<vmem>>, vector<1x56x24xbf16>
    %91 = vector.shape_cast %90 : vector<1x56x24xbf16> to vector<56x24xbf16>
    %cst_86 = arith.constant dense<0.000000e+00> : vector<16x24xf32>
    %92 = tpu.matmul %74, %91, %cst_86 {dimension_numbers = #tpu.dot_dimension_numbers<[1], [0], [0], [1], [0, 0, 1, 1], [], []>} : vector<16x56xbf16>, vector<56x24xbf16>, vector<16x24xf32> -> vector<16x24xf32>
    %c2_87 = arith.constant 2 : index
    %c0_88 = arith.constant 0 : index
    %c0_89 = arith.constant 0 : index
    %93 = vector.load %arg8[%c2_87, %c0_88, %c0_89] : memref<4x32x16xbf16, #tpu.memory_space<vmem>>, vector<1x32x16xbf16>
    %94 = vector.shape_cast %93 : vector<1x32x16xbf16> to vector<32x16xbf16>
    %95 = arith.truncf %92 : vector<16x24xf32> to vector<16x24xbf16>
    %cst_90 = arith.constant dense<0.000000e+00> : vector<32x24xf32>
    %96 = tpu.matmul %94, %95, %cst_90 {dimension_numbers = #tpu.dot_dimension_numbers<[1], [0], [0], [1], [0, 0, 1, 1], [], []>} : vector<32x16xbf16>, vector<16x24xbf16>, vector<32x24xf32> -> vector<32x24xf32>
    %97 = arith.addf %89, %96 : vector<32x24xf32>
    %c3_91 = arith.constant 3 : index
    %c0_92 = arith.constant 0 : index
    %c0_93 = arith.constant 0 : index
    %98 = vector.load %arg7[%c3_91, %c0_92, %c0_93] : memref<4x56x24xbf16, #tpu.memory_space<vmem>>, vector<1x56x24xbf16>
    %99 = vector.shape_cast %98 : vector<1x56x24xbf16> to vector<56x24xbf16>
    %cst_94 = arith.constant dense<0.000000e+00> : vector<16x24xf32>
    %100 = tpu.matmul %74, %99, %cst_94 {dimension_numbers = #tpu.dot_dimension_numbers<[1], [0], [0], [1], [0, 0, 1, 1], [], []>} : vector<16x56xbf16>, vector<56x24xbf16>, vector<16x24xf32> -> vector<16x24xf32>
    %c3_95 = arith.constant 3 : index
    %c0_96 = arith.constant 0 : index
    %c0_97 = arith.constant 0 : index
    %101 = vector.load %arg8[%c3_95, %c0_96, %c0_97] : memref<4x32x16xbf16, #tpu.memory_space<vmem>>, vector<1x32x16xbf16>
    %102 = vector.shape_cast %101 : vector<1x32x16xbf16> to vector<32x16xbf16>
    %103 = arith.truncf %100 : vector<16x24xf32> to vector<16x24xbf16>
    %cst_98 = arith.constant dense<0.000000e+00> : vector<32x24xf32>
    %104 = tpu.matmul %102, %103, %cst_98 {dimension_numbers = #tpu.dot_dimension_numbers<[1], [0], [0], [1], [0, 0, 1, 1], [], []>} : vector<32x16xbf16>, vector<16x24xbf16>, vector<32x24xf32> -> vector<32x24xf32>
    %105 = arith.addf %97, %104 : vector<32x24xf32>
    %c0_99 = arith.constant 0 : index
    %c0_100 = arith.constant 0 : index
    %106 = vector.load %arg9[%c0_99, %c0_100] : memref<32x1xf32, #tpu.memory_space<vmem>>, vector<32x1xf32>
    %107 = vector.broadcast %106 : vector<32x1xf32> to vector<32x24xf32>
    %108 = arith.addf %105, %107 : vector<32x24xf32>
    %cst_101 = arith.constant 0.000000e+00 : f32
    %109 = vector.broadcast %cst_101 : f32 to vector<32x24xf32>
    %110 = arith.maximumf %108, %109 : vector<32x24xf32>
    %111 = arith.truncf %110 : vector<32x24xf32> to vector<32x24xbf16>
    %c0_102 = arith.constant 0 : index
    %c0_103 = arith.constant 0 : index
    %c0_104 = arith.constant 0 : index
    %112 = vector.load %arg10[%c0_102, %c0_103, %c0_104] : memref<4x24x32xbf16, #tpu.memory_space<vmem>>, vector<1x24x32xbf16>
    %113 = vector.shape_cast %112 : vector<1x24x32xbf16> to vector<24x32xbf16>
    %cst_105 = arith.constant dense<0.000000e+00> : vector<32x32xf32>
    %114 = tpu.matmul %111, %113, %cst_105 {dimension_numbers = #tpu.dot_dimension_numbers<[1], [0], [0], [1], [0, 0, 1, 1], [], []>} : vector<32x24xbf16>, vector<24x32xbf16>, vector<32x32xf32> -> vector<32x32xf32>
    %c0_106 = arith.constant 0 : index
    %c0_107 = arith.constant 0 : index
    %c0_108 = arith.constant 0 : index
    %115 = vector.load %arg11[%c0_106, %c0_107, %c0_108] : memref<4x16x32xbf16, #tpu.memory_space<vmem>>, vector<1x16x32xbf16>
    %116 = vector.shape_cast %115 : vector<1x16x32xbf16> to vector<16x32xbf16>
    %117 = arith.truncf %114 : vector<32x32xf32> to vector<32x32xbf16>
    %cst_109 = arith.constant dense<0.000000e+00> : vector<16x32xf32>
    %118 = tpu.matmul %116, %117, %cst_109 {dimension_numbers = #tpu.dot_dimension_numbers<[1], [0], [0], [1], [0, 0, 1, 1], [], []>} : vector<16x32xbf16>, vector<32x32xbf16>, vector<16x32xf32> -> vector<16x32xf32>
    %c1_110 = arith.constant 1 : index
    %c0_111 = arith.constant 0 : index
    %c0_112 = arith.constant 0 : index
    %119 = vector.load %arg10[%c1_110, %c0_111, %c0_112] : memref<4x24x32xbf16, #tpu.memory_space<vmem>>, vector<1x24x32xbf16>
    %120 = vector.shape_cast %119 : vector<1x24x32xbf16> to vector<24x32xbf16>
    %cst_113 = arith.constant dense<0.000000e+00> : vector<32x32xf32>
    %121 = tpu.matmul %111, %120, %cst_113 {dimension_numbers = #tpu.dot_dimension_numbers<[1], [0], [0], [1], [0, 0, 1, 1], [], []>} : vector<32x24xbf16>, vector<24x32xbf16>, vector<32x32xf32> -> vector<32x32xf32>
    %c1_114 = arith.constant 1 : index
    %c0_115 = arith.constant 0 : index
    %c0_116 = arith.constant 0 : index
    %122 = vector.load %arg11[%c1_114, %c0_115, %c0_116] : memref<4x16x32xbf16, #tpu.memory_space<vmem>>, vector<1x16x32xbf16>
    %123 = vector.shape_cast %122 : vector<1x16x32xbf16> to vector<16x32xbf16>
    %124 = arith.truncf %121 : vector<32x32xf32> to vector<32x32xbf16>
    %cst_117 = arith.constant dense<0.000000e+00> : vector<16x32xf32>
    %125 = tpu.matmul %123, %124, %cst_117 {dimension_numbers = #tpu.dot_dimension_numbers<[1], [0], [0], [1], [0, 0, 1, 1], [], []>} : vector<16x32xbf16>, vector<32x32xbf16>, vector<16x32xf32> -> vector<16x32xf32>
    %126 = arith.addf %118, %125 : vector<16x32xf32>
    %c2_118 = arith.constant 2 : index
    %c0_119 = arith.constant 0 : index
    %c0_120 = arith.constant 0 : index
    %127 = vector.load %arg10[%c2_118, %c0_119, %c0_120] : memref<4x24x32xbf16, #tpu.memory_space<vmem>>, vector<1x24x32xbf16>
    %128 = vector.shape_cast %127 : vector<1x24x32xbf16> to vector<24x32xbf16>
    %cst_121 = arith.constant dense<0.000000e+00> : vector<32x32xf32>
    %129 = tpu.matmul %111, %128, %cst_121 {dimension_numbers = #tpu.dot_dimension_numbers<[1], [0], [0], [1], [0, 0, 1, 1], [], []>} : vector<32x24xbf16>, vector<24x32xbf16>, vector<32x32xf32> -> vector<32x32xf32>
    %c2_122 = arith.constant 2 : index
    %c0_123 = arith.constant 0 : index
    %c0_124 = arith.constant 0 : index
    %130 = vector.load %arg11[%c2_122, %c0_123, %c0_124] : memref<4x16x32xbf16, #tpu.memory_space<vmem>>, vector<1x16x32xbf16>
    %131 = vector.shape_cast %130 : vector<1x16x32xbf16> to vector<16x32xbf16>
    %132 = arith.truncf %129 : vector<32x32xf32> to vector<32x32xbf16>
    %cst_125 = arith.constant dense<0.000000e+00> : vector<16x32xf32>
    %133 = tpu.matmul %131, %132, %cst_125 {dimension_numbers = #tpu.dot_dimension_numbers<[1], [0], [0], [1], [0, 0, 1, 1], [], []>} : vector<16x32xbf16>, vector<32x32xbf16>, vector<16x32xf32> -> vector<16x32xf32>
    %134 = arith.addf %126, %133 : vector<16x32xf32>
    %c3_126 = arith.constant 3 : index
    %c0_127 = arith.constant 0 : index
    %c0_128 = arith.constant 0 : index
    %135 = vector.load %arg10[%c3_126, %c0_127, %c0_128] : memref<4x24x32xbf16, #tpu.memory_space<vmem>>, vector<1x24x32xbf16>
    %136 = vector.shape_cast %135 : vector<1x24x32xbf16> to vector<24x32xbf16>
    %cst_129 = arith.constant dense<0.000000e+00> : vector<32x32xf32>
    %137 = tpu.matmul %111, %136, %cst_129 {dimension_numbers = #tpu.dot_dimension_numbers<[1], [0], [0], [1], [0, 0, 1, 1], [], []>} : vector<32x24xbf16>, vector<24x32xbf16>, vector<32x32xf32> -> vector<32x32xf32>
    %c3_130 = arith.constant 3 : index
    %c0_131 = arith.constant 0 : index
    %c0_132 = arith.constant 0 : index
    %138 = vector.load %arg11[%c3_130, %c0_131, %c0_132] : memref<4x16x32xbf16, #tpu.memory_space<vmem>>, vector<1x16x32xbf16>
    %139 = vector.shape_cast %138 : vector<1x16x32xbf16> to vector<16x32xbf16>
    %140 = arith.truncf %137 : vector<32x32xf32> to vector<32x32xbf16>
    %cst_133 = arith.constant dense<0.000000e+00> : vector<16x32xf32>
    %141 = tpu.matmul %139, %140, %cst_133 {dimension_numbers = #tpu.dot_dimension_numbers<[1], [0], [0], [1], [0, 0, 1, 1], [], []>} : vector<16x32xbf16>, vector<32x32xbf16>, vector<16x32xf32> -> vector<16x32xf32>
    %142 = arith.addf %134, %141 : vector<16x32xf32>
    %c0_134 = arith.constant 0 : index
    %c0_135 = arith.constant 0 : index
    %143 = vector.load %arg12[%c0_134, %c0_135] : memref<16x1xf32, #tpu.memory_space<vmem>>, vector<16x1xf32>
    %144 = vector.broadcast %143 : vector<16x1xf32> to vector<16x32xf32>
    %145 = arith.addf %142, %144 : vector<16x32xf32>
    %cst_136 = arith.constant 0.000000e+00 : f32
    %146 = vector.broadcast %cst_136 : f32 to vector<16x32xf32>
    %147 = arith.maximumf %145, %146 : vector<16x32xf32>
    %148 = arith.truncf %147 : vector<16x32xf32> to vector<16x32xbf16>
    %c0_137 = arith.constant 0 : index
    %c0_138 = arith.constant 0 : index
    %c0_139 = arith.constant 0 : index
    %149 = vector.load %arg13[%c0_137, %c0_138, %c0_139] : memref<4x32x72xbf16, #tpu.memory_space<vmem>>, vector<1x32x72xbf16>
    %150 = vector.shape_cast %149 : vector<1x32x72xbf16> to vector<32x72xbf16>
    %cst_140 = arith.constant dense<0.000000e+00> : vector<16x72xf32>
    %151 = tpu.matmul %148, %150, %cst_140 {dimension_numbers = #tpu.dot_dimension_numbers<[1], [0], [0], [1], [0, 0, 1, 1], [], []>} : vector<16x32xbf16>, vector<32x72xbf16>, vector<16x72xf32> -> vector<16x72xf32>
    %c0_141 = arith.constant 0 : index
    %c0_142 = arith.constant 0 : index
    %c0_143 = arith.constant 0 : index
    %152 = vector.load %arg14[%c0_141, %c0_142, %c0_143] : memref<4x8x16xbf16, #tpu.memory_space<vmem>>, vector<1x8x16xbf16>
    %153 = vector.shape_cast %152 : vector<1x8x16xbf16> to vector<8x16xbf16>
    %154 = arith.truncf %151 : vector<16x72xf32> to vector<16x72xbf16>
    %cst_144 = arith.constant dense<0.000000e+00> : vector<8x72xf32>
    %155 = tpu.matmul %153, %154, %cst_144 {dimension_numbers = #tpu.dot_dimension_numbers<[1], [0], [0], [1], [0, 0, 1, 1], [], []>} : vector<8x16xbf16>, vector<16x72xbf16>, vector<8x72xf32> -> vector<8x72xf32>
    %c1_145 = arith.constant 1 : index
    %c0_146 = arith.constant 0 : index
    %c0_147 = arith.constant 0 : index
    %156 = vector.load %arg13[%c1_145, %c0_146, %c0_147] : memref<4x32x72xbf16, #tpu.memory_space<vmem>>, vector<1x32x72xbf16>
    %157 = vector.shape_cast %156 : vector<1x32x72xbf16> to vector<32x72xbf16>
    %cst_148 = arith.constant dense<0.000000e+00> : vector<16x72xf32>
    %158 = tpu.matmul %148, %157, %cst_148 {dimension_numbers = #tpu.dot_dimension_numbers<[1], [0], [0], [1], [0, 0, 1, 1], [], []>} : vector<16x32xbf16>, vector<32x72xbf16>, vector<16x72xf32> -> vector<16x72xf32>
    %c1_149 = arith.constant 1 : index
    %c0_150 = arith.constant 0 : index
    %c0_151 = arith.constant 0 : index
    %159 = vector.load %arg14[%c1_149, %c0_150, %c0_151] : memref<4x8x16xbf16, #tpu.memory_space<vmem>>, vector<1x8x16xbf16>
    %160 = vector.shape_cast %159 : vector<1x8x16xbf16> to vector<8x16xbf16>
    %161 = arith.truncf %158 : vector<16x72xf32> to vector<16x72xbf16>
    %cst_152 = arith.constant dense<0.000000e+00> : vector<8x72xf32>
    %162 = tpu.matmul %160, %161, %cst_152 {dimension_numbers = #tpu.dot_dimension_numbers<[1], [0], [0], [1], [0, 0, 1, 1], [], []>} : vector<8x16xbf16>, vector<16x72xbf16>, vector<8x72xf32> -> vector<8x72xf32>
    %163 = arith.addf %155, %162 : vector<8x72xf32>
    %c2_153 = arith.constant 2 : index
    %c0_154 = arith.constant 0 : index
    %c0_155 = arith.constant 0 : index
    %164 = vector.load %arg13[%c2_153, %c0_154, %c0_155] : memref<4x32x72xbf16, #tpu.memory_space<vmem>>, vector<1x32x72xbf16>
    %165 = vector.shape_cast %164 : vector<1x32x72xbf16> to vector<32x72xbf16>
    %cst_156 = arith.constant dense<0.000000e+00> : vector<16x72xf32>
    %166 = tpu.matmul %148, %165, %cst_156 {dimension_numbers = #tpu.dot_dimension_numbers<[1], [0], [0], [1], [0, 0, 1, 1], [], []>} : vector<16x32xbf16>, vector<32x72xbf16>, vector<16x72xf32> -> vector<16x72xf32>
    %c2_157 = arith.constant 2 : index
    %c0_158 = arith.constant 0 : index
    %c0_159 = arith.constant 0 : index
    %167 = vector.load %arg14[%c2_157, %c0_158, %c0_159] : memref<4x8x16xbf16, #tpu.memory_space<vmem>>, vector<1x8x16xbf16>
    %168 = vector.shape_cast %167 : vector<1x8x16xbf16> to vector<8x16xbf16>
    %169 = arith.truncf %166 : vector<16x72xf32> to vector<16x72xbf16>
    %cst_160 = arith.constant dense<0.000000e+00> : vector<8x72xf32>
    %170 = tpu.matmul %168, %169, %cst_160 {dimension_numbers = #tpu.dot_dimension_numbers<[1], [0], [0], [1], [0, 0, 1, 1], [], []>} : vector<8x16xbf16>, vector<16x72xbf16>, vector<8x72xf32> -> vector<8x72xf32>
    %171 = arith.addf %163, %170 : vector<8x72xf32>
    %c3_161 = arith.constant 3 : index
    %c0_162 = arith.constant 0 : index
    %c0_163 = arith.constant 0 : index
    %172 = vector.load %arg13[%c3_161, %c0_162, %c0_163] : memref<4x32x72xbf16, #tpu.memory_space<vmem>>, vector<1x32x72xbf16>
    %173 = vector.shape_cast %172 : vector<1x32x72xbf16> to vector<32x72xbf16>
    %cst_164 = arith.constant dense<0.000000e+00> : vector<16x72xf32>
    %174 = tpu.matmul %148, %173, %cst_164 {dimension_numbers = #tpu.dot_dimension_numbers<[1], [0], [0], [1], [0, 0, 1, 1], [], []>} : vector<16x32xbf16>, vector<32x72xbf16>, vector<16x72xf32> -> vector<16x72xf32>
    %c3_165 = arith.constant 3 : index
    %c0_166 = arith.constant 0 : index
    %c0_167 = arith.constant 0 : index
    %175 = vector.load %arg14[%c3_165, %c0_166, %c0_167] : memref<4x8x16xbf16, #tpu.memory_space<vmem>>, vector<1x8x16xbf16>
    %176 = vector.shape_cast %175 : vector<1x8x16xbf16> to vector<8x16xbf16>
    %177 = arith.truncf %174 : vector<16x72xf32> to vector<16x72xbf16>
    %cst_168 = arith.constant dense<0.000000e+00> : vector<8x72xf32>
    %178 = tpu.matmul %176, %177, %cst_168 {dimension_numbers = #tpu.dot_dimension_numbers<[1], [0], [0], [1], [0, 0, 1, 1], [], []>} : vector<8x16xbf16>, vector<16x72xbf16>, vector<8x72xf32> -> vector<8x72xf32>
    %179 = arith.addf %171, %178 : vector<8x72xf32>
    %c0_169 = arith.constant 0 : index
    %c0_170 = arith.constant 0 : index
    %180 = vector.load %arg15[%c0_169, %c0_170] : memref<8x1xf32, #tpu.memory_space<vmem>>, vector<8x1xf32>
    %181 = vector.broadcast %180 : vector<8x1xf32> to vector<8x72xf32>
    %182 = arith.addf %179, %181 : vector<8x72xf32>
    %cst_171 = arith.constant 0.000000e+00 : f32
    %183 = vector.broadcast %cst_171 : f32 to vector<8x72xf32>
    %184 = arith.maximumf %182, %183 : vector<8x72xf32>
    %185 = arith.truncf %184 : vector<8x72xf32> to vector<8x72xbf16>
    %c0_172 = arith.constant 0 : index
    %c0_173 = arith.constant 0 : index
    %c0_174 = arith.constant 0 : index
    %186 = vector.load %arg16[%c0_172, %c0_173, %c0_174] : memref<4x72x200xbf16, #tpu.memory_space<vmem>>, vector<1x72x200xbf16>
    %187 = vector.shape_cast %186 : vector<1x72x200xbf16> to vector<72x200xbf16>
    %cst_175 = arith.constant dense<0.000000e+00> : vector<8x200xf32>
    %188 = tpu.matmul %185, %187, %cst_175 {dimension_numbers = #tpu.dot_dimension_numbers<[1], [0], [0], [1], [0, 0, 1, 1], [], []>} : vector<8x72xbf16>, vector<72x200xbf16>, vector<8x200xf32> -> vector<8x200xf32>
    %c0_176 = arith.constant 0 : index
    %c0_177 = arith.constant 0 : index
    %c0_178 = arith.constant 0 : index
    %189 = vector.load %arg17[%c0_176, %c0_177, %c0_178] : memref<4x3x8xbf16, #tpu.memory_space<vmem>>, vector<1x3x8xbf16>
    %190 = vector.shape_cast %189 : vector<1x3x8xbf16> to vector<3x8xbf16>
    %191 = arith.truncf %188 : vector<8x200xf32> to vector<8x200xbf16>
    %cst_179 = arith.constant dense<0.000000e+00> : vector<3x200xf32>
    %192 = tpu.matmul %190, %191, %cst_179 {dimension_numbers = #tpu.dot_dimension_numbers<[1], [0], [0], [1], [0, 0, 1, 1], [], []>} : vector<3x8xbf16>, vector<8x200xbf16>, vector<3x200xf32> -> vector<3x200xf32>
    %c1_180 = arith.constant 1 : index
    %c0_181 = arith.constant 0 : index
    %c0_182 = arith.constant 0 : index
    %193 = vector.load %arg16[%c1_180, %c0_181, %c0_182] : memref<4x72x200xbf16, #tpu.memory_space<vmem>>, vector<1x72x200xbf16>
    %194 = vector.shape_cast %193 : vector<1x72x200xbf16> to vector<72x200xbf16>
    %cst_183 = arith.constant dense<0.000000e+00> : vector<8x200xf32>
    %195 = tpu.matmul %185, %194, %cst_183 {dimension_numbers = #tpu.dot_dimension_numbers<[1], [0], [0], [1], [0, 0, 1, 1], [], []>} : vector<8x72xbf16>, vector<72x200xbf16>, vector<8x200xf32> -> vector<8x200xf32>
    %c1_184 = arith.constant 1 : index
    %c0_185 = arith.constant 0 : index
    %c0_186 = arith.constant 0 : index
    %196 = vector.load %arg17[%c1_184, %c0_185, %c0_186] : memref<4x3x8xbf16, #tpu.memory_space<vmem>>, vector<1x3x8xbf16>
    %197 = vector.shape_cast %196 : vector<1x3x8xbf16> to vector<3x8xbf16>
    %198 = arith.truncf %195 : vector<8x200xf32> to vector<8x200xbf16>
    %cst_187 = arith.constant dense<0.000000e+00> : vector<3x200xf32>
    %199 = tpu.matmul %197, %198, %cst_187 {dimension_numbers = #tpu.dot_dimension_numbers<[1], [0], [0], [1], [0, 0, 1, 1], [], []>} : vector<3x8xbf16>, vector<8x200xbf16>, vector<3x200xf32> -> vector<3x200xf32>
    %200 = arith.addf %192, %199 : vector<3x200xf32>
    %c2_188 = arith.constant 2 : index
    %c0_189 = arith.constant 0 : index
    %c0_190 = arith.constant 0 : index
    %201 = vector.load %arg16[%c2_188, %c0_189, %c0_190] : memref<4x72x200xbf16, #tpu.memory_space<vmem>>, vector<1x72x200xbf16>
    %202 = vector.shape_cast %201 : vector<1x72x200xbf16> to vector<72x200xbf16>
    %cst_191 = arith.constant dense<0.000000e+00> : vector<8x200xf32>
    %203 = tpu.matmul %185, %202, %cst_191 {dimension_numbers = #tpu.dot_dimension_numbers<[1], [0], [0], [1], [0, 0, 1, 1], [], []>} : vector<8x72xbf16>, vector<72x200xbf16>, vector<8x200xf32> -> vector<8x200xf32>
    %c2_192 = arith.constant 2 : index
    %c0_193 = arith.constant 0 : index
    %c0_194 = arith.constant 0 : index
    %204 = vector.load %arg17[%c2_192, %c0_193, %c0_194] : memref<4x3x8xbf16, #tpu.memory_space<vmem>>, vector<1x3x8xbf16>
    %205 = vector.shape_cast %204 : vector<1x3x8xbf16> to vector<3x8xbf16>
    %206 = arith.truncf %203 : vector<8x200xf32> to vector<8x200xbf16>
    %cst_195 = arith.constant dense<0.000000e+00> : vector<3x200xf32>
    %207 = tpu.matmul %205, %206, %cst_195 {dimension_numbers = #tpu.dot_dimension_numbers<[1], [0], [0], [1], [0, 0, 1, 1], [], []>} : vector<3x8xbf16>, vector<8x200xbf16>, vector<3x200xf32> -> vector<3x200xf32>
    %208 = arith.addf %200, %207 : vector<3x200xf32>
    %c3_196 = arith.constant 3 : index
    %c0_197 = arith.constant 0 : index
    %c0_198 = arith.constant 0 : index
    %209 = vector.load %arg16[%c3_196, %c0_197, %c0_198] : memref<4x72x200xbf16, #tpu.memory_space<vmem>>, vector<1x72x200xbf16>
    %210 = vector.shape_cast %209 : vector<1x72x200xbf16> to vector<72x200xbf16>
    %cst_199 = arith.constant dense<0.000000e+00> : vector<8x200xf32>
    %211 = tpu.matmul %185, %210, %cst_199 {dimension_numbers = #tpu.dot_dimension_numbers<[1], [0], [0], [1], [0, 0, 1, 1], [], []>} : vector<8x72xbf16>, vector<72x200xbf16>, vector<8x200xf32> -> vector<8x200xf32>
    %c3_200 = arith.constant 3 : index
    %c0_201 = arith.constant 0 : index
    %c0_202 = arith.constant 0 : index
    %212 = vector.load %arg17[%c3_200, %c0_201, %c0_202] : memref<4x3x8xbf16, #tpu.memory_space<vmem>>, vector<1x3x8xbf16>
    %213 = vector.shape_cast %212 : vector<1x3x8xbf16> to vector<3x8xbf16>
    %214 = arith.truncf %211 : vector<8x200xf32> to vector<8x200xbf16>
    %cst_203 = arith.constant dense<0.000000e+00> : vector<3x200xf32>
    %215 = tpu.matmul %213, %214, %cst_203 {dimension_numbers = #tpu.dot_dimension_numbers<[1], [0], [0], [1], [0, 0, 1, 1], [], []>} : vector<3x8xbf16>, vector<8x200xbf16>, vector<3x200xf32> -> vector<3x200xf32>
    %216 = arith.addf %208, %215 : vector<3x200xf32>
    %c0_204 = arith.constant 0 : index
    %c0_205 = arith.constant 0 : index
    %217 = vector.load %arg18[%c0_204, %c0_205] : memref<3x1xf32, #tpu.memory_space<vmem>>, vector<3x1xf32>
    %218 = vector.broadcast %217 : vector<3x1xf32> to vector<3x200xf32>
    %219 = arith.addf %216, %218 : vector<3x200xf32>
    %220 = math.tanh %219 : vector<3x200xf32>
    %c0_206 = arith.constant 0 : index
    %c0_207 = arith.constant 0 : index
    %221 = vector.load %arg19[%c0_206, %c0_207] : memref<3x200xf32, #tpu.memory_space<vmem>>, vector<3x200xf32>
    tpu.vector_store %arg19[%c0_206, %c0_207], %220 {strides = array<i32>} : memref<3x200xf32, #tpu.memory_space<vmem>>, vector<3x200xf32>,
    return
  }
}

</mosaic_0001>

<bundles_post_ra>
// kernel: forward.1
= control target key start
LH: loop header
LB: loop body
LE: loop exit
PB: predicated region body
PF: predicated region fallthrough
CT: control target
= control target key end

     0   :  { %vm1071_vm0 = vcmask 1040384   ;;  %vm1072_vm1 = vcmask 1041408   ;;  %vm1067_vm2 = vcmask 23552   ;;  %vm2320_vm3 = vcmask 1043456   ;;  %s8940_s1 = inlined_call_operand.vmem [shape: bf16[4,512,168], index: 1, kind: input, shape index: {}]   ;;  %s8941_s0 = inlined_call_operand.vmem [shape: bf16[3,512], index: 0, kind: input, shape index: {}]   ;;  %s8942_s2 = inlined_call_operand.vmem [shape: bf16[4,8,3], index: 2, kind: input, shape index: {}]   ;;  %s8943_s3 = inlined_call_operand.vmem [shape: f32[8,1], index: 3, kind: input, shape index: {}]   ;;  %s8944_s6 = inlined_call_operand.vmem [shape: f32[16,1], index: 6, kind: input, shape index: {}]   ;;  %s8945_s4 = inlined_call_operand.vmem [shape: bf16[4,168,56], index: 4, kind: input, shape index: {}]   ;;  %s8946_s9 = inlined_call_operand.vmem [shape: f32[32,1], index: 9, kind: input, shape index: {}]   ;;  %s8947_s15 = inlined_call_operand.vmem [shape: f32[8,1], index: 15, kind: input, shape index: {}]   ;;  %s8948_s5 = inlined_call_operand.vmem [shape: bf16[4,16,8], index: 5, kind: input, shape index: {}]   ;;  %s8949_s12 = inlined_call_operand.vmem [shape: f32[16,1], index: 12, kind: input, shape index: {}]   ;;  %s8950_s18 = inlined_call_operand.vmem [shape: f32[3,1], index: 18, kind: input, shape index: {}]   ;;  %s8951_s7 = inlined_call_operand.vmem [shape: bf16[4,56,24], index: 7, kind: input, shape index: {}]   ;;  %s8952_s8 = inlined_call_operand.vmem [shape: bf16[4,32,16], index: 8, kind: input, shape index: {}]   ;;  %s8953_s10 = inlined_call_operand.vmem [shape: bf16[4,24,32], index: 10, kind: input, shape index: {}]   ;;  %s8954_s11 = inlined_call_operand.vmem [shape: bf16[4,16,32], index: 11, kind: input, shape index: {}]   ;;  %s8955_s13 = inlined_call_operand.vmem [shape: bf16[4,32,72], index: 13, kind: input, shape index: {}]   ;;  %s8956_s14 = inlined_call_operand.vmem [shape: bf16[4,8,16], index: 14, kind: input, shape index: {}]   ;;  %s8957_s16 = inlined_call_operand.vmem [shape: bf16[4,72,200], index: 16, kind: input, shape index: {}]   ;;  %s8958_s17 = inlined_call_operand.vmem [shape: bf16[4,3,8], index: 17, kind: input, shape index: {}]   ;;  %s8959_s19 = inlined_call_operand.vmem [shape: f32[3,200], index: 19, kind: output, shape index: {}]  }
   0x1   :  { %8962 = sst [smem:[#allocation2_spill]] %s8940_s1  ;;  %vm2316_vm4 = vcmask 326656   ;;  %vm2476_vm5 = vcmask 64512   ;;  %vm2857_vm6 = vcmask 457728   ;;  %vm2945_vm7 = vcmask 130048  }
   0x2   :  { %8963 = sst [smem:[#allocation3_spill]] %s8941_s0  ;;  %vm3234_vm8 = vcmask 195584   ;;  %vm3312_vm9 = vcmask 261120   ;;  %vm3763_vm10 = vcmask 588800   ;;  %vm4234_vm11 = vcmask 1042432  }
   0x3   :  { %8964 = sst [smem:[#allocation4_spill]] %s8942_s2  ;;  %vm4235_vm12 = vcmask 587780  }
   0x4   :  { %8965 = sst [smem:[#allocation5_spill]] %s8943_s3  ;;  %vm4236_vm13 = vmor %vm4235_vm12, %vm4234_vm11 }
   0x5   :  { %s8966_s20 = sld [smem:[#allocation2_spill]] }
   0x6   :  { %s8967_s28 = sld [smem:[#allocation3_spill]] }
   0x7   :  { %s8968_s24 = sld [smem:[#allocation4_spill]] }
   0x8   :  { %s8969_s2 = sld [smem:[#allocation5_spill]] }
   0xb   :  { %v4300_v0 = vld [vmem:[%s8966_s20 + $0x70] sm:$0xf]  ;;  %v6150_v1 = vld [vmem:[%s8966_s20 + $0x74] sm:$0xf0]  ;;  %v4292_v11 = vld [vmem:[%s8966_s20 + $0x60] sm:$0xf] }
   0xc   :  { %v4364_v2 = vld [vmem:[%s8966_s20 + $0xf0] sm:$0xf]  ;;  %v4301_v3 = vor.u32 %v6150_v1, %v4300_v0  ;;  %v6166_v4 = vld [vmem:[%s8966_s20 + $0xf4] sm:$0xf0]  ;;  %v6148_v13 = vld [vmem:[%s8966_s20 + $0x64] sm:$0xf0] }
   0xd   :  { %v4428_v5 = vld [vmem:[%s8966_s20 + $0x170] sm:$0xf]  ;;  %v6182_v6 = vld [vmem:[%s8966_s20 + $0x174] sm:$0xf0]  ;;  %v4365_v7 = vor.u32 %v6166_v4, %v4364_v2  ;;  %v4356_v14 = vld [vmem:[%s8966_s20 + $0xe0] sm:$0xf]  ;;  %v4293_v16 = vor.u32 %v6148_v13, %v4292_v11 }
   0xe   :  { %v4429_v8 = vor.u32 %v6182_v6, %v4428_v5  ;;  %v4492_v9 = vld [vmem:[%s8966_s20 + $0x1f0] sm:$0xf]  ;;  %v6198_v10 = vld [vmem:[%s8966_s20 + $0x1f4] sm:$0xf0]  ;;  %458 = vmatpush.bf16.msra.mxu0 %v4301_v3  ;;  %v6164_v15 = vld [vmem:[%s8966_s20 + $0xe4] sm:$0xf0] }
   0xf   :  { %v4493_v12 = vor.u32 %v6198_v10, %v4492_v9  ;;  %471 = vmatpush.bf16.msra.mxu1 %v4365_v7  ;;  %v4357_v17 = vor.u32 %v6164_v15, %v4356_v14  ;;  %v4420_v18 = vld [vmem:[%s8966_s20 + $0x160] sm:$0xf]  ;;  %v6180_v19 = vld [vmem:[%s8966_s20 + $0x164] sm:$0xf0]  ;;  %v4284_v23 = vld [vmem:[%s8966_s20 + $0x50] sm:$0xf] }
  0x10   :  { %484 = vmatpush.bf16.msra.mxu2 %v4429_v8  ;;  %v4484_v20 = vld [vmem:[%s8966_s20 + $0x1e0] sm:$0xf]  ;;  %v4421_v21 = vor.u32 %v6180_v19, %v4420_v18  ;;  %v6196_v22 = vld [vmem:[%s8966_s20 + $0x1e4] sm:$0xf0]  ;;  %v6146_v24 = vld [vmem:[%s8966_s20 + $0x54] sm:$0xf0] }
  0x11   :  { %497 = vmatpush.bf16.msra.mxu3 %v4493_v12  ;;  %v4485_v25 = vor.u32 %v6196_v22, %v4484_v20  ;;  %v4348_v26 = vld [vmem:[%s8966_s20 + $0xd0] sm:$0xf]  ;;  %v6162_v27 = vld [vmem:[%s8966_s20 + $0xd4] sm:$0xf0]  ;;  %v4285_v29 = vor.u32 %v6146_v24, %v4284_v23  ;;  %v4276_v35 = vld [vmem:[%s8966_s20 + $0x40] sm:$0xf] }
  0x12   :  { %v4412_v28 = vld [vmem:[%s8966_s20 + $0x150] sm:$0xf]  ;;  %459 = vmatpush.bf16.msra.mxu0 %v4293_v16  ;;  %v6178_v30 = vld [vmem:[%s8966_s20 + $0x154] sm:$0xf0]  ;;  %v4349_v33 = vor.u32 %v6162_v27, %v4348_v26  ;;  %v6144_v36 = vld [vmem:[%s8966_s20 + $0x44] sm:$0xf0] }
  0x13   :  { %v4476_v31 = vld [vmem:[%s8966_s20 + $0x1d0] sm:$0xf]  ;;  %v6194_v32 = vld [vmem:[%s8966_s20 + $0x1d4] sm:$0xf0]  ;;  %472 = vmatpush.bf16.msra.mxu1 %v4357_v17  ;;  %v4413_v34 = vor.u32 %v6178_v30, %v4412_v28  ;;  %v4340_v37 = vld [vmem:[%s8966_s20 + $0xc0] sm:$0xf]  ;;  %v4277_v44 = vor.u32 %v6144_v36, %v4276_v35 }
  0x14   :  { %485 = vmatpush.bf16.msra.mxu2 %v4421_v21  ;;  %v4477_v38 = vor.u32 %v6194_v32, %v4476_v31  ;;  %v6160_v39 = vld [vmem:[%s8966_s20 + $0xc4] sm:$0xf0]  ;;  %v4404_v40 = vld [vmem:[%s8966_s20 + $0x140] sm:$0xf]  ;;  %v4268_v47 = vld [vmem:[%s8966_s20 + $0x30] sm:$0xf] }
  0x15   :  { %498 = vmatpush.bf16.msra.mxu3 %v4485_v25  ;;  %v6176_v41 = vld [vmem:[%s8966_s20 + $0x144] sm:$0xf0]  ;;  %v4468_v42 = vld [vmem:[%s8966_s20 + $0x1c0] sm:$0xf]  ;;  %v4341_v45 = vor.u32 %v6160_v39, %v4340_v37  ;;  %v6142_v48 = vld [vmem:[%s8966_s20 + $0x34] sm:$0xf0] }
  0x16   :  { %v6192_v43 = vld [vmem:[%s8966_s20 + $0x1c4] sm:$0xf0]  ;;  %460 = vmatpush.bf16.msra.mxu0 %v4285_v29  ;;  %v4405_v46 = vor.u32 %v6176_v41, %v4404_v40  ;;  %v4332_v49 = vld [vmem:[%s8966_s20 + $0xb0] sm:$0xf]  ;;  %v6158_v51 = vld [vmem:[%s8966_s20 + $0xb4] sm:$0xf0]  ;;  %v4269_v56 = vor.u32 %v6142_v48, %v4268_v47 }
  0x17   :  { %473 = vmatpush.bf16.msra.mxu1 %v4349_v33  ;;  %v4469_v50 = vor.u32 %v6192_v43, %v4468_v42  ;;  %v4396_v52 = vld [vmem:[%s8966_s20 + $0x130] sm:$0xf]  ;;  %v6174_v53 = vld [vmem:[%s8966_s20 + $0x134] sm:$0xf0]  ;;  %v4333_v57 = vor.u32 %v6158_v51, %v4332_v49  ;;  %v4260_v59 = vld [vmem:[%s8966_s20 + $0x20] sm:$0xf] }
  0x18   :  { %486 = vmatpush.bf16.msra.mxu2 %v4413_v34  ;;  %v4460_v54 = vld [vmem:[%s8966_s20 + $0x1b0] sm:$0xf]  ;;  %v6190_v55 = vld [vmem:[%s8966_s20 + $0x1b4] sm:$0xf0]  ;;  %v4397_v58 = vor.u32 %v6174_v53, %v4396_v52  ;;  %v6140_v60 = vld [vmem:[%s8966_s20 + $0x24] sm:$0xf0] }
  0x19   :  { %499 = vmatpush.bf16.msra.mxu3 %v4477_v38  ;;  %v4324_v61 = vld [vmem:[%s8966_s20 + $0xa0] sm:$0xf]  ;;  %v4461_v62 = vor.u32 %v6190_v55, %v4460_v54  ;;  %v6156_v63 = vld [vmem:[%s8966_s20 + $0xa4] sm:$0xf0]  ;;  %v4261_v4 = vor.u32 %v6140_v60, %v4260_v59  ;;  %v4252_v7 = vld [vmem:[%s8966_s20 + $0x10] sm:$0xf] }
  0x1a   :  { %461 = vmatpush.bf16.msra.mxu0 %v4277_v44  ;;  %v4388_v0 = vld [vmem:[%s8966_s20 + $0x120] sm:$0xf]  ;;  %v6172_v1 = vld [vmem:[%s8966_s20 + $0x124] sm:$0xf0]  ;;  %v4325_v5 = vor.u32 %v6156_v63, %v4324_v61  ;;  %v6138_v8 = vld [vmem:[%s8966_s20 + $0x14] sm:$0xf0] }
  0x1b   :  { %474 = vmatpush.bf16.msra.mxu1 %v4341_v45  ;;  %v4452_v2 = vld [vmem:[%s8966_s20 + $0x1a0] sm:$0xf]  ;;  %v6188_v3 = vld [vmem:[%s8966_s20 + $0x1a4] sm:$0xf0]  ;;  %v4389_v6 = vor.u32 %v6172_v1, %v4388_v0  ;;  %v4316_v9 = vld [vmem:[%s8966_s20 + $0x90] sm:$0xf]  ;;  %v4253_v16 = vor.u32 %v6138_v8, %v4252_v7 }
  0x1c   :  { %487 = vmatpush.bf16.msra.mxu2 %v4405_v46  ;;  %v4453_v10 = vor.u32 %v6188_v3, %v4452_v2  ;;  %v6154_v11 = vld [vmem:[%s8966_s20 + $0x94] sm:$0xf0]  ;;  %v4380_v12 = vld [vmem:[%s8966_s20 + $0x110] sm:$0xf]  ;;  %v4244_v17 = vld [vmem:[%s8966_s20] sm:$0xf] }
  0x1d   :  { %500 = vmatpush.bf16.msra.mxu3 %v4469_v50  ;;  %v6170_v13 = vld [vmem:[%s8966_s20 + $0x114] sm:$0xf0]  ;;  %v4444_v14 = vld [vmem:[%s8966_s20 + $0x190] sm:$0xf]  ;;  %v6136_v18 = vld [vmem:[%s8966_s20 + $0x4] sm:$0xf0]  ;;  %v4317_v19 = vor.u32 %v6154_v11, %v4316_v9 }
  0x1e   :  { %462 = vmatpush.bf16.msra.mxu0 %v4269_v56  ;;  %v6186_v15 = vld [vmem:[%s8966_s20 + $0x194] sm:$0xf0]  ;;  %v4381_v20 = vor.u32 %v6170_v13, %v4380_v12  ;;  %v4308_v21 = vld [vmem:[%s8966_s20 + $0x80] sm:$0xf]  ;;  %v6152_v22 = vld [vmem:[%s8966_s20 + $0x84] sm:$0xf0]  ;;  %v4245_v31 = vor.u32 %v6136_v18, %v4244_v17 }
  0x1f   :  { %475 = vmatpush.bf16.msra.mxu1 %v4333_v57  ;;  %v4372_v23 = vld [vmem:[%s8966_s20 + $0x100] sm:$0xf]  ;;  %v4445_v24 = vor.u32 %v6186_v15, %v4444_v14  ;;  %v6168_v25 = vld [vmem:[%s8966_s20 + $0x104] sm:$0xf0]  ;;  %v6149_v28 = vld [vmem:[%s8966_s20 + $0x74] sm:$0xf]  ;;  %v4309_v35 = vor.u32 %v6152_v22, %v4308_v21 }
  0x20   :  { %488 = vmatpush.bf16.msra.mxu2 %v4397_v58  ;;  %v4436_v26 = vld [vmem:[%s8966_s20 + $0x180] sm:$0xf]  ;;  %v6184_v27 = vld [vmem:[%s8966_s20 + $0x184] sm:$0xf0]  ;;  %v4302_v29 = vld [vmem:[%s8966_s20 + $0x78] sm:$0xf0]  ;;  %v4373_v36 = vor.u32 %v6168_v25, %v4372_v23 }
  0x21   :  { %501 = vmatpush.bf16.msra.mxu3 %v4461_v62  ;;  %v6165_v30 = vld [vmem:[%s8966_s20 + $0xf4] sm:$0xf]  ;;  %v4366_v32 = vld [vmem:[%s8966_s20 + $0xf8] sm:$0xf0]  ;;  %v4437_v39 = vor.u32 %v6184_v27, %v4436_v26  ;;  %v4305_v40 = vor.u32 %v6149_v28, %v4302_v29  ;;  %v6147_v43 = vld [vmem:[%s8966_s20 + $0x64] sm:$0xf] }
  0x22   :  { %463 = vmatpush.bf16.msra.mxu0 %v4261_v4  ;;  %v6181_v33 = vld [vmem:[%s8966_s20 + $0x174] sm:$0xf]  ;;  %v4430_v34 = vld [vmem:[%s8966_s20 + $0x178] sm:$0xf0]  ;;  %v4369_v41 = vor.u32 %v6165_v30, %v4366_v32  ;;  %v4294_v44 = vld [vmem:[%s8966_s20 + $0x68] sm:$0xf0] }
  0x23   :  { %476 = vmatpush.bf16.msra.mxu1 %v4325_v5  ;;  %v6197_v37 = vld [vmem:[%s8966_s20 + $0x1f4] sm:$0xf]  ;;  %v4494_v38 = vld [vmem:[%s8966_s20 + $0x1f8] sm:$0xf0]  ;;  %v4433_v42 = vor.u32 %v6181_v33, %v4430_v34  ;;  %v6163_v45 = vld [vmem:[%s8966_s20 + $0xe4] sm:$0xf]  ;;  %v4297_v52 = vor.u32 %v6147_v43, %v4294_v44 }
  0x24   :  { %489 = vmatpush.bf16.msra.mxu2 %v4389_v6  ;;  %v4497_v46 = vor.u32 %v6197_v37, %v4494_v38  ;;  %v4358_v47 = vld [vmem:[%s8966_s20 + $0xe8] sm:$0xf0]  ;;  %v6179_v48 = vld [vmem:[%s8966_s20 + $0x164] sm:$0xf]  ;;  %v6145_v55 = vld [vmem:[%s8966_s20 + $0x54] sm:$0xf] }
  0x25   :  { %502 = vmatpush.bf16.msra.mxu3 %v4453_v10  ;;  %v4422_v49 = vld [vmem:[%s8966_s20 + $0x168] sm:$0xf0]  ;;  %v6195_v50 = vld [vmem:[%s8966_s20 + $0x1e4] sm:$0xf]  ;;  %v4361_v53 = vor.u32 %v6163_v45, %v4358_v47  ;;  %v4286_v56 = vld [vmem:[%s8966_s20 + $0x58] sm:$0xf0] }
  0x26   :  { %464 = vmatpush.bf16.msra.mxu0 %v4253_v16  ;;  %v4486_v51 = vld [vmem:[%s8966_s20 + $0x1e8] sm:$0xf0]  ;;  %v4425_v54 = vor.u32 %v6179_v48, %v4422_v49  ;;  %v6161_v57 = vld [vmem:[%s8966_s20 + $0xd4] sm:$0xf]  ;;  %v4350_v59 = vld [vmem:[%s8966_s20 + $0xd8] sm:$0xf0]  ;;  %v4289_v0 = vor.u32 %v6145_v55, %v4286_v56 }
  0x27   :  { %477 = vmatpush.bf16.msra.mxu1 %v4317_v19  ;;  %v4489_v58 = vor.u32 %v6195_v50, %v4486_v51  ;;  %v6177_v60 = vld [vmem:[%s8966_s20 + $0x154] sm:$0xf]  ;;  %v4414_v61 = vld [vmem:[%s8966_s20 + $0x158] sm:$0xf0]  ;;  %v6143_v1 = vld [vmem:[%s8966_s20 + $0x44] sm:$0xf]  ;;  %v4353_v3 = vor.u32 %v6161_v57, %v4350_v59 }
  0x28   :  { %490 = vmatpush.bf16.msra.mxu2 %v4381_v20  ;;  %v6193_v62 = vld [vmem:[%s8966_s20 + $0x1d4] sm:$0xf]  ;;  %v4478_v63 = vld [vmem:[%s8966_s20 + $0x1d8] sm:$0xf0]  ;;  %v6884_v2 = vld [vmem:[%s8967_s28] sm:$0xff]  ;;  %v4417_v4 = vor.u32 %v6177_v60, %v4414_v61 }
  0x29   :  { %503 = vmatpush.bf16.msra.mxu3 %v4445_v24  ;;  %v4278_v5 = vld [vmem:[%s8966_s20 + $0x48] sm:$0xf0]  ;;  %v6159_v6 = vld [vmem:[%s8966_s20 + $0xc4] sm:$0xf]  ;;  %129 = vst [vmem:[#allocation1] ss:$4 sm:$0xff] %v6884_v2  ;;  %v4481_v7 = vor.u32 %v6193_v62, %v4478_v63 }
  0x2a   :  { %465 = vmatpush.bf16.msra.mxu0 %v4245_v31  ;;  %v4342_v8 = vld [vmem:[%s8966_s20 + $0xc8] sm:$0xf0]  ;;  %v6175_v9 = vld [vmem:[%s8966_s20 + $0x144] sm:$0xf]  ;;  %v4281_v13 = vor.u32 %v6143_v1, %v4278_v5  ;;  %v6141_v14 = vld [vmem:[%s8966_s20 + $0x34] sm:$0xf] }
  0x2b   :  { %478 = vmatpush.bf16.msra.mxu1 %v4309_v35  ;;  %v4406_v10 = vld [vmem:[%s8966_s20 + $0x148] sm:$0xf0]  ;;  %v6191_v11 = vld [vmem:[%s8966_s20 + $0x1c4] sm:$0xf]  ;;  %v4345_v15 = vor.u32 %v6159_v6, %v4342_v8  ;;  %v4270_v17 = vld [vmem:[%s8966_s20 + $0x38] sm:$0xf0] }
  0x2c   :  { %491 = vmatpush.bf16.msra.mxu2 %v4373_v36  ;;  %v4470_v12 = vld [vmem:[%s8966_s20 + $0x1c8] sm:$0xf0]  ;;  %v4409_v16 = vor.u32 %v6175_v9, %v4406_v10  ;;  %v6157_v18 = vld [vmem:[%s8966_s20 + $0xb4] sm:$0xf]  ;;  %v4334_v19 = vld [vmem:[%s8966_s20 + $0xb8] sm:$0xf0]  ;;  %v4273_v27 = vor.u32 %v6141_v14, %v4270_v17 }
  0x2d   :  { %504 = vmatpush.bf16.msra.mxu3 %v4437_v39  ;;  %v4473_v20 = vor.u32 %v6191_v11, %v4470_v12  ;;  %v6173_v21 = vld [vmem:[%s8966_s20 + $0x134] sm:$0xf]  ;;  %v4398_v22 = vld [vmem:[%s8966_s20 + $0x138] sm:$0xf0]  ;;  %v6139_v25 = vld [vmem:[%s8966_s20 + $0x24] sm:$0xf]  ;;  %v4337_v32 = vor.u32 %v6157_v18, %v4334_v19 }
  0x2e   :  { %510 = vmatpush.bf16.msrb.mxu0 %v4305_v40  ;;  %v6189_v23 = vld [vmem:[%s8966_s20 + $0x1b4] sm:$0xf]  ;;  %v4462_v24 = vld [vmem:[%s8966_s20 + $0x1b8] sm:$0xf0]  ;;  %v4262_v26 = vld [vmem:[%s8966_s20 + $0x28] sm:$0xf0]  ;;  %v4401_v33 = vor.u32 %v6173_v21, %v4398_v22 }
  0x2f   :  { %523 = vmatpush.bf16.msrb.mxu1 %v4369_v41  ;;  %v6155_v28 = vld [vmem:[%s8966_s20 + $0xa4] sm:$0xf]  ;;  %v4326_v29 = vld [vmem:[%s8966_s20 + $0xa8] sm:$0xf0]  ;;  %v4465_v36 = vor.u32 %v6189_v23, %v4462_v24  ;;  %v4265_v41 = vor.u32 %v6139_v25, %v4262_v26  ;;  %v6137_v44 = vld [vmem:[%s8966_s20 + $0x14] sm:$0xf] }
  0x30   :  { %536 = vmatpush.bf16.msrb.mxu2 %v4433_v42  ;;  %v6944_v30 = vld.sshfl [vmem:[#allocation1 + $0x10] sm:$0xff pattern:$0x73625140]  ;;  %v6946_v31 = vld.sshfl [vmem:[#allocation1 + $0x18] sm:$0xff pattern:$0x73625140]  ;;  %v4329_v42 = vor.u32 %v6155_v28, %v4326_v29 }
  0x31   :  { %549 = vmatpush.bf16.msrb.mxu3 %v4497_v46  ;;  %v6948_v34 = vld.sshfl [vmem:[#allocation1] sm:$0xff pattern:$0x73625140]  ;;  %v6950_v35 = vld.sshfl [vmem:[#allocation1 + $0x8] sm:$0xff pattern:$0x73625140]  ;;  %492 = vmatmul.bf16.vlgmr.msra.gmra.mxu2 %v6944_v30 }
  0x32   :  { %511 = vmatpush.bf16.msrb.mxu0 %v4297_v52  ;;  %v6171_v37 = vld [vmem:[%s8966_s20 + $0x124] sm:$0xf]  ;;  %v4390_v38 = vld [vmem:[%s8966_s20 + $0x128] sm:$0xf0]  ;;  %630 = vst [vmem:[#allocation1] ss:$4 sm:$0xff] %v6884_v2  ;;  %505 = vmatmul.bf16.vlgmr.msra.gmra.mxu3 %v6946_v31 }
  0x33   :  { %524 = vmatpush.bf16.msrb.mxu1 %v4361_v53  ;;  %v6187_v39 = vld [vmem:[%s8966_s20 + $0x1a4] sm:$0xf]  ;;  %v4454_v40 = vld [vmem:[%s8966_s20 + $0x1a8] sm:$0xf0]  ;;  %466 = vmatmul.bf16.vlgmr.msra.gmra.mxu0 %v6948_v34  ;;  %v4393_v43 = vor.u32 %v6171_v37, %v4390_v38  ;;  %v4254_v45 = vld [vmem:[%s8966_s20 + $0x18] sm:$0xf0] }
  0x34   :  { %537 = vmatpush.bf16.msrb.mxu2 %v4425_v54  ;;  %479 = vmatmul.bf16.vlgmr.msra.gmra.mxu1 %v6950_v35  ;;  %v6153_v46 = vld [vmem:[%s8966_s20 + $0x94] sm:$0xf]  ;;  %v4457_v47 = vor.u32 %v6187_v39, %v4454_v40  ;;  %v4318_v48 = vld [vmem:[%s8966_s20 + $0x98] sm:$0xf0]  ;;  %v4257_v53 = vor.u32 %v6137_v44, %v4254_v45  ;;  %v6135_v54 = vld [vmem:[%s8966_s20 + $0x4] sm:$0xf] }
  0x35   :  { %550 = vmatpush.bf16.msrb.mxu3 %v4489_v58  ;;  %v6169_v49 = vld [vmem:[%s8966_s20 + $0x114] sm:$0xf]  ;;  %v4382_v50 = vld [vmem:[%s8966_s20 + $0x118] sm:$0xf0]  ;;  %v4246_v55 = vld [vmem:[%s8966_s20 + $0x8] sm:$0xf0]  ;;  %v4321_v56 = vor.u32 %v6153_v46, %v4318_v48 }
  0x36   :  { %512 = vmatpush.bf16.msrb.mxu0 %v4289_v0  ;;  %v6185_v51 = vld [vmem:[%s8966_s20 + $0x194] sm:$0xf]  ;;  %v4446_v52 = vld [vmem:[%s8966_s20 + $0x198] sm:$0xf0]  ;;  %v4385_v57 = vor.u32 %v6169_v49, %v4382_v50  ;;  %v6151_v58 = vld [vmem:[%s8966_s20 + $0x84] sm:$0xf]  ;;  %v4249_v5 = vor.u32 %v6135_v54, %v4246_v55 }
  0x37   :  { %525 = vmatpush.bf16.msrb.mxu1 %v4353_v3  ;;  %v4310_v59 = vld [vmem:[%s8966_s20 + $0x88] sm:$0xf0]  ;;  %v6167_v60 = vld [vmem:[%s8966_s20 + $0x104] sm:$0xf]  ;;  %v4449_v61 = vor.u32 %v6185_v51, %v4446_v52  ;;  %v4620_v1 = vld [vmem:[%s8966_s20 + $0x270] sm:$0xf] }
  0x38   :  { %538 = vmatpush.bf16.msrb.mxu2 %v4417_v4  ;;  %v4374_v62 = vld [vmem:[%s8966_s20 + $0x108] sm:$0xf0]  ;;  %v6183_v63 = vld [vmem:[%s8966_s20 + $0x184] sm:$0xf]  ;;  %v6214_v3 = vld [vmem:[%s8966_s20 + $0x274] sm:$0xf0]  ;;  %v4313_v9 = vor.u32 %v6151_v58, %v4310_v59 }
  0x39   :  { %551 = vmatpush.bf16.msrb.mxu3 %v4481_v7  ;;  %v4438_v0 = vld [vmem:[%s8966_s20 + $0x188] sm:$0xf0]  ;;  %v4684_v4 = vld [vmem:[%s8966_s20 + $0x2f0] sm:$0xf]  ;;  %v6230_v6 = vld [vmem:[%s8966_s20 + $0x2f4] sm:$0xf0]  ;;  %v4377_v10 = vor.u32 %v6167_v60, %v4374_v62  ;;  %v4621_v14 = vor.u32 %v6214_v3, %v4620_v1 }
  0x3a   :  { %513 = vmatpush.bf16.msrb.mxu0 %v4281_v13  ;;  %v4748_v7 = vld [vmem:[%s8966_s20 + $0x370] sm:$0xf]  ;;  %v6246_v8 = vld [vmem:[%s8966_s20 + $0x374] sm:$0xf0]  ;;  %v4441_v13 = vor.u32 %v6183_v63, %v4438_v0  ;;  %v4612_v17 = vld [vmem:[%s8966_s20 + $0x260] sm:$0xf] }
  0x3b   :  { %526 = vmatpush.bf16.msrb.mxu1 %v4345_v15  ;;  %v4812_v11 = vld [vmem:[%s8966_s20 + $0x3f0] sm:$0xf]  ;;  %v6262_v12 = vld [vmem:[%s8966_s20 + $0x3f4] sm:$0xf0]  ;;  %v4685_v15 = vor.u32 %v6230_v6, %v4684_v4  ;;  %v6212_v18 = vld [vmem:[%s8966_s20 + $0x264] sm:$0xf0] }
  0x3c   :  { %539 = vmatpush.bf16.msrb.mxu2 %v4409_v16  ;;  %v4749_v16 = vor.u32 %v6246_v8, %v4748_v7  ;;  %v4676_v19 = vld [vmem:[%s8966_s20 + $0x2e0] sm:$0xf]  ;;  %v6228_v21 = vld [vmem:[%s8966_s20 + $0x2e4] sm:$0xf0]  ;;  %v4613_v26 = vor.u32 %v6212_v18, %v4612_v17  ;;  %v4604_v29 = vld [vmem:[%s8966_s20 + $0x250] sm:$0xf] }
  0x3d   :  { %552 = vmatpush.bf16.msrb.mxu3 %v4473_v20  ;;  %v4813_v20 = vor.u32 %v6262_v12, %v4812_v11  ;;  %v4740_v22 = vld [vmem:[%s8966_s20 + $0x360] sm:$0xf]  ;;  %v6244_v23 = vld [vmem:[%s8966_s20 + $0x364] sm:$0xf0]  ;;  %v6226_v37 = vld [vmem:[%s8966_s20 + $0x2d4] sm:$0xf0] }
  0x3e   :  { %514 = vmatpush.bf16.msrb.mxu0 %v4273_v27  ;;  %v4804_v24 = vld [vmem:[%s8966_s20 + $0x3e0] sm:$0xf]  ;;  %v6260_v25 = vld [vmem:[%s8966_s20 + $0x3e4] sm:$0xf0]  ;;  %v4677_v27 = vor.u32 %v6228_v21, %v4676_v19  ;;  %v4741_v28 = vor.u32 %v6244_v23, %v4740_v22  ;;  %v4732_v38 = vld [vmem:[%s8966_s20 + $0x350] sm:$0xf] }
  0x3f   :  { %527 = vmatpush.bf16.msrb.mxu1 %v4337_v32  ;;  %v6210_v32 = vld [vmem:[%s8966_s20 + $0x254] sm:$0xf0]  ;;  %v4796_v40 = vld [vmem:[%s8966_s20 + $0x3d0] sm:$0xf]  ;;  %v4596_v44 = vld [vmem:[%s8966_s20 + $0x240] sm:$0xf] }
  0x40   :  { %540 = vmatpush.bf16.msrb.mxu2 %v4401_v33  ;;  %v4668_v33 = vld [vmem:[%s8966_s20 + $0x2d0] sm:$0xf]  ;;  %v6242_v39 = vld [vmem:[%s8966_s20 + $0x354] sm:$0xf0]  ;;  %v6208_v45 = vld [vmem:[%s8966_s20 + $0x244] sm:$0xf0] }
  0x41   :  { %553 = vmatpush.bf16.msrb.mxu3 %v4465_v36  ;;  %v4805_v36 = vor.u32 %v6260_v25, %v4804_v24  ;;  %v4724_v46 = vld [vmem:[%s8966_s20 + $0x340] sm:$0xf]  ;;  %v6256_v49 = vld [vmem:[%s8966_s20 + $0x3c4] sm:$0xf0]  ;;  %v4597_v50 = vor.u32 %v6208_v45, %v4596_v44  ;;  %v4588_v51 = vld [vmem:[%s8966_s20 + $0x230] sm:$0xf] }
  0x42   :  { %515 = vmatpush.bf16.msrb.mxu0 %v4265_v41  ;;  %v6258_v41 = vld [vmem:[%s8966_s20 + $0x3d4] sm:$0xf0]  ;;  %v4788_v48 = vld [vmem:[%s8966_s20 + $0x3c0] sm:$0xf]  ;;  %v4652_v55 = vld [vmem:[%s8966_s20 + $0x2b0] sm:$0xf] }
  0x43   :  { %528 = vmatpush.bf16.msrb.mxu1 %v4329_v42  ;;  %v4605_v42 = vor.u32 %v6210_v32, %v4604_v29  ;;  %v6206_v54 = vld [vmem:[%s8966_s20 + $0x234] sm:$0xf0]  ;;  %v4716_v58 = vld [vmem:[%s8966_s20 + $0x330] sm:$0xf]  ;;  %v4580_v62 = vld [vmem:[%s8966_s20 + $0x220] sm:$0xf] }
  0x44   :  { %541 = vmatpush.bf16.msrb.mxu2 %v4393_v43  ;;  %v4669_v43 = vor.u32 %v6226_v37, %v4668_v33  ;;  %v6238_v59 = vld [vmem:[%s8966_s20 + $0x334] sm:$0xf0]  ;;  %v4780_v60 = vld [vmem:[%s8966_s20 + $0x3b0] sm:$0xf]  ;;  %v6204_v63 = vld [vmem:[%s8966_s20 + $0x224] sm:$0xf0]  ;;  %v4589_v0 = vor.u32 %v6206_v54, %v4588_v51 }
  0x45   :  { %554 = vmatpush.bf16.msrb.mxu3 %v4457_v47  ;;  %v6240_v47 = vld [vmem:[%s8966_s20 + $0x344] sm:$0xf0]  ;;  %v4644_v1 = vld [vmem:[%s8966_s20 + $0x2a0] sm:$0xf]  ;;  %v4717_v7 = vor.u32 %v6238_v59, %v4716_v58  ;;  %v4572_v18 = vld [vmem:[%s8966_s20 + $0x210] sm:$0xf] }
  0x46   :  { %516 = vmatpush.bf16.msrb.mxu0 %v4257_v53  ;;  %v4725_v53 = vor.u32 %v6240_v47, %v4724_v46  ;;  %v6220_v3 = vld [vmem:[%s8966_s20 + $0x2a4] sm:$0xf0]  ;;  %v4708_v4 = vld [vmem:[%s8966_s20 + $0x320] sm:$0xf]  ;;  %v6202_v19 = vld [vmem:[%s8966_s20 + $0x214] sm:$0xf0] }
  0x47   :  { %529 = vmatpush.bf16.msrb.mxu1 %v4321_v56  ;;  %v6222_v56 = vld [vmem:[%s8966_s20 + $0x2b4] sm:$0xf0]  ;;  %v7159_v8 = vld.sshfl [vmem:[#allocation1 + $0x10] sm:$0xff pattern:$0x73625140] }
  0x48   :  { %542 = vmatpush.bf16.msrb.mxu2 %v4385_v57  ;;  %v4789_v57 = vor.u32 %v6256_v49, %v4788_v48  ;;  %v4653_v6 = vor.u32 %v6222_v56, %v4652_v55  ;;  %v7163_v11 = vld.sshfl [vmem:[#allocation1] sm:$0xff pattern:$0x73625140]  ;;  %v7165_v12 = vld.sshfl [vmem:[#allocation1 + $0x8] sm:$0xff pattern:$0x73625140] }
  0x49   :  { %555 = vmatpush.bf16.msrb.mxu3 %v4449_v61  ;;  %v6254_v61 = vld [vmem:[%s8966_s20 + $0x3b4] sm:$0xf0]  ;;  %v4700_v23 = vld [vmem:[%s8966_s20 + $0x310] sm:$0xf]  ;;  %v6200_v29 = vld [vmem:[%s8966_s20 + $0x204] sm:$0xf0] }
  0x4a   :  { %517 = vmatpush.bf16.msrb.mxu0 %v4249_v5  ;;  %v6236_v5 = vld [vmem:[%s8966_s20 + $0x324] sm:$0xf0]  ;;  %v6218_v22 = vld [vmem:[%s8966_s20 + $0x294] sm:$0xf0]  ;;  %v4764_v25 = vld [vmem:[%s8966_s20 + $0x390] sm:$0xf] }
  0x4b   :  { %530 = vmatpush.bf16.msrb.mxu1 %v4313_v9  ;;  %v7161_v9 = vld.sshfl [vmem:[#allocation1 + $0x18] sm:$0xff pattern:$0x73625140]  ;;  %v4709_v17 = vor.u32 %v6236_v5, %v4708_v4  ;;  %v6216_v37 = vld [vmem:[%s8966_s20 + $0x284] sm:$0xf0] }
  0x4c   :  { %543 = vmatpush.bf16.msrb.mxu2 %v4377_v10  ;;  %v4781_v10 = vor.u32 %v6254_v61, %v4780_v60  ;;  %1207 = vst [vmem:[#allocation1] ss:$4 sm:$0xff] %v6884_v2  ;;  %v6234_v24 = vld [vmem:[%s8966_s20 + $0x314] sm:$0xf0]  ;;  %v6229_v44 = vld [vmem:[%s8966_s20 + $0x2f4] sm:$0xf] }
  0x4d   :  { %556 = vmatpush.bf16.msrb.mxu3 %v4441_v13  ;;  %518 = vmatmul.bf16.vlgmr.msrb.gmra.mxu0 %v6948_v34  ;;  %v4797_v34 = vor.u32 %v6258_v41, %v4796_v40  ;;  %v4772_v13 = vld [vmem:[%s8966_s20 + $0x3a0] sm:$0xf]  ;;  %v4701_v33 = vor.u32 %v6234_v24, %v4700_v23  ;;  %v6232_v40 = vld [vmem:[%s8966_s20 + $0x304] sm:$0xf0]  ;;  %v6261_v48 = vld [vmem:[%s8966_s20 + $0x3f4] sm:$0xf] }
  0x4e   :  { %959 = vmatpush.bf16.msra.mxu0 %v4621_v14  ;;  %531 = vmatmul.bf16.vlgmr.msrb.gmra.mxu1 %v6950_v35  ;;  %v6224_v35 = vld [vmem:[%s8966_s20 + $0x2c4] sm:$0xf0]  ;;  %v4756_v41 = vld [vmem:[%s8966_s20 + $0x380] sm:$0xf]  ;;  %v4814_v49 = vld [vmem:[%s8966_s20 + $0x3f8] sm:$0xf0] }
  0x4f   :  { %972 = vmatpush.bf16.msra.mxu1 %v4685_v15  ;;  %544 = vmatmul.bf16.vlgmr.msrb.gmra.mxu2 %v6944_v30  ;;  %v4733_v30 = vor.u32 %v6242_v39, %v4732_v38  ;;  %v6252_v14 = vld [vmem:[%s8966_s20 + $0x3a4] sm:$0xf0]  ;;  %v4581_v15 = vor.u32 %v6204_v63, %v4580_v62  ;;  %v4692_v38 = vld [vmem:[%s8966_s20 + $0x300] sm:$0xf]  ;;  %v6211_v54 = vld [vmem:[%s8966_s20 + $0x264] sm:$0xf] }
  0x50   :  { %985 = vmatpush.bf16.msra.mxu2 %v4749_v16  ;;  %557 = vmatmul.bf16.vlgmr.msrb.gmra.mxu3 %v6946_v31  ;;  %v4660_v31 = vld [vmem:[%s8966_s20 + $0x2c0] sm:$0xf]  ;;  %v4645_v16 = vor.u32 %v6220_v3, %v4644_v1  ;;  %v4773_v21 = vor.u32 %v6252_v14, %v4772_v13  ;;  %v4693_v47 = vor.u32 %v6232_v40, %v4692_v38  ;;  %v4614_v55 = vld [vmem:[%s8966_s20 + $0x268] sm:$0xf0]  ;;  %v6227_v56 = vld [vmem:[%s8966_s20 + $0x2e4] sm:$0xf] }
  0x51   :  { %998 = vmatpush.bf16.msra.mxu3 %v4813_v20  ;;  %v4661_v52 = vor.u32 %v6224_v35, %v4660_v31  ;;  %v4636_v20 = vld [vmem:[%s8966_s20 + $0x290] sm:$0xf]  ;;  %v4686_v31 = vld [vmem:[%s8966_s20 + $0x2f8] sm:$0xf0]  ;;  %v4678_v58 = vld [vmem:[%s8966_s20 + $0x2e8] sm:$0xf0]  ;;  %v4617_v63 = vor.u32 %v6211_v54, %v4614_v55 }
  0x52   :  { %960 = vmatpush.bf16.msra.mxu0 %v4613_v26  ;;  %v6250_v26 = vld [vmem:[%s8966_s20 + $0x394] sm:$0xf0]  ;;  %v4637_v32 = vor.u32 %v6218_v22, %v4636_v20  ;;  %v4750_v35 = vld [vmem:[%s8966_s20 + $0x378] sm:$0xf0]  ;;  %v6243_v59 = vld [vmem:[%s8966_s20 + $0x364] sm:$0xf] }
  0x53   :  { %973 = vmatpush.bf16.msra.mxu1 %v4677_v27  ;;  %v4573_v27 = vor.u32 %v6202_v19, %v4572_v18  ;;  %v4765_v39 = vor.u32 %v6250_v26, %v4764_v25  ;;  %v4742_v60 = vld [vmem:[%s8966_s20 + $0x368] sm:$0xf0]  ;;  %v6259_v61 = vld [vmem:[%s8966_s20 + $0x3e4] sm:$0xf]  ;;  %v6209_v3 = vld [vmem:[%s8966_s20 + $0x254] sm:$0xf] }
  0x54   :  { %986 = vmatpush.bf16.msra.mxu2 %v4741_v28  ;;  %v4564_v28 = vld [vmem:[%s8966_s20 + $0x200] sm:$0xf]  ;;  %v4806_v62 = vld [vmem:[%s8966_s20 + $0x3e8] sm:$0xf0]  ;;  %v4745_v1 = vor.u32 %v6243_v59, %v4742_v60  ;;  %v4606_v4 = vld [vmem:[%s8966_s20 + $0x258] sm:$0xf0] }
  0x55   :  { %999 = vmatpush.bf16.msra.mxu3 %v4805_v36  ;;  %v4628_v36 = vld [vmem:[%s8966_s20 + $0x280] sm:$0xf]  ;;  %v4565_v45 = vor.u32 %v6200_v29, %v4564_v28  ;;  %v6225_v5 = vld [vmem:[%s8966_s20 + $0x2d4] sm:$0xf]  ;;  %v4734_v13 = vld [vmem:[%s8966_s20 + $0x358] sm:$0xf0] }
  0x56   :  { %961 = vmatpush.bf16.msra.mxu0 %v4605_v42  ;;  %v6248_v42 = vld [vmem:[%s8966_s20 + $0x384] sm:$0xf0]  ;;  %v4629_v46 = vor.u32 %v6216_v37, %v4628_v36  ;;  %v6257_v14 = vld [vmem:[%s8966_s20 + $0x3d4] sm:$0xf]  ;;  %v6207_v19 = vld [vmem:[%s8966_s20 + $0x244] sm:$0xf] }
  0x57   :  { %974 = vmatpush.bf16.msra.mxu1 %v4669_v43  ;;  %v6213_v43 = vld [vmem:[%s8966_s20 + $0x274] sm:$0xf]  ;;  %v4598_v20 = vld [vmem:[%s8966_s20 + $0x248] sm:$0xf0]  ;;  %v6239_v24 = vld [vmem:[%s8966_s20 + $0x344] sm:$0xf] }
  0x58   :  { %987 = vmatpush.bf16.msra.mxu2 %v4733_v30  ;;  %v4622_v30 = vld [vmem:[%s8966_s20 + $0x278] sm:$0xf0]  ;;  %v4662_v23 = vld [vmem:[%s8966_s20 + $0x2c8] sm:$0xf0]  ;;  %v6255_v26 = vld [vmem:[%s8966_s20 + $0x3c4] sm:$0xf]  ;;  %v4601_v28 = vor.u32 %v6207_v19, %v4598_v20 }
  0x59   :  { %1000 = vmatpush.bf16.msra.mxu3 %v4797_v34  ;;  %v6245_v34 = vld [vmem:[%s8966_s20 + $0x374] sm:$0xf]  ;;  %v4625_v51 = vor.u32 %v6213_v43, %v4622_v30  ;;  %v4726_v25 = vld [vmem:[%s8966_s20 + $0x348] sm:$0xf0]  ;;  %v4590_v36 = vld [vmem:[%s8966_s20 + $0x238] sm:$0xf0] }
  0x5a   :  { %962 = vmatpush.bf16.msra.mxu0 %v4597_v50  ;;  %v4757_v50 = vor.u32 %v6248_v42, %v4756_v41  ;;  %v6221_v37 = vld [vmem:[%s8966_s20 + $0x2b4] sm:$0xf]  ;;  %v4718_v41 = vld [vmem:[%s8966_s20 + $0x338] sm:$0xf0] }
  0x5b   :  { %975 = vmatpush.bf16.msra.mxu1 %v4661_v52  ;;  %v4689_v52 = vor.u32 %v6229_v44, %v4686_v31  ;;  %v6237_v40 = vld [vmem:[%s8966_s20 + $0x334] sm:$0xf]  ;;  %v4782_v43 = vld [vmem:[%s8966_s20 + $0x3b8] sm:$0xf0]  ;;  %v6203_v31 = vld [vmem:[%s8966_s20 + $0x224] sm:$0xf] }
  0x5c   :  { %988 = vmatpush.bf16.msra.mxu2 %v4725_v53  ;;  %v4753_v53 = vor.u32 %v6245_v34, %v4750_v35  ;;  %v6253_v42 = vld [vmem:[%s8966_s20 + $0x3b4] sm:$0xf]  ;;  %v4582_v34 = vld [vmem:[%s8966_s20 + $0x228] sm:$0xf0]  ;;  %v6219_v35 = vld [vmem:[%s8966_s20 + $0x2a4] sm:$0xf] }
  0x5d   :  { %1001 = vmatpush.bf16.msra.mxu3 %v4789_v57  ;;  %v4817_v57 = vor.u32 %v6261_v48, %v4814_v49  ;;  %v6235_v48 = vld [vmem:[%s8966_s20 + $0x324] sm:$0xf]  ;;  %v4710_v49 = vld [vmem:[%s8966_s20 + $0x328] sm:$0xf0]  ;;  %v6201_v55 = vld [vmem:[%s8966_s20 + $0x214] sm:$0xf] }
  0x5e   :  { %963 = vmatpush.bf16.msra.mxu0 %v4589_v0  ;;  %v4681_v0 = vor.u32 %v6227_v56, %v4678_v58  ;;  %v4713_v54 = vor.u32 %v6235_v48, %v4710_v49  ;;  %v4574_v56 = vld [vmem:[%s8966_s20 + $0x218] sm:$0xf0]  ;;  %v6233_v60 = vld [vmem:[%s8966_s20 + $0x314] sm:$0xf] }
  0x5f   :  { %976 = vmatpush.bf16.msra.mxu1 %v4653_v6  ;;  %v4809_v6 = vor.u32 %v6259_v61, %v4806_v62  ;;  %v4638_v59 = vld [vmem:[%s8966_s20 + $0x298] sm:$0xf0]  ;;  %v6249_v62 = vld [vmem:[%s8966_s20 + $0x394] sm:$0xf] }
  0x60   :  { %989 = vmatpush.bf16.msra.mxu2 %v4717_v7  ;;  %v4670_v7 = vld [vmem:[%s8966_s20 + $0x2d8] sm:$0xf0] }
  0x61   :  { %1002 = vmatpush.bf16.msra.mxu3 %v4781_v10  ;;  %v6241_v10 = vld [vmem:[%s8966_s20 + $0x354] sm:$0xf]  ;;  %v4702_v61 = vld [vmem:[%s8966_s20 + $0x318] sm:$0xf0] }
  0x62   :  { %964 = vmatpush.bf16.msra.mxu0 %v4581_v15  ;;  %v4798_v15 = vld [vmem:[%s8966_s20 + $0x3d8] sm:$0xf0]  ;;  %v4737_v18 = vor.u32 %v6241_v10, %v4734_v13  ;;  %v4630_v10 = vld [vmem:[%s8966_s20 + $0x288] sm:$0xf0]  ;;  %v6231_v13 = vld [vmem:[%s8966_s20 + $0x304] sm:$0xf] }
  0x63   :  { %977 = vmatpush.bf16.msra.mxu1 %v4645_v16  ;;  %v4609_v16 = vor.u32 %v6209_v3, %v4606_v4  ;;  %v4801_v22 = vor.u32 %v6257_v14, %v4798_v15  ;;  %v4705_v3 = vor.u32 %v6233_v60, %v4702_v61  ;;  %v6199_v4 = vld [vmem:[%s8966_s20 + $0x204] sm:$0xf]  ;;  %v4694_v14 = vld [vmem:[%s8966_s20 + $0x308] sm:$0xf0]  ;;  %v6324_v60 = vld [vmem:[%s8966_s20 + $0x5e4] sm:$0xf0] }
  0x64   :  { %990 = vmatpush.bf16.msra.mxu2 %v4709_v17  ;;  %v4673_v17 = vor.u32 %v6225_v5, %v4670_v7  ;;  %v4566_v5 = vld [vmem:[%s8966_s20 + $0x208] sm:$0xf0]  ;;  %v6247_v15 = vld [vmem:[%s8966_s20 + $0x384] sm:$0xf]  ;;  %v4697_v19 = vor.u32 %v6231_v13, %v4694_v14  ;;  %v5121_v13 = vld [vmem:[%s8966_s20 + $0x5d0] sm:$0xf] }
  0x65   :  { %1003 = vmatpush.bf16.msra.mxu3 %v4773_v21  ;;  %v6223_v21 = vld [vmem:[%s8966_s20 + $0x2c4] sm:$0xf]  ;;  %v6322_v14 = vld [vmem:[%s8966_s20 + $0x5d4] sm:$0xf0] }
  0x66   :  { %965 = vmatpush.bf16.msra.mxu0 %v4573_v27  ;;  %v4790_v27 = vld [vmem:[%s8966_s20 + $0x3c8] sm:$0xf0]  ;;  %v4665_v29 = vor.u32 %v6223_v21, %v4662_v23 }
  0x67   :  { %978 = vmatpush.bf16.msra.mxu1 %v4637_v32  ;;  %v4729_v32 = vor.u32 %v6239_v24, %v4726_v25  ;;  %v4793_v38 = vor.u32 %v6255_v26, %v4790_v27  ;;  %v6512_v27 = vmov 65535  }
  0x68   :  { %991 = vmatpush.bf16.msra.mxu2 %v4701_v33  ;;  %v6205_v33 = vld [vmem:[%s8966_s20 + $0x234] sm:$0xf] }
  0x69   :  { %1004 = vmatpush.bf16.msra.mxu3 %v4765_v39  ;;  %v4654_v39 = vld [vmem:[%s8966_s20 + $0x2b8] sm:$0xf0]  ;;  %v4593_v30 = vor.u32 %v6205_v33, %v4590_v36 }
  0x6a   :  { %966 = vmatpush.bf16.msra.mxu0 %v4565_v45  ;;  %v4657_v44 = vor.u32 %v6221_v37, %v4654_v39  ;;  %v4721_v45 = vor.u32 %v6237_v40, %v4718_v41 }
  0x6b   :  { %979 = vmatpush.bf16.msra.mxu1 %v4629_v46  ;;  %v4785_v46 = vor.u32 %v6253_v42, %v4782_v43 }
  0x6c   :  { %992 = vmatpush.bf16.msra.mxu2 %v4693_v47  ;;  %v4646_v47 = vld [vmem:[%s8966_s20 + $0x2a8] sm:$0xf0] }
  0x6d   :  { %1005 = vmatpush.bf16.msra.mxu3 %v4757_v50  ;;  %967 = vmatmul.bf16.vlgmr.msra.gmra.mxu0 %v7163_v11  ;;  %v6251_v50 = vld [vmem:[%s8966_s20 + $0x3a4] sm:$0xf] }
  0x6e   :  { %1011 = vmatpush.bf16.msrb.mxu0 %v4625_v51  ;;  %980 = vmatmul.bf16.vlgmr.msra.gmra.mxu1 %v7165_v12  ;;  %v4774_v51 = vld [vmem:[%s8966_s20 + $0x3a8] sm:$0xf0] }
  0x6f   :  { %1024 = vmatpush.bf16.msrb.mxu1 %v4689_v52  ;;  %993 = vmatmul.bf16.vlgmr.msra.gmra.mxu2 %v7159_v8  ;;  %v4585_v52 = vor.u32 %v6203_v31, %v4582_v34  ;;  %v4777_v58 = vor.u32 %v6251_v50, %v4774_v51  ;;  %v5137_v51 = vld [vmem:[%s8966_s20 + $0x5f0] sm:$0xf] }
  0x70   :  { %1037 = vmatpush.bf16.msrb.mxu2 %v4753_v53  ;;  %1006 = vmatmul.bf16.vlgmr.msra.gmra.mxu3 %v7161_v9  ;;  %v4649_v53 = vor.u32 %v6219_v35, %v4646_v47  ;;  %v6310_v47 = vld [vmem:[%s8966_s20 + $0x574] sm:$0xf0] }
  0x71   :  { %1050 = vmatpush.bf16.msrb.mxu3 %v4817_v57  ;;  %v6217_v57 = vld [vmem:[%s8966_s20 + $0x294] sm:$0xf] }
  0x72   :  { %1012 = vmatpush.bf16.msrb.mxu0 %v4617_v63  ;;  %v4766_v63 = vld [vmem:[%s8966_s20 + $0x398] sm:$0xf0] }
  0x73   :  { %1025 = vmatpush.bf16.msrb.mxu1 %v4681_v0  ;;  %v4577_v0 = vor.u32 %v6201_v55, %v4574_v56  ;;  %v4769_v7 = vor.u32 %v6249_v62, %v4766_v63  ;;  %v5065_v55 = vld [vmem:[%s8966_s20 + $0x560] sm:$0xf]  ;;  %v6308_v56 = vld [vmem:[%s8966_s20 + $0x564] sm:$0xf0] }
  0x74   :  { %1038 = vmatpush.bf16.msrb.mxu2 %v4745_v1  ;;  %v4641_v1 = vor.u32 %v6217_v57, %v4638_v59  ;;  %v5129_v59 = vld [vmem:[%s8966_s20 + $0x5e0] sm:$0xf] }
  0x75   :  { %1051 = vmatpush.bf16.msrb.mxu3 %v4809_v6  ;;  %v6215_v6 = vld [vmem:[%s8966_s20 + $0x284] sm:$0xf]  ;;  %v5130_v63 = vor.u32 %v6324_v60, %v5129_v59  ;;  %v6268_v60 = vld [vmem:[%s8966_s20 + $0x424] sm:$0xf0] }
  0x76   :  { %1013 = vmatpush.bf16.msrb.mxu0 %v4609_v16  ;;  %v4758_v16 = vld [vmem:[%s8966_s20 + $0x388] sm:$0xf0] }
  0x77   :  { %1026 = vmatpush.bf16.msrb.mxu1 %v4673_v17  ;;  %v4569_v17 = vor.u32 %v6199_v4, %v4566_v5  ;;  %v4761_v20 = vor.u32 %v6247_v15, %v4758_v16  ;;  %v4945_v4 = vld [vmem:[%s8966_s20 + $0x470] sm:$0xf]  ;;  %v6278_v5 = vld [vmem:[%s8966_s20 + $0x474] sm:$0xf0]  ;;  %v5122_v16 = vor.u32 %v6322_v14, %v5121_v13 }
  0x78   :  { %1039 = vmatpush.bf16.msrb.mxu2 %v4737_v18  ;;  %v4633_v18 = vor.u32 %v6215_v6, %v4630_v10  ;;  %v6306_v6 = vld [vmem:[%s8966_s20 + $0x554] sm:$0xf0] }
  0x79   :  { %1052 = vmatpush.bf16.msrb.mxu3 %v4801_v22 }
  0x7a   :  { %1014 = vmatpush.bf16.msrb.mxu0 %v4601_v28  ;;  %v1073_v28 = vsel %vm1071_vm0, 4294967295, %v6512_v27 }
  0x7b   :  { %1027 = vmatpush.bf16.msrb.mxu1 %v4665_v29  ;;  %v7422_v33 = vsel %vm1072_vm1, %v1073_v28, 0 }
  0x7c   :  { %1040 = vmatpush.bf16.msrb.mxu2 %v4729_v32 }
  0x7d   :  { %1053 = vmatpush.bf16.msrb.mxu3 %v4793_v38 }
  0x7e   :  { %1015 = vmatpush.bf16.msrb.mxu0 %v4593_v30 }
  0x7f   :  { %1028 = vmatpush.bf16.msrb.mxu1 %v4657_v44 }
  0x80   :  { %1041 = vmatpush.bf16.msrb.mxu2 %v4721_v45 }
  0x81   :  { %1054 = vmatpush.bf16.msrb.mxu3 %v4785_v46  ;;  %v5073_v46 = vld [vmem:[%s8966_s20 + $0x570] sm:$0xf] }
  0x82   :  { %1016 = vmatpush.bf16.msrb.mxu0 %v4585_v52  ;;  %v5074_v48 = vor.u32 %v6310_v47, %v5073_v46  ;;  %v6326_v52 = vld [vmem:[%s8966_s20 + $0x5f4] sm:$0xf0]  ;;  %v5025_v46 = vld [vmem:[%s8966_s20 + $0x510] sm:$0xf] }
  0x83   :  { %1029 = vmatpush.bf16.msrb.mxu1 %v4649_v53  ;;  %v4913_v47 = vld [vmem:[%s8966_s20 + $0x430] sm:$0xf] }
  0x84   :  { %1042 = vmatpush.bf16.msrb.mxu2 %v4713_v54  ;;  %v5138_v54 = vor.u32 %v6326_v52, %v5137_v51  ;;  %v5089_v51 = vld [vmem:[%s8966_s20 + $0x590] sm:$0xf]  ;;  %v6314_v52 = vld [vmem:[%s8966_s20 + $0x594] sm:$0xf0] }
  0x85   :  { %1055 = vmatpush.bf16.msrb.mxu3 %v4777_v58  ;;  %v5066_v58 = vor.u32 %v6308_v56, %v5065_v55  ;;  %v4905_v56 = vld [vmem:[%s8966_s20 + $0x420] sm:$0xf] }
  0x86   :  { %1017 = vmatpush.bf16.msrb.mxu0 %v4577_v0  ;;  %v5057_v0 = vld [vmem:[%s8966_s20 + $0x550] sm:$0xf] }
  0x87   :  { %1030 = vmatpush.bf16.msrb.mxu1 %v4641_v1  ;;  %v5058_v10 = vor.u32 %v6306_v6, %v5057_v0 }
  0x88   :  { %1043 = vmatpush.bf16.msrb.mxu2 %v4705_v3 }
  0x89   :  { %1056 = vmatpush.bf16.msrb.mxu3 %v4769_v7 }
  0x8a   :  { %1018 = vmatpush.bf16.msrb.mxu0 %v4569_v17  ;;  %v4946_v17 = vor.u32 %v6278_v5, %v4945_v4  ;;  %v6312_v4 = vld [vmem:[%s8966_s20 + $0x584] sm:$0xf0]  ;;  %v6325_v5 = vld [vmem:[%s8966_s20 + $0x5f4] sm:$0xf] }
  0x8b   :  { %1031 = vmatpush.bf16.msrb.mxu1 %v4633_v18  ;;  %v4937_v18 = vld [vmem:[%s8966_s20 + $0x460] sm:$0xf] }
  0x8c   :  { %1044 = vmatpush.bf16.msrb.mxu2 %v4697_v19 }
  0x8d   :  { %1057 = vmatpush.bf16.msrb.mxu3 %v4761_v20  ;;  %1019 = vmatmul.bf16.vlgmr.msrb.gmra.mxu0 %v7163_v11  ;;  %v6276_v20 = vld [vmem:[%s8966_s20 + $0x464] sm:$0xf0] }
  0x8e   :  { %1032 = vmatmul.bf16.vlgmr.msrb.gmra.mxu1 %v7165_v12 }
  0x8f   :  { %1045 = vmatmul.bf16.vlgmr.msrb.gmra.mxu2 %v7159_v8 }
  0x90   :  { %1058 = vmatmul.bf16.vlgmr.msrb.gmra.mxu3 %v7161_v9 }
  0xb0   :  { %v467_v21 = vpop.f32.mrf.mxu0 }
  0xb1   :  { %v480_v22 = vpop.f32.mrf.mxu1 }
  0xb2   :  { %v481_v23 = vadd.f32 %v480_v22, %v467_v21  ;;  %v5049_v21 = vld [vmem:[%s8966_s20 + $0x540] sm:$0xf]  ;;  %v6304_v22 = vld [vmem:[%s8966_s20 + $0x544] sm:$0xf0] }
  0xb4   :  { %v493_v24 = vpop.f32.mrf.mxu2 }
  0xb5   :  { %v494_v25 = vadd.f32 %v493_v24, %v481_v23  ;;  %v506_v26 = vpop.f32.mrf.mxu3  ;;  %v5050_v24 = vor.u32 %v6304_v22, %v5049_v21 }
  0xb7   :  { %v507_v29 = vadd.f32 %v506_v26, %v494_v25  ;;  %v5113_v25 = vld [vmem:[%s8966_s20 + $0x5c0] sm:$0xf]  ;;  %v6320_v26 = vld [vmem:[%s8966_s20 + $0x5c4] sm:$0xf0] }
  0xb8   :  { %v469_v32 = vpop.f32.mrf.mxu0  ;;  %v5114_v28 = vor.u32 %v6320_v26, %v5113_v25  ;;  %v4889_v25 = vld [vmem:[%s8966_s20 + $0x400] sm:$0xf]  ;;  %v6264_v26 = vld [vmem:[%s8966_s20 + $0x404] sm:$0xf0] }
  0xb9   :  { %v482_v11 = vpop.f32.mrf.mxu1  ;;  %v563_v12 = vpack.c.bf16 %v507_v29, %v507_v29  ;;  %v4938_v29 = vor.u32 %v6276_v20, %v4937_v18  ;;  %v5041_v32 = vld [vmem:[%s8966_s20 + $0x530] sm:$0xf]  ;;  %v5067_v18 = vld [vmem:[%s8966_s20 + $0x568] sm:$0xf0] }
  0xba   :  { %v6302_v11 = vld [vmem:[%s8966_s20 + $0x534] sm:$0xf0]  ;;  %v5131_v20 = vld [vmem:[%s8966_s20 + $0x5e8] sm:$0xf0] }
  0xbb   :  { %v1111_v8 = vand.u32 %v7422_v33, %v563_v12  ;;  %v4929_v12 = vld [vmem:[%s8966_s20 + $0x450] sm:$0xf] }
  0xbc   :  { %v495_v36 = vpop.f32.mrf.mxu2 }
  0xbd   :  { %v508_v9 = vpop.f32.mrf.mxu3  ;;  %1123 = vmatpush.bf16.msra.mxu2 %v1111_v8  ;;  %v6274_v8 = vld [vmem:[%s8966_s20 + $0x454] sm:$0xf0]  ;;  %v5042_v36 = vor.u32 %v6302_v11, %v5041_v32  ;;  %v5009_v32 = vld [vmem:[%s8966_s20 + $0x4f0] sm:$0xf]  ;;  %v6277_v11 = vld [vmem:[%s8966_s20 + $0x474] sm:$0xf] }
  0xbe   :  { %v5105_v9 = vld [vmem:[%s8966_s20 + $0x5b0] sm:$0xf] }
  0xc1   :  { %1562 = vmatpush.bf16.msrb.mxu2 %v5074_v48  ;;  %v6270_v48 = vld [vmem:[%s8966_s20 + $0x434] sm:$0xf0] }
  0xc2   :  { %v4914_v55 = vor.u32 %v6270_v48, %v4913_v47  ;;  %v4939_v47 = vld [vmem:[%s8966_s20 + $0x468] sm:$0xf0]  ;;  %v7646_v48 = vld.sshfl [vmem:[#allocation1 + $0x18] sm:$0xff pattern:$0x73625140] }
  0xc5   :  { %1563 = vmatpush.bf16.msrb.mxu2 %v5066_v58  ;;  %v6296_v58 = vld [vmem:[%s8966_s20 + $0x504] sm:$0xf0] }
  0xc9   :  { %1564 = vmatpush.bf16.msrb.mxu2 %v5058_v10  ;;  %v4906_v10 = vor.u32 %v6268_v60, %v4905_v56  ;;  %v7659_v56 = vld.sshfl [vmem:[#allocation1] sm:$0xff pattern:$0x73625140] }
  0xca   :  { %v519_v37 = vpop.f32.mrf.mxu0 }
  0xcb   :  { %v532_v38 = vpop.f32.mrf.mxu1 }
  0xcc   :  { %v533_v39 = vadd.f32 %v532_v38, %v519_v37  ;;  %v6318_v37 = vld [vmem:[%s8966_s20 + $0x5b4] sm:$0xf0] }
  0xcd   :  { %1565 = vmatpush.bf16.msrb.mxu2 %v5050_v24  ;;  %v5106_v38 = vor.u32 %v6318_v37, %v5105_v9  ;;  %v5059_v9 = vld [vmem:[%s8966_s20 + $0x558] sm:$0xf0]  ;;  %v7622_v37 = vld.sshfl [vmem:[#allocation1 + $0x10] sm:$0xff pattern:$0x73625140] }
  0xd1   :  { %1566 = vmatpush.bf16.msrb.mxu2 %v5042_v36 }
  0xd2   :  { %v545_v40 = vpop.f32.mrf.mxu2  ;;  %v521_v30 = vpop.f32.mrf.mxu0 }
  0xd3   :  { %v546_v41 = vadd.f32 %v545_v40, %v533_v39  ;;  %v558_v42 = vpop.f32.mrf.mxu3  ;;  %v534_v44 = vpop.f32.mrf.mxu1  ;;  %v4930_v39 = vor.u32 %v6274_v8, %v4929_v12  ;;  %v5033_v40 = vld [vmem:[%s8966_s20 + $0x520] sm:$0xf]  ;;  %v4947_v12 = vld [vmem:[%s8966_s20 + $0x478] sm:$0xf0]  ;;  %v6305_v8 = vld [vmem:[%s8966_s20 + $0x554] sm:$0xf] }
  0xd4   :  { %v5097_v44 = vld [vmem:[%s8966_s20 + $0x5a0] sm:$0xf] }
  0xd5   :  { %v559_v43 = vadd.f32 %v558_v42, %v546_v41  ;;  %v6300_v41 = vld [vmem:[%s8966_s20 + $0x524] sm:$0xf0]  ;;  %v4921_v42 = vld [vmem:[%s8966_s20 + $0x440] sm:$0xf] }
  0xd6   :  { %v5034_v30 = vor.u32 %v6300_v41, %v5033_v40  ;;  %v5062_v40 = vor.u32 %v6305_v8, %v5059_v9  ;;  %v6321_v41 = vld [vmem:[%s8966_s20 + $0x5d4] sm:$0xf] }
  0xd7   :  { %v564_v45 = vpack.c.bf16 %v559_v43, %v559_v43  ;;  %v6272_v43 = vld [vmem:[%s8966_s20 + $0x444] sm:$0xf0]  ;;  %v6313_v8 = vld [vmem:[%s8966_s20 + $0x594] sm:$0xf] }
  0xd8   :  { %1567 = vmatpush.bf16.msrb.mxu2 %v5034_v30 }
  0xd9   :  { %v1114_v31 = vand.u32 %v7422_v33, %v564_v45  ;;  %v6316_v45 = vld [vmem:[%s8966_s20 + $0x5a4] sm:$0xf0] }
  0xda   :  { %v547_v34 = vpop.f32.mrf.mxu2 }
  0xdb   :  { %v560_v35 = vpop.f32.mrf.mxu3  ;;  %1136 = vmatpush.bf16.msra.mxu3 %v1114_v31  ;;  %v562_v31 = vld [vmem:[%s8968_s24] sm:$0xf]  ;;  %v5098_v34 = vor.u32 %v6316_v45, %v5097_v44 }
  0xdc   :  { %v4922_v35 = vor.u32 %v6272_v43, %v4921_v42  ;;  %4821 = vmatmul.msk.bf16.vlgmr.msra.gmra.mxu2 %vm1067_vm2, %v562_v31  ;;  %v5123_v42 = vld [vmem:[%s8966_s20 + $0x5d8] sm:$0xf0]  ;;  %v4890_v43 = vor.u32 %v6264_v26, %v4889_v25  ;;  %v5001_v45 = vld [vmem:[%s8966_s20 + $0x4e0] sm:$0xf]  ;;  %v6297_v25 = vld [vmem:[%s8966_s20 + $0x514] sm:$0xf] }
  0xdd   :  { %v5126_v30 = vor.u32 %v6321_v41, %v5123_v42  ;;  %v5027_v26 = vld [vmem:[%s8966_s20 + $0x518] sm:$0xf0]  ;;  %v4969_v42 = vld [vmem:[%s8966_s20 + $0x4a0] sm:$0xf] }
  0xde   :  { %4822 = vmatmul.msk.bf16.vlgmr.msra.gmra.mxu3 %vm1067_vm2, %v562_v31  ;;  %v6292_v31 = vld [vmem:[%s8966_s20 + $0x4e4] sm:$0xf0] }
  0xdf   :  { %1575 = vmatpush.bf16.msrb.mxu3 %v5138_v54  ;;  %v5090_v54 = vor.u32 %v6314_v52, %v5089_v51  ;;  %v5051_v51 = vld [vmem:[%s8966_s20 + $0x548] sm:$0xf0]  ;;  %v6319_v52 = vld [vmem:[%s8966_s20 + $0x5c4] sm:$0xf] }
  0xe3   :  { %1576 = vmatpush.bf16.msrb.mxu3 %v5130_v63  ;;  %v5075_v63 = vld [vmem:[%s8966_s20 + $0x578] sm:$0xf0] }
  0xe7   :  { %1577 = vmatpush.bf16.msrb.mxu3 %v5122_v16  ;;  %v6266_v16 = vld [vmem:[%s8966_s20 + $0x414] sm:$0xf0] }
  0xea   :  { %v968_v49 = vpop.f32.mrf.mxu0 }
  0xeb   :  { %v981_v50 = vpop.f32.mrf.mxu1  ;;  %1578 = vmatpush.bf16.msrb.mxu3 %v5114_v28 }
  0xec   :  { %v982_v53 = vadd.f32 %v981_v50, %v968_v49  ;;  %v6298_v49 = vld [vmem:[%s8966_s20 + $0x514] sm:$0xf0] }
  0xed   :  { %v5026_v50 = vor.u32 %v6298_v49, %v5025_v46 }
  0xef   :  { %1579 = vmatpush.bf16.msrb.mxu3 %v5106_v38  ;;  %1568 = vmatpush.bf16.msrb.mxu2 %v5026_v50  ;;  %v6303_v50 = vld [vmem:[%s8966_s20 + $0x544] sm:$0xf] }
  0xf2   :  { %v994_v57 = vpop.f32.mrf.mxu2  ;;  %v970_v3 = vpop.f32.mrf.mxu0 }
  0xf3   :  { %v995_v61 = vadd.f32 %v994_v57, %v982_v53  ;;  %v1007_v62 = vpop.f32.mrf.mxu3  ;;  %v983_v7 = vpop.f32.mrf.mxu1  ;;  %1580 = vmatpush.bf16.msrb.mxu3 %v5098_v34  ;;  %v7549_v53 = vld [vmem:[%s8968_s24 + $0x4] sm:$0xf]  ;;  %v5017_v57 = vld [vmem:[%s8966_s20 + $0x500] sm:$0xf]  ;;  %v4950_v34 = vor.u32 %v6277_v11, %v4947_v12  ;;  %v5030_v11 = vor.u32 %v6297_v25, %v5027_v26  ;;  %v6286_v12 = vld [vmem:[%s8966_s20 + $0x4b4] sm:$0xf0] }
  0xf4   :  { %v5081_v3 = vld [vmem:[%s8966_s20 + $0x580] sm:$0xf]  ;;  %v5139_v7 = vld [vmem:[%s8966_s20 + $0x5f8] sm:$0xf0] }
  0xf5   :  { %v1008_v1 = vadd.f32 %v1007_v62, %v995_v61  ;;  %v5018_v61 = vor.u32 %v6296_v58, %v5017_v57  ;;  %v6309_v62 = vld [vmem:[%s8966_s20 + $0x574] sm:$0xf]  ;;  %v5082_v6 = vor.u32 %v6312_v4, %v5081_v3  ;;  %v5142_v13 = vor.u32 %v6325_v5, %v5139_v7  ;;  %v7661_v57 = vld.sshfl [vmem:[#allocation1 + $0x8] sm:$0xff pattern:$0x73625140] }
  0xf6   :  { %1746 = vst [vmem:[#allocation1] ss:$4 sm:$0xff] %v6884_v2  ;;  %v6301_v3 = vld [vmem:[%s8966_s20 + $0x534] sm:$0xf]  ;;  %v5043_v4 = vld [vmem:[%s8966_s20 + $0x538] sm:$0xf0] }
  0xf7   :  { %v1065_v15 = vpack.c.bf16 %v1008_v1, %v1008_v1  ;;  %1581 = vmatpush.bf16.msrb.mxu3 %v5090_v54  ;;  %v5078_v1 = vor.u32 %v6309_v62, %v5075_v63  ;;  %1569 = vmatpush.bf16.msrb.mxu2 %v5018_v61  ;;  %v5115_v61 = vld [vmem:[%s8966_s20 + $0x5c8] sm:$0xf0]  ;;  %v5002_v62 = vor.u32 %v6292_v31, %v5001_v45  ;;  %v6290_v63 = vld [vmem:[%s8966_s20 + $0x4d4] sm:$0xf0]  ;;  %v6317_v5 = vld [vmem:[%s8966_s20 + $0x5b4] sm:$0xf] }
  0xf8   :  { %v5118_v2 = vor.u32 %v6319_v52, %v5115_v61  ;;  %v5107_v7 = vld [vmem:[%s8966_s20 + $0x5b8] sm:$0xf0]  ;;  %v6284_v45 = vld [vmem:[%s8966_s20 + $0x4a4] sm:$0xf0]  ;;  %v6311_v31 = vld [vmem:[%s8966_s20 + $0x584] sm:$0xf] }
  0xf9   :  { %v1076_v19 = vand.u32 %v7422_v33, %v1065_v15  ;;  %v4897_v15 = vld [vmem:[%s8966_s20 + $0x410] sm:$0xf]  ;;  %v6282_v52 = vld [vmem:[%s8966_s20 + $0x494] sm:$0xf0]  ;;  %v6280_v61 = vld [vmem:[%s8966_s20 + $0x484] sm:$0xf0] }
  0xfa   :  { %v996_v23 = vpop.f32.mrf.mxu2  ;;  %v4898_v24 = vor.u32 %v6266_v16, %v4897_v15  ;;  %1570 = vmatmul.bf16.vlgmr.msrb.gmra.mxu2 %v7622_v37  ;;  %v6299_v15 = vld [vmem:[%s8966_s20 + $0x524] sm:$0xf] }
  0xfb   :  { %v1009_v27 = vpop.f32.mrf.mxu3  ;;  %1088 = vmatpush.bf16.msra.mxu0 %v1076_v19  ;;  %1614 = vmatpush.bf16.msra.mxu2 %v5078_v1  ;;  %v6323_v19 = vld [vmem:[%s8966_s20 + $0x5e4] sm:$0xf]  ;;  %v4931_v1 = vld [vmem:[%s8966_s20 + $0x458] sm:$0xf0] }
  0xfc   :  { %1582 = vmatpush.bf16.msrb.mxu3 %v5082_v6  ;;  %v5134_v22 = vor.u32 %v6323_v19, %v5131_v20  ;;  %v5046_v6 = vor.u32 %v6301_v3, %v5043_v4  ;;  %v6288_v19 = vld [vmem:[%s8966_s20 + $0x4c4] sm:$0xf0]  ;;  %v6289_v4 = vld [vmem:[%s8966_s20 + $0x4d4] sm:$0xf] }
  0xfe   :  { %4819 = vmatmul.msk.bf16.vlgmr.msra.gmra.mxu0 %vm1067_vm2, %v7549_v53 }
  0xff   :  { %1536 = vmatpush.bf16.msrb.mxu0 %v4946_v17  ;;  %v6307_v17 = vld [vmem:[%s8966_s20 + $0x564] sm:$0xf]  ;;  %1583 = vmatmul.bf16.vlgmr.msrb.gmra.mxu3 %v7646_v48 }
 0x100   :  { %1627 = vmatpush.bf16.msra.mxu3 %v5142_v13  ;;  %v5070_v21 = vor.u32 %v6307_v17, %v5067_v18  ;;  %v4923_v17 = vld [vmem:[%s8966_s20 + $0x448] sm:$0xf0] }
 0x101   :  { %v5035_v18 = vld [vmem:[%s8966_s20 + $0x528] sm:$0xf0] }
 0x102   :  { %1615 = vmatpush.bf16.msra.mxu2 %v5070_v21  ;;  %v5038_v20 = vor.u32 %v6299_v15, %v5035_v18  ;;  %v6315_v21 = vld [vmem:[%s8966_s20 + $0x5a4] sm:$0xf]  ;;  %v6281_v18 = vld [vmem:[%s8966_s20 + $0x494] sm:$0xf] }
 0x103   :  { %1537 = vmatpush.bf16.msrb.mxu0 %v4938_v29 }
 0x104   :  { %1628 = vmatpush.bf16.msra.mxu3 %v5134_v22  ;;  %v5099_v22 = vld [vmem:[%s8966_s20 + $0x5a8] sm:$0xf0] }
 0x106   :  { %1616 = vmatpush.bf16.msra.mxu2 %v5062_v40  ;;  %v5019_v40 = vld [vmem:[%s8966_s20 + $0x508] sm:$0xf0] }
 0x107   :  { %1538 = vmatpush.bf16.msrb.mxu0 %v4930_v39  ;;  %v6294_v39 = vld [vmem:[%s8966_s20 + $0x4f4] sm:$0xf0] }
 0x108   :  { %v5010_v46 = vor.u32 %v6294_v39, %v5009_v32  ;;  %1629 = vmatpush.bf16.msra.mxu3 %v5126_v30  ;;  %v4915_v32 = vld [vmem:[%s8966_s20 + $0x438] sm:$0xf0]  ;;  %v6295_v39 = vld [vmem:[%s8966_s20 + $0x504] sm:$0xf]  ;;  %v4907_v30 = vld [vmem:[%s8966_s20 + $0x428] sm:$0xf0] }
 0x10a   :  { %v1020_v59 = vpop.f32.mrf.mxu0 }
 0x10b   :  { %1539 = vmatpush.bf16.msrb.mxu0 %v4922_v35  ;;  %v1033_v0 = vpop.f32.mrf.mxu1  ;;  %v6275_v35 = vld [vmem:[%s8966_s20 + $0x464] sm:$0xf] }
 0x10c   :  { %v1034_v14 = vadd.f32 %v1033_v0, %v1020_v59  ;;  %v4993_v59 = vld [vmem:[%s8966_s20 + $0x4d0] sm:$0xf]  ;;  %v4942_v60 = vor.u32 %v6275_v35, %v4939_v47  ;;  %v6273_v0 = vld [vmem:[%s8966_s20 + $0x454] sm:$0xf]  ;;  %1630 = vmatpush.bf16.msra.mxu3 %v5118_v2  ;;  %v4970_v47 = vor.u32 %v6284_v45, %v4969_v42  ;;  %v6291_v2 = vld [vmem:[%s8966_s20 + $0x4e4] sm:$0xf] }
 0x10d   :  { %v4934_v13 = vor.u32 %v6273_v0, %v4931_v1  ;;  %v4994_v16 = vor.u32 %v6290_v63, %v4993_v59  ;;  %v4891_v59 = vld [vmem:[%s8966_s20 + $0x408] sm:$0xf0]  ;;  %v6342_v42 = vld [vmem:[%s8966_s20 + $0x674] sm:$0xf0]  ;;  %v5260_v45 = vld [vmem:[%s8966_s20 + $0x660] sm:$0xf] }
 0x10f   :  { %1540 = vmatpush.bf16.msrb.mxu0 %v4914_v55  ;;  %v5054_v55 = vor.u32 %v6303_v50, %v5051_v51  ;;  %v4899_v50 = vld [vmem:[%s8966_s20 + $0x418] sm:$0xf0]  ;;  %v4961_v51 = vld [vmem:[%s8966_s20 + $0x490] sm:$0xf] }
 0x111   :  { %1617 = vmatpush.bf16.msra.mxu2 %v5054_v55  ;;  %v4962_v55 = vor.u32 %v6282_v52, %v4961_v51  ;;  %v5252_v52 = vld [vmem:[%s8966_s20 + $0x650] sm:$0xf] }
 0x112   :  { %v1046_v23 = vpop.f32.mrf.mxu2  ;;  %v1022_v29 = vpop.f32.mrf.mxu0 }
 0x113   :  { %1541 = vmatpush.bf16.msrb.mxu0 %v4906_v10  ;;  %v1047_v27 = vadd.f32 %v1046_v23, %v1034_v14  ;;  %v1059_v28 = vpop.f32.mrf.mxu3  ;;  %v1035_v36 = vpop.f32.mrf.mxu1  ;;  %v4985_v10 = vld [vmem:[%s8966_s20 + $0x4c0] sm:$0xf]  ;;  %v5110_v14 = vor.u32 %v6317_v5, %v5107_v7  ;;  %v5102_v23 = vor.u32 %v6315_v21, %v5099_v22  ;;  %v6269_v29 = vld [vmem:[%s8966_s20 + $0x434] sm:$0xf]  ;;  %v4995_v5 = vld [vmem:[%s8966_s20 + $0x4d8] sm:$0xf0] }
 0x114   :  { %v5091_v36 = vld [vmem:[%s8966_s20 + $0x598] sm:$0xf0]  ;;  %v6287_v7 = vld [vmem:[%s8966_s20 + $0x4c4] sm:$0xf]  ;;  %v4955_v22 = vld [vmem:[%s8966_s20 + $0x488] sm:$0xf0] }
 0x115   :  { %v1060_v38 = vadd.f32 %v1059_v28, %v1047_v27  ;;  %1618 = vmatpush.bf16.msra.mxu2 %v5046_v6  ;;  %1631 = vmatpush.bf16.msra.mxu3 %v5110_v14  ;;  %v4986_v27 = vor.u32 %v6288_v19, %v4985_v10  ;;  %v4977_v28 = vld [vmem:[%s8966_s20 + $0x4b0] sm:$0xf]  ;;  %v5094_v9 = vor.u32 %v6313_v8, %v5091_v36  ;;  %v4987_v10 = vld [vmem:[%s8966_s20 + $0x4c8] sm:$0xf0]  ;;  %v6285_v14 = vld [vmem:[%s8966_s20 + $0x4b4] sm:$0xf] }
 0x116   :  { %v4978_v41 = vor.u32 %v6286_v12, %v4977_v28  ;;  %v4998_v6 = vor.u32 %v6289_v4, %v4995_v5  ;;  %v4963_v19 = vld [vmem:[%s8966_s20 + $0x498] sm:$0xf0]  ;;  %v6279_v21 = vld [vmem:[%s8966_s20 + $0x484] sm:$0xf] }
 0x117   :  { %1542 = vmatpush.bf16.msrb.mxu0 %v4898_v24  ;;  %v1066_v44 = vpack.c.bf16 %v1060_v38, %v1060_v38  ;;  %v4918_v38 = vor.u32 %v6269_v29, %v4915_v32 }
 0x119   :  { %v1079_v49 = vand.u32 %v7422_v33, %v1066_v44  ;;  %1619 = vmatpush.bf16.msra.mxu2 %v5038_v20  ;;  %1632 = vmatpush.bf16.msra.mxu3 %v5102_v23  ;;  %v5022_v44 = vor.u32 %v6295_v39, %v5019_v40  ;;  %v4966_v20 = vor.u32 %v6281_v18, %v4963_v19 }
 0x11a   :  { %v1048_v54 = vpop.f32.mrf.mxu2  ;;  %v4958_v23 = vor.u32 %v6279_v21, %v4955_v22  ;;  %v5388_v22 = vld [vmem:[%s8966_s20 + $0x760] sm:$0xf] }
 0x11b   :  { %1543 = vmatpush.bf16.msrb.mxu0 %v4890_v43  ;;  %v1061_v58 = vpop.f32.mrf.mxu3  ;;  %1101 = vmatpush.bf16.msra.mxu1 %v1079_v49  ;;  %v6267_v43 = vld [vmem:[%s8966_s20 + $0x424] sm:$0xf]  ;;  %v6265_v49 = vld [vmem:[%s8966_s20 + $0x414] sm:$0xf] }
 0x11c   :  { %v4902_v54 = vor.u32 %v6265_v49, %v4899_v50  ;;  %v6263_v58 = vld [vmem:[%s8966_s20 + $0x404] sm:$0xf] }
 0x11d   :  { %1620 = vmatpush.bf16.msra.mxu2 %v5030_v11  ;;  %1633 = vmatpush.bf16.msra.mxu3 %v5094_v9  ;;  %v4894_v63 = vor.u32 %v6263_v58, %v4891_v59  ;;  %v6354_v59 = vld [vmem:[%s8966_s20 + $0x6d4] sm:$0xf0] }
 0x11e   :  { %1544 = vmatmul.bf16.vlgmr.msrb.gmra.mxu0 %v7659_v56  ;;  %4820 = vmatmul.msk.bf16.vlgmr.msra.gmra.mxu1 %vm1067_vm2, %v7549_v53  ;;  %v6271_v53 = vld [vmem:[%s8966_s20 + $0x444] sm:$0xf] }
 0x11f   :  { %1588 = vmatpush.bf16.msra.mxu0 %v4950_v34  ;;  %1549 = vmatpush.bf16.msrb.mxu1 %v5010_v46  ;;  %v4926_v24 = vor.u32 %v6271_v53, %v4923_v17  ;;  %v5083_v34 = vld [vmem:[%s8966_s20 + $0x588] sm:$0xf0]  ;;  %v4910_v46 = vor.u32 %v6267_v43, %v4907_v30  ;;  %v5332_v43 = vld [vmem:[%s8966_s20 + $0x6f0] sm:$0xf] }
 0x120   :  { %v5086_v35 = vor.u32 %v6311_v31, %v5083_v34  ;;  %v4971_v53 = vld [vmem:[%s8966_s20 + $0x4a8] sm:$0xf0]  ;;  %v6340_v31 = vld [vmem:[%s8966_s20 + $0x664] sm:$0xf0] }
 0x121   :  { %1621 = vmatpush.bf16.msra.mxu2 %v5022_v44  ;;  %v6358_v44 = vld [vmem:[%s8966_s20 + $0x6f4] sm:$0xf0] }
 0x122   :  { %1634 = vmatpush.bf16.msra.mxu3 %v5086_v35  ;;  %v5333_v34 = vor.u32 %v6358_v44, %v5332_v43  ;;  %v5324_v35 = vld [vmem:[%s8966_s20 + $0x6e0] sm:$0xf] }
 0x123   :  { %1589 = vmatpush.bf16.msra.mxu0 %v4942_v60  ;;  %1550 = vmatpush.bf16.msrb.mxu1 %v5002_v62  ;;  %v4953_v60 = vld [vmem:[%s8966_s20 + $0x480] sm:$0xf]  ;;  %v5011_v62 = vld [vmem:[%s8966_s20 + $0x4f8] sm:$0xf0] }
 0x124   :  { %1622 = vmatmul.bf16.vlgmr.msra.gmra.mxu2 %v7622_v37  ;;  %v6293_v37 = vld [vmem:[%s8966_s20 + $0x4f4] sm:$0xf]  ;;  %v4954_v0 = vor.u32 %v6280_v61, %v4953_v60  ;;  %v5372_v44 = vld [vmem:[%s8966_s20 + $0x740] sm:$0xf] }
 0x125   :  { %1635 = vmatmul.bf16.vlgmr.msra.gmra.mxu3 %v7646_v48  ;;  %v5014_v1 = vor.u32 %v6293_v37, %v5011_v62  ;;  %v5003_v48 = vld [vmem:[%s8966_s20 + $0x4e8] sm:$0xf0] }
 0x126   :  { %v5006_v3 = vor.u32 %v6291_v2, %v5003_v48  ;;  %2088 = vmatpush.bf16.msrb.mxu3 %v5333_v34  ;;  %v6328_v34 = vld [vmem:[%s8966_s20 + $0x604] sm:$0xf0] }
 0x127   :  { %1590 = vmatpush.bf16.msra.mxu0 %v4934_v13  ;;  %1551 = vmatpush.bf16.msrb.mxu1 %v4994_v16  ;;  %v4990_v13 = vor.u32 %v6287_v7, %v4987_v10  ;;  %v6283_v16 = vld [vmem:[%s8966_s20 + $0x4a4] sm:$0xf]  ;;  %v6374_v7 = vld [vmem:[%s8966_s20 + $0x774] sm:$0xf0] }
 0x128   :  { %v4974_v17 = vor.u32 %v6283_v16, %v4971_v53  ;;  %v6350_v53 = vld [vmem:[%s8966_s20 + $0x6b4] sm:$0xf0] }
 0x12b   :  { %1591 = vmatpush.bf16.msra.mxu0 %v4926_v24  ;;  %1552 = vmatpush.bf16.msrb.mxu1 %v4986_v27 }
 0x12f   :  { %1592 = vmatpush.bf16.msra.mxu0 %v4918_v38  ;;  %1553 = vmatpush.bf16.msrb.mxu1 %v4978_v41 }
 0x133   :  { %1593 = vmatpush.bf16.msra.mxu0 %v4910_v46  ;;  %1554 = vmatpush.bf16.msrb.mxu1 %v4970_v47  ;;  %v6356_v46 = vld [vmem:[%s8966_s20 + $0x6e4] sm:$0xf0]  ;;  %v5261_v47 = vor.u32 %v6340_v31, %v5260_v45  ;;  %v5212_v31 = vld [vmem:[%s8966_s20 + $0x600] sm:$0xf] }
 0x134   :  { %v5325_v49 = vor.u32 %v6356_v46, %v5324_v35  ;;  %v6368_v45 = vld [vmem:[%s8966_s20 + $0x744] sm:$0xf0]  ;;  %v5276_v35 = vld [vmem:[%s8966_s20 + $0x680] sm:$0xf]  ;;  %v5213_v46 = vor.u32 %v6328_v34, %v5212_v31 }
 0x136   :  { %2089 = vmatpush.bf16.msrb.mxu3 %v5325_v49 }
 0x137   :  { %1594 = vmatpush.bf16.msra.mxu0 %v4902_v54  ;;  %1555 = vmatpush.bf16.msrb.mxu1 %v4962_v55  ;;  %v6338_v54 = vld [vmem:[%s8966_s20 + $0x654] sm:$0xf0]  ;;  %v5316_v55 = vld [vmem:[%s8966_s20 + $0x6d0] sm:$0xf] }
 0x138   :  { %v5253_v58 = vor.u32 %v6338_v54, %v5252_v52  ;;  %v5317_v61 = vor.u32 %v6354_v59, %v5316_v55  ;;  %v6341_v52 = vld [vmem:[%s8966_s20 + $0x674] sm:$0xf]  ;;  %v5270_v54 = vld [vmem:[%s8966_s20 + $0x678] sm:$0xf0] }
 0x139   :  { %v6357_v55 = vld [vmem:[%s8966_s20 + $0x6f4] sm:$0xf]  ;;  %v5273_v59 = vor.u32 %v6341_v52, %v5270_v54  ;;  %v6371_v52 = vld [vmem:[%s8966_s20 + $0x764] sm:$0xf]  ;;  %v5390_v54 = vld [vmem:[%s8966_s20 + $0x768] sm:$0xf0] }
 0x13a   :  { %2090 = vmatpush.bf16.msrb.mxu3 %v5317_v61  ;;  %v5334_v61 = vld [vmem:[%s8966_s20 + $0x6f8] sm:$0xf0] }
 0x13b   :  { %1595 = vmatpush.bf16.msra.mxu0 %v4894_v63  ;;  %1556 = vmatpush.bf16.msrb.mxu1 %v4954_v0  ;;  %v5244_v63 = vld [vmem:[%s8966_s20 + $0x640] sm:$0xf]  ;;  %v6336_v0 = vld [vmem:[%s8966_s20 + $0x644] sm:$0xf0] }
 0x13c   :  { %v5245_v48 = vor.u32 %v6336_v0, %v5244_v63  ;;  %v5337_v63 = vor.u32 %v6357_v55, %v5334_v61  ;;  %v6339_v0 = vld [vmem:[%s8966_s20 + $0x664] sm:$0xf]  ;;  %v5294_v61 = vld [vmem:[%s8966_s20 + $0x6a8] sm:$0xf0] }
 0x13d   :  { %v6331_v55 = vld [vmem:[%s8966_s20 + $0x624] sm:$0xf] }
 0x13e   :  { %1596 = vmatmul.bf16.vlgmr.msra.gmra.mxu0 %v7659_v56  ;;  %1557 = vmatmul.bf16.vlgmr.msrb.gmra.mxu1 %v7661_v57  ;;  %v4979_v56 = vld [vmem:[%s8966_s20 + $0x4b8] sm:$0xf0] }
 0x13f   :  { %1601 = vmatpush.bf16.msra.mxu1 %v5014_v1  ;;  %v4982_v15 = vor.u32 %v6285_v14, %v4979_v56  ;;  %v5308_v1 = vld [vmem:[%s8966_s20 + $0x6c0] sm:$0xf]  ;;  %v5236_v14 = vld [vmem:[%s8966_s20 + $0x630] sm:$0xf]  ;;  %v6334_v56 = vld [vmem:[%s8966_s20 + $0x634] sm:$0xf0] }
 0x140   :  { %v5237_v16 = vor.u32 %v6334_v56, %v5236_v14  ;;  %v6353_v14 = vld [vmem:[%s8966_s20 + $0x6d4] sm:$0xf]  ;;  %v5318_v56 = vld [vmem:[%s8966_s20 + $0x6d8] sm:$0xf0] }
 0x143   :  { %1602 = vmatpush.bf16.msra.mxu1 %v5006_v3  ;;  %v6352_v3 = vld [vmem:[%s8966_s20 + $0x6c4] sm:$0xf0] }
 0x144   :  { %v5309_v5 = vor.u32 %v6352_v3, %v5308_v1  ;;  %v5262_v1 = vld [vmem:[%s8966_s20 + $0x668] sm:$0xf0] }
 0x145   :  { %v5265_v3 = vor.u32 %v6339_v0, %v5262_v1 }
 0x146   :  { %2091 = vmatpush.bf16.msrb.mxu3 %v5309_v5 }
 0x147   :  { %1603 = vmatpush.bf16.msra.mxu1 %v4998_v6  ;;  %v5396_v6 = vld [vmem:[%s8966_s20 + $0x770] sm:$0xf] }
 0x148   :  { %v5397_v21 = vor.u32 %v6374_v7, %v5396_v6  ;;  %v5356_v6 = vld [vmem:[%s8966_s20 + $0x720] sm:$0xf]  ;;  %v6364_v7 = vld [vmem:[%s8966_s20 + $0x724] sm:$0xf0] }
 0x14b   :  { %1604 = vmatpush.bf16.msra.mxu1 %v4990_v13 }
 0x14f   :  { %1605 = vmatpush.bf16.msra.mxu1 %v4982_v15  ;;  %v5300_v15 = vld [vmem:[%s8966_s20 + $0x6b0] sm:$0xf] }
 0x150   :  { %v5301_v19 = vor.u32 %v6350_v53, %v5300_v15  ;;  %v5357_v53 = vor.u32 %v6364_v7, %v5356_v6  ;;  %v5222_v6 = vld [vmem:[%s8966_s20 + $0x618] sm:$0xf0]  ;;  %v6345_v7 = vld [vmem:[%s8966_s20 + $0x694] sm:$0xf] }
 0x152   :  { %2092 = vmatpush.bf16.msrb.mxu3 %v5301_v19 }
 0x153   :  { %1606 = vmatpush.bf16.msra.mxu1 %v4974_v17 }
 0x157   :  { %1607 = vmatpush.bf16.msra.mxu1 %v4966_v20 }
 0x15b   :  { %1608 = vmatpush.bf16.msra.mxu1 %v4958_v23  ;;  %v6372_v23 = vld [vmem:[%s8966_s20 + $0x764] sm:$0xf0] }
 0x15e   :  { %1609 = vmatmul.bf16.vlgmr.msra.gmra.mxu1 %v7661_v57  ;;  %v5268_v57 = vld [vmem:[%s8966_s20 + $0x670] sm:$0xf] }
 0x15f   :  { %v1125_v25 = vpop.f32.mrf.mxu2  ;;  %v5269_v30 = vor.u32 %v6342_v42, %v5268_v57  ;;  %v6346_v42 = vld [vmem:[%s8966_s20 + $0x694] sm:$0xf0] }
 0x161   :  { %v1138_v27 = vpop.f32.mrf.mxu3  ;;  %2075 = vmatpush.bf16.msrb.mxu2 %v5269_v30 }
 0x165   :  { %2076 = vmatpush.bf16.msrb.mxu2 %v5261_v47  ;;  %v6344_v47 = vld [vmem:[%s8966_s20 + $0x684] sm:$0xf0] }
 0x166   :  { %v5277_v49 = vor.u32 %v6344_v47, %v5276_v35  ;;  %v5452_v35 = vld [vmem:[%s8966_s20 + $0x7e0] sm:$0xf] }
 0x167   :  { %v1127_v29 = vpop.f32.mrf.mxu2 }
 0x169   :  { %v1140_v32 = vpop.f32.mrf.mxu3  ;;  %2077 = vmatpush.bf16.msrb.mxu2 %v5253_v58  ;;  %v5373_v58 = vor.u32 %v6368_v45, %v5372_v44 }
 0x16a   :  { %v6348_v32 = vld [vmem:[%s8966_s20 + $0x6a4] sm:$0xf0] }
 0x16d   :  { %2078 = vmatpush.bf16.msrb.mxu2 %v5245_v48  ;;  %v5326_v48 = vld [vmem:[%s8966_s20 + $0x6e8] sm:$0xf0] }
 0x171   :  { %2079 = vmatpush.bf16.msrb.mxu2 %v5237_v16  ;;  %v5321_v16 = vor.u32 %v6353_v14, %v5318_v56  ;;  %v5436_v14 = vld [vmem:[%s8966_s20 + $0x7c0] sm:$0xf] }
 0x17b   :  { %v1090_v24 = vpop.f32.mrf.mxu0 }
 0x17c   :  { %v7843_v26 = vadd.f32 %v1125_v25, %v1090_v24  ;;  %v5228_v25 = vld [vmem:[%s8966_s20 + $0x620] sm:$0xf] }
 0x17d   :  { %v1571_v8 = vpop.f32.mrf.mxu2 }
 0x182   :  { %v1584_v9 = vpop.f32.mrf.mxu3 }
 0x183   :  { %v1092_v28 = vpop.f32.mrf.mxu0 }
 0x184   :  { %v5292_v28 = vld [vmem:[%s8966_s20 + $0x6a0] sm:$0xf] }
 0x185   :  { %v1573_v40 = vpop.f32.mrf.mxu2 }
 0x186   :  { %v6330_v40 = vld [vmem:[%s8966_s20 + $0x614] sm:$0xf0] }
 0x18a   :  { %v1586_v41 = vpop.f32.mrf.mxu3 }
 0x18b   :  { %v5284_v41 = vld [vmem:[%s8966_s20 + $0x690] sm:$0xf] }
 0x18c   :  { %v5285_v43 = vor.u32 %v6346_v42, %v5284_v41  ;;  %v5398_v42 = vld [vmem:[%s8966_s20 + $0x778] sm:$0xf0] }
 0x19b   :  { %v1545_v11 = vpop.f32.mrf.mxu0  ;;  %v1103_v12 = vpop.f32.mrf.mxu1 }
 0x19c   :  { %v7845_v36 = vadd.f32 %v1138_v27, %v1103_v12  ;;  %v6332_v27 = vld [vmem:[%s8966_s20 + $0x624] sm:$0xf0]  ;;  %v5293_v12 = vor.u32 %v6348_v32, %v5292_v28  ;;  %v6390_v32 = vld [vmem:[%s8966_s20 + $0x7f4] sm:$0xf0] }
 0x19d   :  { %v5229_v29 = vor.u32 %v6332_v27, %v5228_v25  ;;  %v6351_v25 = vld [vmem:[%s8966_s20 + $0x6c4] sm:$0xf] }
 0x19e   :  { %2093 = vmatpush.bf16.msrb.mxu3 %v5293_v12 }
 0x19f   :  { %2080 = vmatpush.bf16.msrb.mxu2 %v5229_v29  ;;  %v5460_v29 = vld [vmem:[%s8966_s20 + $0x7f0] sm:$0xf] }
 0x1a0   :  { %v5461_v34 = vor.u32 %v6390_v32, %v5460_v29  ;;  %v6382_v29 = vld [vmem:[%s8966_s20 + $0x7b4] sm:$0xf0]  ;;  %v6365_v32 = vld [vmem:[%s8966_s20 + $0x734] sm:$0xf] }
 0x1a2   :  { %2094 = vmatpush.bf16.msrb.mxu3 %v5285_v43 }
 0x1a3   :  { %v1547_v38 = vpop.f32.mrf.mxu0  ;;  %v1105_v39 = vpop.f32.mrf.mxu1 }
 0x1a4   :  { %v6370_v38 = vld [vmem:[%s8966_s20 + $0x754] sm:$0xf0]  ;;  %v5220_v39 = vld [vmem:[%s8966_s20 + $0x610] sm:$0xf] }
 0x1a5   :  { %v5221_v57 = vor.u32 %v6330_v40, %v5220_v39  ;;  %v5238_v39 = vld [vmem:[%s8966_s20 + $0x638] sm:$0xf0]  ;;  %v6349_v40 = vld [vmem:[%s8966_s20 + $0x6b4] sm:$0xf] }
 0x1a6   :  { %2095 = vmatpush.bf16.msrb.mxu3 %v5277_v49 }
 0x1a7   :  { %v7871_v50 = vpop.f32.mrf.mxu2  ;;  %2081 = vmatpush.bf16.msrb.mxu2 %v5221_v57  ;;  %v6373_v57 = vld [vmem:[%s8966_s20 + $0x774] sm:$0xf] }
 0x1a8   :  { %v7873_v51 = vpop.f32.mrf.mxu3  ;;  %v5401_v47 = vor.u32 %v6373_v57, %v5398_v42  ;;  %v5412_v57 = vld [vmem:[%s8966_s20 + $0x790] sm:$0xf] }
 0x1aa   :  { %2140 = vmatpush.bf16.msra.mxu3 %v5337_v63 }
 0x1ab   :  { %2082 = vmatpush.bf16.msrb.mxu2 %v5213_v46  ;;  %v6388_v46 = vld [vmem:[%s8966_s20 + $0x7e4] sm:$0xf0] }
 0x1ac   :  { %v5453_v1 = vor.u32 %v6388_v46, %v5452_v35  ;;  %v6389_v35 = vld [vmem:[%s8966_s20 + $0x7f4] sm:$0xf]  ;;  %v5462_v46 = vld [vmem:[%s8966_s20 + $0x7f8] sm:$0xf0] }
 0x1af   :  { %v1625_v2 = vpop.f32.mrf.mxu2  ;;  %2127 = vmatpush.bf16.msra.mxu2 %v5273_v59  ;;  %v6347_v59 = vld [vmem:[%s8966_s20 + $0x6a4] sm:$0xf] }
 0x1b0   :  { %v1638_v10 = vpop.f32.mrf.mxu3  ;;  %v6355_v2 = vld [vmem:[%s8966_s20 + $0x6e4] sm:$0xf]  ;;  %v5297_v0 = vor.u32 %v6347_v59, %v5294_v61  ;;  %v6385_v61 = vld [vmem:[%s8966_s20 + $0x7d4] sm:$0xf] }
 0x1b1   :  { %v6337_v10 = vld [vmem:[%s8966_s20 + $0x654] sm:$0xf] }
 0x1b3   :  { %2128 = vmatpush.bf16.msra.mxu2 %v5265_v3  ;;  %v6369_v3 = vld [vmem:[%s8966_s20 + $0x754] sm:$0xf] }
 0x1bb   :  { %v7887_v60 = vpop.f32.mrf.mxu0  ;;  %v1558_v37 = vpop.f32.mrf.mxu1 }
 0x1bc   :  { %v1559_v62 = vadd.f32 %v1558_v37, %v1545_v11  ;;  %v7941_v11 = vld [vmem:[%s8968_s24 + $0x8] sm:$0xf]  ;;  %v5364_v37 = vld [vmem:[%s8966_s20 + $0x730] sm:$0xf] }
 0x1be   :  { %v1572_v4 = vadd.f32 %v1571_v8, %v1559_v62  ;;  %v5389_v8 = vor.u32 %v6372_v23, %v5388_v22  ;;  %v6366_v62 = vld [vmem:[%s8966_s20 + $0x734] sm:$0xf0]  ;;  %v6335_v23 = vld [vmem:[%s8966_s20 + $0x644] sm:$0xf] }
 0x1bf   :  { %v5365_v5 = vor.u32 %v6366_v62, %v5364_v37  ;;  %v5444_v37 = vld [vmem:[%s8966_s20 + $0x7d0] sm:$0xf] }
 0x1c0   :  { %v1585_v13 = vadd.f32 %v1584_v9, %v1572_v4  ;;  %v5380_v9 = vld [vmem:[%s8966_s20 + $0x750] sm:$0xf]  ;;  %v5329_v4 = vor.u32 %v6355_v2, %v5326_v48  ;;  %v6386_v2 = vld [vmem:[%s8966_s20 + $0x7d4] sm:$0xf0]  ;;  %v5393_v48 = vor.u32 %v6371_v52, %v5390_v54  ;;  %v5465_v52 = vor.u32 %v6389_v35, %v5462_v46  ;;  %v6387_v54 = vld [vmem:[%s8966_s20 + $0x7e4] sm:$0xf] }
 0x1c1   :  { %v5381_v30 = vor.u32 %v6370_v38, %v5380_v9  ;;  %v6360_v9 = vld [vmem:[%s8966_s20 + $0x704] sm:$0xf0]  ;;  %v8114_v62 = vld.sshfl [vmem:[#allocation1 + $0x10] sm:$0xff pattern:$0x73625140]  ;;  %v6395_v35 = vld [vmem:[%s8945_s4 + $0x20] sm:$0xff] }
 0x1c2   :  { %v1642_v17 = vpack.c.bf16 %v1585_v13, %v1585_v13  ;;  %v5254_v13 = vld [vmem:[%s8966_s20 + $0x658] sm:$0xf0]  ;;  %2141 = vmatpush.bf16.msra.mxu3 %v5329_v4  ;;  %v6406_v46 = vld [vmem:[%s8945_s4 + $0x74] sm:$0xff] }
 0x1c3   :  { %v1599_v18 = vpop.f32.mrf.mxu0  ;;  %v1560_v20 = vpop.f32.mrf.mxu1  ;;  %v5257_v15 = vor.u32 %v6337_v10, %v5254_v13  ;;  %v5382_v4 = vld [vmem:[%s8966_s20 + $0x758] sm:$0xf0] }
 0x1c4   :  { %v1648_v24 = vand.u32 %v1642_v17, %v7422_v33  ;;  %v5348_v17 = vld [vmem:[%s8966_s20 + $0x710] sm:$0xf]  ;;  %v6362_v18 = vld [vmem:[%s8966_s20 + $0x714] sm:$0xf0]  ;;  %v5286_v13 = vld [vmem:[%s8966_s20 + $0x698] sm:$0xf0] }
 0x1c5   :  { %v8035_v20 = vld.sshfl [vmem:[#allocation1] sm:$0xff pattern:$0x73625140]  ;;  %2129 = vmatpush.bf16.msra.mxu2 %v5257_v15  ;;  %v5349_v12 = vor.u32 %v6362_v18, %v5348_v17  ;;  %v5289_v56 = vor.u32 %v6345_v7, %v5286_v13  ;;  %v5445_v15 = vor.u32 %v6386_v2, %v5444_v37  ;;  %v5374_v17 = vld [vmem:[%s8966_s20 + $0x748] sm:$0xf0] }
 0x1c6   :  { %1660 = vmatpush.bf16.msrb.mxu0 %v1648_v24  ;;  %v5246_v24 = vld [vmem:[%s8966_s20 + $0x648] sm:$0xf0]  ;;  %2142 = vmatpush.bf16.msra.mxu3 %v5321_v16  ;;  %v6384_v16 = vld [vmem:[%s8966_s20 + $0x7c4] sm:$0xf0]  ;;  %v6327_v18 = vld [vmem:[%s8966_s20 + $0x604] sm:$0xf] }
 0x1c7   :  { %2083 = vmatmul.bf16.vlgmr.msrb.gmra.mxu2 %v8035_v20  ;;  %v5249_v27 = vor.u32 %v6335_v23, %v5246_v24  ;;  %v5278_v24 = vld [vmem:[%s8966_s20 + $0x688] sm:$0xf0]  ;;  %v5446_v37 = vld [vmem:[%s8966_s20 + $0x7d8] sm:$0xf0]  ;;  %v6377_v7 = vld [vmem:[%s8966_s20 + $0x794] sm:$0xf] }
 0x1c9   :  { %5144 = vmatmul.msk.bf16.vlgmr.msrb.gmra.mxu0 %vm1067_vm2, %v7941_v11  ;;  %2130 = vmatpush.bf16.msra.mxu2 %v5249_v27  ;;  %v5437_v27 = vor.u32 %v6384_v16, %v5436_v14  ;;  %v6375_v14 = vld [vmem:[%s8966_s20 + $0x784] sm:$0xf] }
 0x1ca   :  { %2101 = vmatpush.bf16.msra.mxu0 %v5397_v21  ;;  %v8037_v21 = vld.sshfl [vmem:[#allocation1 + $0x8] sm:$0xff pattern:$0x73625140] }
 0x1cb   :  { %2096 = vmatmul.bf16.vlgmr.msrb.gmra.mxu3 %v8037_v21 }
 0x1ce   :  { %2102 = vmatpush.bf16.msra.mxu0 %v5389_v8  ;;  %v5340_v8 = vld [vmem:[%s8966_s20 + $0x700] sm:$0xf] }
 0x1cf   :  { %v5341_v31 = vor.u32 %v6360_v9, %v5340_v8  ;;  %v5420_v9 = vld [vmem:[%s8966_s20 + $0x7a0] sm:$0xf] }
 0x1d2   :  { %2103 = vmatpush.bf16.msra.mxu0 %v5381_v30  ;;  %v5302_v30 = vld [vmem:[%s8966_s20 + $0x6b8] sm:$0xf0] }
 0x1d3   :  { %v5305_v44 = vor.u32 %v6349_v40, %v5302_v30  ;;  %v5358_v40 = vld [vmem:[%s8966_s20 + $0x728] sm:$0xf0]  ;;  %v6361_v30 = vld [vmem:[%s8966_s20 + $0x714] sm:$0xf] }
 0x1d6   :  { %2104 = vmatpush.bf16.msra.mxu0 %v5373_v58  ;;  %v5230_v58 = vld [vmem:[%s8966_s20 + $0x628] sm:$0xf0] }
 0x1d7   :  { %v5233_v63 = vor.u32 %v6331_v55, %v5230_v58  ;;  %v5454_v55 = vld [vmem:[%s8966_s20 + $0x7e8] sm:$0xf0]  ;;  %v1750_v58 = vld.sshfl [vmem:[#allocation1 + $0x18] sm:$0xff pattern:$0x73625140] }
 0x1d8   :  { %v5457_v59 = vor.u32 %v6387_v54, %v5454_v55  ;;  %v6405_v54 = vld [vmem:[%s8945_s4 + $0x6c] sm:$0xff] }
 0x1da   :  { %2105 = vmatpush.bf16.msra.mxu0 %v5365_v5  ;;  %v6329_v5 = vld [vmem:[%s8966_s20 + $0x614] sm:$0xf] }
 0x1db   :  { %v1610_v19 = vpop.f32.mrf.mxu1  ;;  %v5225_v10 = vor.u32 %v6329_v5, %v5222_v6  ;;  %v5422_v5 = vld [vmem:[%s8966_s20 + $0x7a8] sm:$0xf0] }
 0x1dc   :  { %v1611_v22 = vadd.f32 %v1610_v19, %v7887_v60  ;;  %v5310_v60 = vld [vmem:[%s8966_s20 + $0x6c8] sm:$0xf0] }
 0x1dd   :  { %v5313_v38 = vor.u32 %v6351_v25, %v5310_v60  ;;  %v5214_v19 = vld [vmem:[%s8966_s20 + $0x608] sm:$0xf0]  ;;  %v5428_v60 = vld [vmem:[%s8966_s20 + $0x7b0] sm:$0xf] }
 0x1de   :  { %v1624_v28 = vadd.f32 %v7871_v50, %v1611_v22  ;;  %2106 = vmatpush.bf16.msra.mxu0 %v5357_v53  ;;  %v6333_v50 = vld [vmem:[%s8966_s20 + $0x634] sm:$0xf]  ;;  %v6367_v53 = vld [vmem:[%s8966_s20 + $0x744] sm:$0xf]  ;;  %v5217_v23 = vor.u32 %v6327_v18, %v5214_v19  ;;  %v5429_v8 = vor.u32 %v6382_v29, %v5428_v60  ;;  %v6513_v29 = vmov 0  }
 0x1df   :  { %v5241_v43 = vor.u32 %v6333_v50, %v5238_v39  ;;  %2143 = vmatpush.bf16.msra.mxu3 %v5313_v38  ;;  %v6343_v22 = vld [vmem:[%s8966_s20 + $0x684] sm:$0xf]  ;;  %v6380_v50 = vld [vmem:[%s8966_s20 + $0x7a4] sm:$0xf0]  ;;  %6505 = vset.pattern.permute.xlu0 %v6513_v29 }
 0x1e0   :  { %v1637_v41 = vadd.f32 %v7873_v51, %v1624_v28  ;;  %v5281_v25 = vor.u32 %v6343_v22, %v5278_v24  ;;  %v5377_v28 = vor.u32 %v6367_v53, %v5374_v17  ;;  %v6363_v39 = vld [vmem:[%s8966_s20 + $0x724] sm:$0xf]  ;;  %6506 = vset.pattern.permute.xlu1 %v6513_v29  ;;  %6507 = vset.pattern.permute.xlu2 %v6513_v29 }
 0x1e1   :  { %2131 = vmatpush.bf16.msra.mxu2 %v5241_v43  ;;  %v5361_v42 = vor.u32 %v6363_v39, %v5358_v40  ;;  %v6378_v43 = vld [vmem:[%s8966_s20 + $0x794] sm:$0xf0]  ;;  %v6399_v29 = vld [vmem:[%s8945_s4 + $0x40] sm:$0xff] }
 0x1e2   :  { %v1643_v45 = vpack.c.bf16 %v1637_v41, %v1637_v41  ;;  %2107 = vmatpush.bf16.msra.mxu0 %v5349_v12  ;;  %v5366_v12 = vld [vmem:[%s8966_s20 + $0x738] sm:$0xf0]  ;;  %v5421_v41 = vor.u32 %v6380_v50, %v5420_v9 }
 0x1e3   :  { %v1612_v51 = vpop.f32.mrf.mxu1  ;;  %2144 = vmatpush.bf16.msra.mxu3 %v5305_v44  ;;  %v5369_v38 = vor.u32 %v6365_v32, %v5366_v12  ;;  %v5404_v44 = vld [vmem:[%s8966_s20 + $0x780] sm:$0xf] }
 0x1e4   :  { %v1651_v49 = vand.u32 %v1643_v45, %v7422_v33  ;;  %v6359_v51 = vld [vmem:[%s8966_s20 + $0x704] sm:$0xf] }
 0x1e5   :  { %2132 = vmatpush.bf16.msra.mxu2 %v5233_v63  ;;  %v5449_v63 = vor.u32 %v6385_v61, %v5446_v37 }
 0x1e6   :  { %1673 = vmatpush.bf16.msrb.mxu1 %v1651_v49  ;;  %2108 = vmatpush.bf16.msra.mxu0 %v5341_v31  ;;  %v6376_v31 = vld [vmem:[%s8966_s20 + $0x784] sm:$0xf0] }
 0x1e7   :  { %2145 = vmatpush.bf16.msra.mxu3 %v5297_v0  ;;  %v6383_v0 = vld [vmem:[%s8966_s20 + $0x7c4] sm:$0xf] }
 0x1e9   :  { %5145 = vmatmul.msk.bf16.vlgmr.msrb.gmra.mxu1 %vm1067_vm2, %v7941_v11  ;;  %2109 = vmatmul.bf16.vlgmr.msra.gmra.mxu0 %v8114_v62  ;;  %v5385_v11 = vor.u32 %v6369_v3, %v5382_v4  ;;  %v6379_v4 = vld [vmem:[%s8966_s20 + $0x7a4] sm:$0xf] }
 0x1ea   :  { %2114 = vmatpush.bf16.msra.mxu1 %v5461_v34  ;;  %2153 = vmatpush.bf16.msrb.mxu0 %v5401_v47  ;;  %v5342_v34 = vld [vmem:[%s8966_s20 + $0x708] sm:$0xf0]  ;;  %v5405_v47 = vor.u32 %v6376_v31, %v5404_v44  ;;  %v5425_v6 = vor.u32 %v6379_v4, %v5422_v5  ;;  %v6397_v44 = vld [vmem:[%s8945_s4 + $0x30] sm:$0xff]  ;;  %v3191_v31 = vld [vmem:[%s8946_s9 + $0x18] sm:$0xff] }
 0x1eb   :  { %2133 = vmatpush.bf16.msra.mxu2 %v5225_v10  ;;  %2146 = vmatpush.bf16.msra.mxu3 %v5289_v56  ;;  %v5345_v49 = vor.u32 %v6359_v51, %v5342_v34  ;;  %v5414_v10 = vld [vmem:[%s8966_s20 + $0x798] sm:$0xf0]  ;;  %v5406_v56 = vld [vmem:[%s8966_s20 + $0x788] sm:$0xf0]  ;;  %v6418_v4 = vld [vmem:[%s8945_s4 + $0xd0] sm:$0xff] }
 0x1ec   :  { %v5417_v13 = vor.u32 %v6377_v7, %v5414_v10  ;;  %v6396_v51 = vld [vmem:[%s8945_s4 + $0x28] sm:$0xff]  ;;  %v6407_v34 = vld [vmem:[%s8945_s4 + $0x7c] sm:$0xff]  ;;  %v6402_v5 = vld [vmem:[%s8945_s4 + $0x54] sm:$0xff] }
 0x1ed   :  { %v6416_v7 = vld [vmem:[%s8945_s4 + $0xc0] sm:$0xff]  ;;  %v6415_v10 = vld [vmem:[%s8945_s4 + $0xb8] sm:$0xff] }
 0x1ee   :  { %2115 = vmatpush.bf16.msra.mxu1 %v5453_v1  ;;  %2154 = vmatpush.bf16.msrb.mxu0 %v5393_v48  ;;  %v5438_v1 = vld [vmem:[%s8966_s20 + $0x7c8] sm:$0xf0]  ;;  %v6381_v48 = vld [vmem:[%s8966_s20 + $0x7b4] sm:$0xf] }
 0x1ef   :  { %2134 = vmatpush.bf16.msra.mxu2 %v5217_v23  ;;  %2147 = vmatpush.bf16.msra.mxu3 %v5281_v25  ;;  %v5441_v2 = vor.u32 %v6383_v0, %v5438_v1 }
 0x1f2   :  { %2116 = vmatpush.bf16.msra.mxu1 %v5445_v15  ;;  %2155 = vmatpush.bf16.msrb.mxu0 %v5385_v11  ;;  %v5409_v15 = vor.u32 %v6375_v14, %v5406_v56  ;;  %v6413_v14 = vld [vmem:[%s8945_s4 + $0xa8] sm:$0xff]  ;;  %v2252_v56 = vld [vmem:[%s8945_s4 + $0x50] sm:$0xf] }
 0x1f3   :  { %2135 = vmatmul.bf16.vlgmr.msra.gmra.mxu2 %v8035_v20  ;;  %2148 = vmatmul.bf16.vlgmr.msra.gmra.mxu3 %v8037_v21  ;;  %v5350_v20 = vld [vmem:[%s8966_s20 + $0x718] sm:$0xf0]  ;;  %v5413_v21 = vor.u32 %v6378_v43, %v5412_v57  ;;  %v5466_v57 = vld [vmem:[%s8968_s24 + $0xc] sm:$0xf] }
 0x1f4   :  { %v5353_v45 = vor.u32 %v6361_v30, %v5350_v20  ;;  %v6398_v20 = vld [vmem:[%s8945_s4 + $0x38] sm:$0xff] }
 0x1f6   :  { %2117 = vmatpush.bf16.msra.mxu1 %v5437_v27  ;;  %2156 = vmatpush.bf16.msrb.mxu0 %v5377_v28  ;;  %v2220_v27 = vld [vmem:[%s8969_s2] sm:$0xff] }
 0x1f7   :  { %2223 = vperm.xlu0 %6505, %v2220_v27  }
 0x1fa   :  { %2118 = vmatpush.bf16.msra.mxu1 %v5429_v8  ;;  %2157 = vmatpush.bf16.msrb.mxu0 %v5369_v38 }
 0x1fe   :  { %2119 = vmatpush.bf16.msra.mxu1 %v5421_v41  ;;  %2158 = vmatpush.bf16.msrb.mxu0 %v5361_v42  ;;  %v2812_v42 = vld [vmem:[%s8944_s6] sm:$0xff] }
 0x1ff   :  { %2816 = vperm.xlu0 %6505, %v2812_v42  }
 0x202   :  { %2120 = vmatpush.bf16.msra.mxu1 %v5413_v21  ;;  %2159 = vmatpush.bf16.msrb.mxu0 %v5353_v45  ;;  %v6409_v21 = vld [vmem:[%s8945_s4 + $0x8c] sm:$0xff]  ;;  %v6408_v45 = vld [vmem:[%s8945_s4 + $0x84] sm:$0xff] }
 0x206   :  { %2121 = vmatpush.bf16.msra.mxu1 %v5405_v47  ;;  %2160 = vmatpush.bf16.msrb.mxu0 %v5345_v49  ;;  %v3700_v47 = vld [vmem:[%s8947_s15] sm:$0xff] }
 0x207   :  { %3209 = vperm.xlu0 %6505, %v3191_v31  }
 0x209   :  { %2122 = vmatmul.bf16.vlgmr.msra.gmra.mxu1 %v1750_v58  ;;  %2161 = vmatmul.bf16.vlgmr.msrb.gmra.mxu0 %v8114_v62  ;;  %v5430_v62 = vld [vmem:[%s8966_s20 + $0x7b8] sm:$0xf0] }
 0x20a   :  { %2166 = vmatpush.bf16.msrb.mxu1 %v5465_v52  ;;  %v5433_v3 = vor.u32 %v6381_v48, %v5430_v62  ;;  %2324 = vmatpush.bf16.msra.mxu0 %v6398_v20  ;;  %v6394_v52 = vld [vmem:[%s8945_s4 + $0x18] sm:$0xff]  ;;  %v6420_v48 = vld [vmem:[%s8945_s4 + $0xe0] sm:$0xff] }
 0x20e   :  { %2167 = vmatpush.bf16.msrb.mxu1 %v5457_v59  ;;  %2325 = vmatpush.bf16.msra.mxu0 %v6397_v44  ;;  %v6404_v59 = vld [vmem:[%s8945_s4 + $0x64] sm:$0xff] }
 0x20f   :  { %3703 = vperm.xlu0 %6505, %v3700_v47  }
 0x212   :  { %2168 = vmatpush.bf16.msrb.mxu1 %v5449_v63  ;;  %2326 = vmatpush.bf16.msra.mxu0 %v6396_v51  ;;  %v6392_v63 = vld [vmem:[%s8945_s4 + $0x8] sm:$0xff]  ;;  %v6431_v51 = vld [vmem:[%s8945_s4 + $0x134] sm:$0xff] }
 0x216   :  { %2169 = vmatpush.bf16.msrb.mxu1 %v5441_v2  ;;  %2327 = vmatpush.bf16.msra.mxu0 %v6395_v35  ;;  %v6391_v2 = vld [vmem:[%s8945_s4] sm:$0xff] }
 0x217   :  { %v6401_v35 = vld [vmem:[%s8948_s5] sm:$0xff] }
 0x21a   :  { %2170 = vmatpush.bf16.msrb.mxu1 %v5433_v3  ;;  %2328 = vmatpush.bf16.msra.mxu0 %v6394_v52  ;;  %v6419_v3 = vld [vmem:[%s8945_s4 + $0xd8] sm:$0xff]  ;;  %v6430_v52 = vld [vmem:[%s8945_s4 + $0x12c] sm:$0xff] }
 0x21e   :  { %2171 = vmatpush.bf16.msrb.mxu1 %v5425_v6  ;;  %v6417_v6 = vld [vmem:[%s8945_s4 + $0xc8] sm:$0xff] }
 0x222   :  { %2172 = vmatpush.bf16.msrb.mxu1 %v5417_v13  ;;  %v6414_v13 = vld [vmem:[%s8945_s4 + $0xb0] sm:$0xff] }
 0x226   :  { %2173 = vmatpush.bf16.msrb.mxu1 %v5409_v15  ;;  %v5530_v15 = vld [vmem:[%s8945_s4 + $0xa4] sm:$0xf] }
 0x229   :  { %2174 = vmatmul.bf16.vlgmr.msrb.gmra.mxu1 %v1750_v58  ;;  %v6393_v58 = vld [vmem:[%s8945_s4 + $0x10] sm:$0xff] }
 0x22a   :  { %2329 = vmatpush.bf16.msra.mxu0 %v6393_v58 }
 0x22e   :  { %2330 = vmatpush.bf16.msra.mxu0 %v6392_v63  ;;  %v6429_v63 = vld [vmem:[%s8945_s4 + $0x124] sm:$0xff] }
 0x232   :  { %2331 = vmatpush.bf16.msra.mxu0 %v6391_v2 }
 0x236   :  { %2610 = vmatpush.bf16.msrb.mxu0 %v6420_v48  ;;  %v6428_v48 = vld [vmem:[%s8945_s4 + $0x11c] sm:$0xff] }
 0x23a   :  { %2611 = vmatpush.bf16.msrb.mxu0 %v6419_v3  ;;  %v6421_v3 = vld [vmem:[%s8945_s4 + $0xe8] sm:$0xff] }
 0x23e   :  { %2612 = vmatpush.bf16.msrb.mxu0 %v6418_v4 }
 0x242   :  { %2613 = vmatpush.bf16.msrb.mxu0 %v6417_v6  ;;  %v6426_v6 = vld [vmem:[%s8945_s4 + $0x10c] sm:$0xff] }
 0x246   :  { %v1662_v16 = vpop.f32.mrf.mxu0  ;;  %2614 = vmatpush.bf16.msrb.mxu0 %v6416_v7  ;;  %v6432_v7 = vld [vmem:[%s8945_s4 + $0x13c] sm:$0xff] }
 0x247   :  { %v8264_v11 = vadd.f32 %v1662_v16, %v7843_v26  ;;  %v2294_v16 = vunpack.c.l.b16 %v2252_v56 }
 0x24a   :  { %v2084_v18 = vpop.f32.mrf.mxu2  ;;  %2615 = vmatpush.bf16.msrb.mxu0 %v6415_v10  ;;  %v6425_v10 = vld [vmem:[%s8945_s4 + $0x104] sm:$0xff] }
 0x24e   :  { %v1664_v53 = vpop.f32.mrf.mxu0  ;;  %v2097_v17 = vpop.f32.mrf.mxu3  ;;  %2616 = vmatpush.bf16.msrb.mxu0 %v6414_v13  ;;  %v6424_v13 = vld [vmem:[%s8945_s4 + $0xfc] sm:$0xff] }
 0x24f   :  { %v2098_v12 = vadd.f32 %v2097_v17, %v2084_v18  ;;  %v2416_v53 = vunpack.c.l.b16 %v5530_v15  ;;  %v2305_v17 = vpack.c.b16 %v2294_v16, %v2294_v16 }
 0x251   :  { %v2427_v18 = vpack.c.b16 %v2416_v53, %v2416_v53  ;;  %v2813_v53 = vld [vmem:[%s8944_s6 + $0x8] sm:$0xff] }
 0x252   :  { %v2086_v25 = vpop.f32.mrf.mxu2  ;;  %2617 = vmatpush.bf16.msrb.mxu0 %v6413_v14  ;;  %2821 = vperm.xlu1 %6506, %v2813_v53  }
 0x253   :  { %v6411_v25 = vld [vmem:[%s8945_s4 + $0x9c] sm:$0xff] }
 0x256   :  { %v2099_v24 = vpop.f32.mrf.mxu3 }
 0x257   :  { %v6400_v24 = vld [vmem:[%s8945_s4 + $0x48] sm:$0xff] }
 0x266   :  { %v1675_v19 = vpop.f32.mrf.mxu1  ;;  %v2110_v22 = vpop.f32.mrf.mxu0 }
 0x267   :  { %v8267_v23 = vadd.f32 %v1675_v19, %v7845_v36  ;;  %v2111_v9 = vadd.f32 %v2110_v22, %v2098_v12  ;;  %v2322_v19 = vsel %vm2320_vm3, %v2305_v17, 0  ;;  %v2439_v22 = vsel %vm2320_vm3, %v2427_v18, 0  ;;  %v3188_v17 = vld [vmem:[%s8946_s9] sm:$0xff] }
 0x268   :  { %2342 = vmatpush.bf16.msra.mxu1 %v2322_v19  ;;  %3194 = vperm.xlu1 %6506, %v3188_v17  }
 0x26c   :  { %2343 = vmatpush.bf16.msra.mxu1 %v6400_v24 }
 0x26e   :  { %v1677_v60 = vpop.f32.mrf.mxu1  ;;  %v2112_v28 = vpop.f32.mrf.mxu0 }
 0x26f   :  { %v2224_v60 = vpop.permute.xlu0 %2223 }
 0x270   :  { %2344 = vmatpush.bf16.msra.mxu1 %v6399_v29 }
 0x276   :  { %v2136_v26 = vpop.f32.mrf.mxu2  ;;  %v2149_v32 = vpop.f32.mrf.mxu3 }
 0x277   :  { %v2150_v49 = vadd.f32 %v2149_v32, %v2136_v26  ;;  %v6410_v26 = vld [vmem:[%s8945_s4 + $0x94] sm:$0xff] }
 0x27e   :  { %v2138_v8 = vpop.f32.mrf.mxu2  ;;  %v2151_v36 = vpop.f32.mrf.mxu3 }
 0x286   :  { %v2123_v38 = vpop.f32.mrf.mxu1  ;;  %v2162_v50 = vpop.f32.mrf.mxu0 }
 0x287   :  { %v2124_v39 = vadd.f32 %v2123_v38, %v2111_v9  ;;  %v2163_v55 = vadd.f32 %v2162_v50, %v2150_v49 }
 0x289   :  { %v2181_v40 = vpack.c.bf16 %v2124_v39, %v2124_v39 }
 0x28b   :  { %v2187_v41 = vand.u32 %v2181_v40, %v7422_v33 }
 0x28d   :  { %2199 = vmatpush.bf16.msrb.mxu2 %v2187_v41 }
 0x28e   :  { %v2125_v43 = vpop.f32.mrf.mxu1  ;;  %v2164_v30 = vpop.f32.mrf.mxu0 }
 0x290   :  { %5467 = vmatmul.msk.bf16.vlgmr.msrb.gmra.mxu2 %vm1067_vm2, %v5466_v57 }
 0x291   :  { %2441 = vmatpush.bf16.msra.mxu2 %v6409_v21 }
 0x295   :  { %2442 = vmatpush.bf16.msra.mxu2 %v6408_v45 }
 0x299   :  { %2443 = vmatpush.bf16.msra.mxu2 %v6407_v34 }
 0x29d   :  { %2444 = vmatpush.bf16.msra.mxu2 %v6406_v46 }
 0x2a1   :  { %2445 = vmatpush.bf16.msra.mxu2 %v6405_v54 }
 0x2a5   :  { %2446 = vmatpush.bf16.msra.mxu2 %v6404_v59 }
 0x2a6   :  { %v2175_v61 = vpop.f32.mrf.mxu1 }
 0x2a7   :  { %v2176_v37 = vadd.f32 %v2175_v61, %v2163_v55  ;;  %v5673_v55 = vld [vmem:[%s8945_s4 + $0x14c] sm:$0xf] }
 0x2a9   :  { %v2182_v0 = vpack.c.bf16 %v2176_v37, %v2176_v37  ;;  %v6412_v37 = vld [vmem:[%s8948_s5 + $0x8] sm:$0xff] }
 0x2ab   :  { %v2190_v1 = vand.u32 %v2182_v0, %v7422_v33  ;;  %v6403_v33 = vld [vmem:[%s8945_s4 + $0x5c] sm:$0xff]  ;;  %v2730_v0 = vunpack.c.l.b16 %v5673_v55 }
 0x2ac   :  { %2447 = vmatpush.bf16.msra.mxu2 %v6403_v33  ;;  %v6427_v33 = vld [vmem:[%s8945_s4 + $0x114] sm:$0xff] }
 0x2ad   :  { %2212 = vmatpush.bf16.msrb.mxu3 %v2190_v1  ;;  %v6422_v1 = vld [vmem:[%s8945_s4 + $0xf0] sm:$0xff]  ;;  %v6445_v55 = vld [vmem:[%s8951_s7 + $0x38] sm:$0xff] }
 0x2ae   :  { %v2177_v62 = vpop.f32.mrf.mxu1 }
 0x2af   :  { %v2741_v62 = vpack.c.b16 %v2730_v0, %v2730_v0 }
 0x2b0   :  { %5468 = vmatmul.msk.bf16.vlgmr.msrb.gmra.mxu3 %vm1067_vm2, %v5466_v57  ;;  %2448 = vmatpush.bf16.msra.mxu2 %v6402_v5  ;;  %v6433_v5 = vld [vmem:[%s8945_s4 + $0x144] sm:$0xff] }
 0x2b1   :  { %2459 = vmatpush.bf16.msra.mxu3 %v2439_v22  ;;  %v2753_v4 = vsel %vm2320_vm3, %v2741_v62, 0 }
 0x2b5   :  { %2460 = vmatpush.bf16.msra.mxu3 %v6411_v25 }
 0x2b9   :  { %2461 = vmatpush.bf16.msra.mxu3 %v6410_v26  ;;  %v4219_v26 = vld [vmem:[%s8950_s18] sm:$0x7] }
 0x313   :  { %v2201_v27 = vpop.f32.mrf.mxu2 }
 0x314   :  { %v2218_v28 = vadd.f32 %v2201_v27, %v8264_v11  ;;  %v6423_v27 = vld [vmem:[%s8948_s5 + $0x10] sm:$0xff] }
 0x316   :  { %v2226_v32 = vadd.f32 %v2224_v60, %v2218_v28 }
 0x318   :  { %v2228_v12 = vmax.f32 %v2226_v32, 0.0 }
 0x31a   :  { %v8381_v8 = vpack.c.bf16 %v2228_v12, %v2228_v12 }
 0x31b   :  { %v2203_v9 = vpop.f32.mrf.mxu2 }
 0x31c   :  { %2332 = vmatmul.bf16.vlgmr.msra.gmra.mxu0 %v8381_v8  ;;  %2449 = vmatmul.bf16.vlgmr.msra.gmra.mxu2 %v8381_v8 }
 0x32c   :  { %2618 = vmatmul.bf16.vlgmr.msrb.gmra.mxu0 %v8381_v8 }
 0x333   :  { %v2214_v11 = vpop.f32.mrf.mxu3 }
 0x334   :  { %v2219_v36 = vadd.f32 %v2214_v11, %v8267_v23  ;;  %v5604_v23 = vld [vmem:[%s8945_s4 + $0xf8] sm:$0xf] }
 0x335   :  { %v2585_v45 = vunpack.c.l.b16 %v5604_v23  ;;  %v6442_v23 = vld [vmem:[%s8951_s7 + $0x2c] sm:$0xff] }
 0x336   :  { %v2227_v38 = vadd.f32 %v2224_v60, %v2219_v36  ;;  %v3480_v60 = vld [vmem:[%s8949_s12] sm:$0xff]  ;;  %v6434_v36 = vld [vmem:[%s8948_s5 + $0x18] sm:$0xff] }
 0x337   :  { %v2596_v47 = vpack.c.b16 %v2585_v45, %v2585_v45  ;;  %3484 = vperm.xlu1 %6506, %v3480_v60   ;;  %v6435_v45 = vld [vmem:[%s8951_s7] sm:$0xff] }
 0x338   :  { %v2229_v50 = vmax.f32 %v2227_v38, 0.0 }
 0x339   :  { %v2608_v59 = vsel %vm2320_vm3, %v2596_v47, 0 }
 0x33a   :  { %v8387_v39 = vpack.c.bf16 %v2229_v50, %v2229_v50  ;;  %v2835_v50 = vld [vmem:[%s8951_s7 + $0x18] sm:$0xf] }
 0x33b   :  { %v2216_v40 = vpop.f32.mrf.mxu3 }
 0x33c   :  { %5509 = vmatmul.msk.bf16.vlgmr.msra.gmra.mxu1 %vm2316_vm4, %v8387_v39  ;;  %5571 = vmatmul.msk.bf16.vlgmr.msra.gmra.mxu3 %vm2316_vm4, %v8387_v39  ;;  %v2849_v40 = vunpack.c.l.b16 %v2835_v50  ;;  %v6449_v50 = vld [vmem:[%s8952_s8 + $0x28] sm:$0xff] }
 0x33f   :  { %4222 = vperm.xlu1 %6506, %v4219_v26   ;;  %v6439_v26 = vld [vmem:[%s8952_s8 + $0x8] sm:$0xff] }
 0x399   :  { %v2333_v41 = vpop.f32.mrf.mxu0 }
 0x39f   :  { %v2450_v57 = vpop.f32.mrf.mxu2 }
 0x3a1   :  { %v2335_v42 = vpop.f32.mrf.mxu0 }
 0x3a7   :  { %v2452_v43 = vpop.f32.mrf.mxu2 }
 0x3a9   :  { %v8393_v30 = vpop.f32.mrf.mxu0 }
 0x3b1   :  { %v2621_v20 = vpop.f32.mrf.mxu0 }
 0x3b2   :  { %v6437_v20 = vld [vmem:[%s8951_s7 + $0x10] sm:$0xff] }
 0x3b9   :  { %v2346_v21 = vpop.f32.mrf.mxu1 }
 0x3ba   :  { %v2347_v44 = vadd.f32 %v2346_v21, %v2333_v41  ;;  %v6436_v21 = vld [vmem:[%s8951_s7 + $0x8] sm:$0xff] }
 0x3bc   :  { %v2352_v31 = vpack.c.bf16 %v2347_v44, %v2347_v44  ;;  %v6441_v44 = vld [vmem:[%s8951_s7 + $0x24] sm:$0xff] }
 0x3be   :  { %v2506_v34 = vsel %vm2320_vm3, %v2352_v31, 0  ;;  %v6440_v31 = vld [vmem:[%s8951_s7 + $0x1c] sm:$0xff] }
 0x3bf   :  { %v2463_v46 = vpop.f32.mrf.mxu3  ;;  %2515 = vmatpush.bf16.msrb.mxu3 %v2506_v34 }
 0x3c0   :  { %v2464_v49 = vadd.f32 %v2463_v46, %v2450_v57  ;;  %v2853_v57 = vpack.c.b16 %v2849_v40, %v2849_v40  ;;  %v6454_v40 = vld [vmem:[%s8952_s8 + $0x38] sm:$0xff] }
 0x3c1   :  { %v2348_v54 = vpop.f32.mrf.mxu1 }
 0x3c2   :  { %v2470_v58 = vpack.c.bf16 %v2464_v49, %v2464_v49  ;;  %5583 = vmatmul.msk.bf16.vlgmr.msrb.gmra.mxu3 %vm2476_vm5, %v6401_v35  ;;  %v2862_v43 = vsel %vm2320_vm3, %v2853_v57, 0  ;;  %v6447_v49 = vld [vmem:[%s8951_s7 + $0x48] sm:$0xff] }
 0x3c3   :  { %2755 = vmatpush.bf16.msra.mxu3 %v6431_v51  ;;  %2868 = vmatpush.bf16.msra.mxu0 %v2862_v43  ;;  %v5785_v51 = vld [vmem:[%s8951_s7 + $0x50] sm:$0xf]  ;;  %v3224_v57 = vld [vmem:[%s8953_s10 + $0x8] sm:$0xf]  ;;  %v5876_v43 = vld [vmem:[%s8953_s10 + $0x20] sm:$0xf] }
 0x3c4   :  { %v2481_v61 = vsel %vm2320_vm3, %v2470_v58, 0  ;;  %v3027_v34 = vunpack.c.l.b16 %v5785_v51 }
 0x3c5   :  { %2490 = vmatpush.bf16.msrb.mxu1 %v2481_v61  ;;  %v5819_v61 = vld [vmem:[%s8951_s7 + $0x6c] sm:$0xf] }
 0x3c6   :  { %v3031_v46 = vpack.c.b16 %v3027_v34, %v3027_v34 }
 0x3c7   :  { %2756 = vmatpush.bf16.msra.mxu3 %v6430_v52  ;;  %v2465_v2 = vpop.f32.mrf.mxu3  ;;  %2869 = vmatpush.bf16.msra.mxu0 %v6437_v20  ;;  %v6446_v52 = vld [vmem:[%s8951_s7 + $0x40] sm:$0xff] }
 0x3c8   :  { %5578 = vmatmul.msk.bf16.vlgmr.msrb.gmra.mxu1 %vm2476_vm5, %v6412_v37  ;;  %v3036_v47 = vsel %vm2320_vm3, %v3031_v46, 0  ;;  %v2817_v2 = vpop.permute.xlu0 %2816  ;;  %v6455_v46 = vld [vmem:[%s8953_s10] sm:$0xff] }
 0x3c9   :  { %2628 = vmatpush.bf16.msra.mxu1 %v2608_v59 }
 0x3cb   :  { %2757 = vmatpush.bf16.msra.mxu3 %v6429_v63  ;;  %2870 = vmatpush.bf16.msra.mxu0 %v6436_v21 }
 0x3cd   :  { %2629 = vmatpush.bf16.msra.mxu1 %v6422_v1  ;;  %v3118_v1 = vunpack.c.l.b16 %v5819_v61 }
 0x3cf   :  { %2758 = vmatpush.bf16.msra.mxu3 %v6428_v48  ;;  %2871 = vmatpush.bf16.msra.mxu0 %v6435_v45 }
 0x3d1   :  { %2630 = vmatpush.bf16.msra.mxu1 %v6421_v3 }
 0x3d3   :  { %2759 = vmatpush.bf16.msra.mxu3 %v6427_v33  ;;  %3042 = vmatpush.bf16.msrb.mxu0 %v3036_v47  ;;  %v2822_v33 = vpop.permute.xlu1 %2821  ;;  %v6457_v47 = vld [vmem:[%s8953_s10 + $0xc] sm:$0xff] }
 0x3d5   :  { %2773 = vmatpush.bf16.msrb.mxu1 %v2753_v4 }
 0x3d7   :  { %2760 = vmatpush.bf16.msra.mxu3 %v6426_v6  ;;  %3043 = vmatpush.bf16.msrb.mxu0 %v6447_v49  ;;  %v6459_v49 = vld [vmem:[%s8953_s10 + $0x18] sm:$0xff] }
 0x3d8   :  { %5645 = vmatmul.msk.bf16.vlgmr.msra.gmra.mxu1 %vm2316_vm4, %v8387_v39 }
 0x3d9   :  { %2774 = vmatpush.bf16.msrb.mxu1 %v6433_v5  ;;  %v3122_v5 = vpack.c.b16 %v3118_v1, %v3118_v1 }
 0x3db   :  { %2761 = vmatpush.bf16.msra.mxu3 %v6425_v10  ;;  %3044 = vmatpush.bf16.msrb.mxu0 %v6446_v52 }
 0x3dd   :  { %2775 = vmatpush.bf16.msrb.mxu1 %v6432_v7 }
 0x3df   :  { %2762 = vmatpush.bf16.msra.mxu3 %v6424_v13  ;;  %3045 = vmatpush.bf16.msrb.mxu0 %v6445_v55  ;;  %v3127_v13 = vsel %vm2320_vm3, %v3122_v5, 0 }
 0x3e2   :  { %2763 = vmatmul.bf16.vlgmr.msra.gmra.mxu3 %v8381_v8 }
 0x3e8   :  { %5714 = vmatmul.msk.bf16.vlgmr.msrb.gmra.mxu1 %vm2316_vm4, %v8387_v39  ;;  %v5741_v39 = vld [vmem:[%s8951_s7 + $0x34] sm:$0xf] }
 0x3e9   :  { %v2904_v41 = vunpack.c.l.b16 %v5741_v39  ;;  %v3481_v39 = vld [vmem:[%s8949_s12 + $0x8] sm:$0xff] }
 0x3eb   :  { %v2908_v42 = vpack.c.b16 %v2904_v41, %v2904_v41 }
 0x445   :  { %v2492_v14 = vpop.f32.mrf.mxu1  ;;  %v2517_v56 = vpop.f32.mrf.mxu3 }
 0x446   :  { %v8454_v15 = vadd.f32 %v2517_v56, %v2492_v14  ;;  %v6452_v14 = vld [vmem:[%s8951_s7 + $0x64] sm:$0xff]  ;;  %v6451_v56 = vld [vmem:[%s8951_s7 + $0x5c] sm:$0xff] }
 0x44d   :  { %v8456_v16 = vpop.f32.mrf.mxu1  ;;  %v2519_v24 = vpop.f32.mrf.mxu3 }
 0x44e   :  { %v2520_v37 = vadd.f32 %v2519_v24, %v8456_v16  ;;  %v6443_v24 = vld [vmem:[%s8952_s8 + $0x10] sm:$0xff] }
 0x455   :  { %v2632_v18 = vpop.f32.mrf.mxu1 }
 0x456   :  { %v2633_v19 = vadd.f32 %v2632_v18, %v8393_v30  ;;  %v2913_v30 = vsel %vm2320_vm3, %v2908_v42, 0  ;;  %v5855_v42 = vld [vmem:[%s8953_s10 + $0x14] sm:$0xf] }
 0x457   :  { %2919 = vmatpush.bf16.msra.mxu1 %v2913_v30  ;;  %v3230_v30 = vunpack.c.l.b16 %v3224_v57  ;;  %v3276_v20 = vunpack.c.l.b16 %v5855_v42 }
 0x458   :  { %v2639_v22 = vpack.c.bf16 %v2633_v19, %v2633_v19 }
 0x459   :  { %v3278_v45 = vpack.c.b16 %v3276_v20, %v3276_v20 }
 0x45a   :  { %v2649_v25 = vsel %vm2320_vm3, %v2639_v22, 0 }
 0x45b   :  { %2658 = vmatpush.bf16.msrb.mxu2 %v2649_v25  ;;  %2920 = vmatpush.bf16.msra.mxu1 %v6442_v23  ;;  %v6438_v25 = vld [vmem:[%s8952_s8] sm:$0xff]  ;;  %v3361_v23 = vunpack.c.l.b16 %v5876_v43  ;;  %v3281_v34 = vsel %vm2320_vm3, %v3278_v45, 0 }
 0x45d   :  { %v2634_v28 = vpop.f32.mrf.mxu1 }
 0x45e   :  { %5652 = vmatmul.msk.bf16.vlgmr.msrb.gmra.mxu2 %vm2476_vm5, %v6423_v27 }
 0x45f   :  { %2921 = vmatpush.bf16.msra.mxu1 %v6441_v44  ;;  %v3232_v44 = vpack.c.b16 %v3230_v30, %v3230_v30 }
 0x461   :  { %v3242_v51 = vsel %vm2320_vm3, %v3232_v44, 0 }
 0x463   :  { %2922 = vmatpush.bf16.msra.mxu1 %v6440_v31  ;;  %v3363_v31 = vpack.c.b16 %v3361_v23, %v3361_v23 }
 0x465   :  { %v2764_v29 = vpop.f32.mrf.mxu3  ;;  %v2777_v32 = vpop.f32.mrf.mxu1 }
 0x466   :  { %v2778_v12 = vadd.f32 %v2777_v32, %v2764_v29  ;;  %v6444_v29 = vld [vmem:[%s8952_s8 + $0x18] sm:$0xff]  ;;  %v6448_v32 = vld [vmem:[%s8952_s8 + $0x20] sm:$0xff] }
 0x468   :  { %v2784_v8 = vpack.c.bf16 %v2778_v12, %v2778_v12  ;;  %v3189_v12 = vld [vmem:[%s8946_s9 + $0x8] sm:$0xff] }
 0x469   :  { %3199 = vperm.xlu2 %6507, %v3189_v12  }
 0x46a   :  { %v2794_v9 = vsel %vm2320_vm3, %v2784_v8, 0 }
 0x46b   :  { %2803 = vmatpush.bf16.msra.mxu2 %v2794_v9  ;;  %v3190_v9 = vld [vmem:[%s8946_s9 + $0x10] sm:$0xff] }
 0x46d   :  { %v2766_v11 = vpop.f32.mrf.mxu3  ;;  %v2779_v38 = vpop.f32.mrf.mxu1 }
 0x46e   :  { %5721 = vmatmul.msk.bf16.vlgmr.msra.gmra.mxu2 %vm2476_vm5, %v6434_v36  ;;  %v6453_v38 = vld [vmem:[%s8952_s8 + $0x30] sm:$0xff] }
 0x471   :  { %3204 = vperm.xlu2 %6507, %v3190_v9   ;;  %v3210_v9 = vpop.permute.xlu0 %3209 }
 0x479   :  { %3489 = vperm.xlu2 %6507, %v3481_v39  }
 0x4e1   :  { %v2660_v35 = vpop.f32.mrf.mxu2 }
 0x4e2   :  { %v2665_v59 = vadd.f32 %v2660_v35, %v8454_v15  ;;  %v6450_v15 = vld [vmem:[%s8951_s7 + $0x54] sm:$0xff]  ;;  %v3366_v35 = vsel %vm2320_vm3, %v3363_v31, 0 }
 0x4e9   :  { %v2662_v54 = vpop.f32.mrf.mxu2 }
 0x4ea   :  { %v2666_v0 = vadd.f32 %v2662_v54, %v2520_v37 }
 0x4f1   :  { %v2805_v58 = vpop.f32.mrf.mxu2 }
 0x4f2   :  { %v2810_v63 = vadd.f32 %v2805_v58, %v2665_v59 }
 0x4f4   :  { %v2824_v62 = vadd.f32 %v2817_v2, %v2810_v63 }
 0x4f6   :  { %v2826_v6 = vmax.f32 %v2824_v62, 0.0 }
 0x4f9   :  { %v2807_v48 = vpop.f32.mrf.mxu2 }
 0x4fa   :  { %v2811_v3 = vadd.f32 %v2807_v48, %v2666_v0  ;;  %v5892_v0 = vld [vmem:[%s8953_s10 + $0x2c] sm:$0xf] }
 0x4fb   :  { %v3425_v2 = vunpack.c.l.b16 %v5892_v0  ;;  %v6462_v0 = vld [vmem:[%s8954_s11 + $0x18] sm:$0xff] }
 0x4fc   :  { %v2825_v4 = vadd.f32 %v2822_v33, %v2811_v3  ;;  %v3195_v33 = vpop.permute.xlu1 %3194 }
 0x4fd   :  { %v3427_v3 = vpack.c.b16 %v3425_v2, %v3425_v2 }
 0x4fe   :  { %v2827_v7 = vmax.f32 %v2825_v4, 0.0 }
 0x4ff   :  { %v3430_v5 = vsel %vm2320_vm3, %v3427_v3, 0  ;;  %v6468_v3 = vld [vmem:[%s8955_s13 + $0x28] sm:$0xff] }
 0x500   :  { %v2828_v10 = vpack.c.bf16 %v2827_v7, %v2826_v6 }
 0x502   :  { %5734 = vmatmul.msk.bf16.vlgmr.msra.gmra.mxu0 %vm2857_vm6, %v2828_v10  ;;  %5754 = vmatmul.msk.bf16.vlgmr.msra.gmra.mxu1 %vm2857_vm6, %v2828_v10 }
 0x503   :  { %3133 = vmatpush.bf16.msra.mxu0 %v3127_v13 }
 0x507   :  { %3134 = vmatpush.bf16.msra.mxu0 %v6452_v14 }
 0x50b   :  { %3135 = vmatpush.bf16.msra.mxu0 %v6451_v56  ;;  %v3200_v56 = vpop.permute.xlu2 %3199 }
 0x50f   :  { %3136 = vmatpush.bf16.msra.mxu0 %v6450_v15 }
 0x512   :  { %5798 = vmatmul.msk.bf16.vlgmr.msrb.gmra.mxu0 %vm2857_vm6, %v2828_v10 }
 0x513   :  { %3289 = vmatpush.bf16.msrb.mxu0 %v3281_v34 }
 0x517   :  { %3290 = vmatpush.bf16.msrb.mxu0 %v6457_v47 }
 0x522   :  { %5832 = vmatmul.msk.bf16.vlgmr.msra.gmra.mxu0 %vm2857_vm6, %v2828_v10  ;;  %v6461_v10 = vld [vmem:[%s8953_s10 + $0x24] sm:$0xff] }
 0x523   :  { %3438 = vmatpush.bf16.msra.mxu0 %v3430_v5  ;;  %v6467_v5 = vld [vmem:[%s8955_s13 + $0x20] sm:$0xff] }
 0x527   :  { %3439 = vmatpush.bf16.msra.mxu0 %v6461_v10 }
 0x57f   :  { %v2873_v16 = vpop.f32.mrf.mxu0  ;;  %v2924_v53 = vpop.f32.mrf.mxu1 }
 0x587   :  { %v2875_v17 = vpop.f32.mrf.mxu0  ;;  %v2926_v18 = vpop.f32.mrf.mxu1 }
 0x588   :  { %v2882_v19 = vpack.c.bf16 %v2875_v17, %v2873_v16  ;;  %v2934_v22 = vpack.c.bf16 %v2926_v18, %v2924_v53 }
 0x58a   :  { %2959 = vmatpush.bf16.msrb.mxu2 %v2934_v22  ;;  %2994 = vmatpush.bf16.msrb.mxu3 %v2882_v19 }
 0x58d   :  { %5767 = vmatmul.msk.bf16.vlgmr.msrb.gmra.mxu2 %vm2945_vm7, %v6443_v24  ;;  %5777 = vmatmul.msk.bf16.vlgmr.msrb.gmra.mxu3 %vm2945_vm7, %v6438_v25 }
 0x58e   :  { %3250 = vmatpush.bf16.msra.mxu3 %v3242_v51  ;;  %v6458_v51 = vld [vmem:[%s8954_s11 + $0x8] sm:$0xff] }
 0x58f   :  { %v3047_v27 = vpop.f32.mrf.mxu0 }
 0x592   :  { %3251 = vmatpush.bf16.msra.mxu3 %v6455_v46 }
 0x597   :  { %v3049_v60 = vpop.f32.mrf.mxu0 }
 0x598   :  { %v3057_v28 = vpack.c.bf16 %v3049_v60, %v3047_v27 }
 0x59a   :  { %3081 = vmatpush.bf16.msrb.mxu1 %v3057_v28 }
 0x59d   :  { %5768 = vmatmul.msk.bf16.gmra.mxu2 %vm2945_vm7, %v6444_v29  ;;  %5778 = vmatmul.msk.bf16.gmra.mxu3 %vm2945_vm7, %v6439_v26  ;;  %v3205_v26 = vpop.permute.xlu2 %3204 }
 0x59e   :  { %5811 = vmatmul.msk.bf16.vlgmr.msrb.gmra.mxu1 %vm2945_vm7, %v6448_v32 }
 0x59f   :  { %v3138_v8 = vpop.f32.mrf.mxu0 }
 0x5a7   :  { %v3140_v11 = vpop.f32.mrf.mxu0 }
 0x5a8   :  { %v3148_v36 = vpack.c.bf16 %v3140_v11, %v3138_v8 }
 0x5aa   :  { %3172 = vmatpush.bf16.msra.mxu2 %v3148_v36 }
 0x5ad   :  { %5845 = vmatmul.msk.bf16.vlgmr.msra.gmra.mxu2 %vm2945_vm7, %v6453_v38 }
 0x5ae   :  { %5812 = vmatmul.msk.bf16.gmra.mxu1 %vm2945_vm7, %v6449_v50  ;;  %3374 = vmatpush.bf16.msrb.mxu2 %v3366_v35 }
 0x5b2   :  { %3375 = vmatpush.bf16.msrb.mxu2 %v6459_v49 }
 0x5bd   :  { %5846 = vmatmul.msk.bf16.gmra.mxu2 %vm2945_vm7, %v6454_v40 }
 0x610   :  { %v2961_v41 = vpop.f32.mrf.mxu2  ;;  %v2996_v54 = vpop.f32.mrf.mxu3 }
 0x611   :  { %v2997_v63 = vadd.f32 %v2996_v54, %v2961_v41  ;;  %v6460_v54 = vld [vmem:[%s8954_s11 + $0x10] sm:$0xff] }
 0x618   :  { %v2963_v21 = vpop.f32.mrf.mxu2  ;;  %v2998_v59 = vpop.f32.mrf.mxu3 }
 0x619   :  { %v2999_v48 = vadd.f32 %v2998_v59, %v2963_v21 }
 0x61b   :  { %v3083_v55 = vpop.f32.mrf.mxu1 }
 0x61c   :  { %v3093_v1 = vadd.f32 %v3083_v55, %v2997_v63 }
 0x620   :  { %v2966_v52 = vpop.f32.mrf.mxu2  ;;  %v3001_v6 = vpop.f32.mrf.mxu3 }
 0x621   :  { %v3002_v22 = vadd.f32 %v3001_v6, %v2966_v52 }
 0x623   :  { %v3085_v61 = vpop.f32.mrf.mxu1 }
 0x624   :  { %v3094_v4 = vadd.f32 %v3085_v61, %v2999_v48  ;;  %v6464_v48 = vld [vmem:[%s8955_s13 + $0x8] sm:$0xff] }
 0x628   :  { %v2968_v58 = vpop.f32.mrf.mxu2  ;;  %v3003_v24 = vpop.f32.mrf.mxu3 }
 0x629   :  { %v3004_v60 = vadd.f32 %v3003_v24, %v2968_v58  ;;  %v6456_v58 = vld [vmem:[%s8954_s11] sm:$0xff] }
 0x62b   :  { %v3088_v15 = vpop.f32.mrf.mxu1 }
 0x62c   :  { %v3095_v25 = vadd.f32 %v3088_v15, %v3002_v22 }
 0x630   :  { %v3174_v37 = vpop.f32.mrf.mxu2 }
 0x631   :  { %v3184_v62 = vadd.f32 %v3174_v37, %v3093_v1 }
 0x633   :  { %v3212_v13 = vadd.f32 %v3195_v33, %v3184_v62  ;;  %v3090_v27 = vpop.f32.mrf.mxu1  ;;  %v6466_v62 = vld [vmem:[%s8955_s13 + $0x18] sm:$0xff]  ;;  %v6463_v33 = vld [vmem:[%s8955_s13] sm:$0xff] }
 0x634   :  { %v3096_v29 = vadd.f32 %v3090_v27, %v3004_v60 }
 0x635   :  { %v3216_v53 = vmax.f32 %v3212_v13, 0.0 }
 0x638   :  { %v3176_v7 = vpop.f32.mrf.mxu2 }
 0x639   :  { %v3185_v14 = vadd.f32 %v3176_v7, %v3094_v4  ;;  %v6465_v4 = vld [vmem:[%s8955_s13 + $0x10] sm:$0xff] }
 0x63b   :  { %v3213_v16 = vadd.f32 %v3200_v56, %v3185_v14 }
 0x63d   :  { %v3217_v17 = vmax.f32 %v3213_v16, 0.0 }
 0x63f   :  { %v3220_v18 = vpack.c.bf16 %v3217_v17, %v3216_v53 }
 0x640   :  { %v3179_v19 = vpop.f32.mrf.mxu2 }
 0x641   :  { %5851 = vmatmul.msk.bf16.vlgmr.msra.gmra.mxu3 %vm3234_vm8, %v3220_v18  ;;  %5860 = vmatmul.msk.bf16.vlgmr.msrb.gmra.mxu0 %vm3234_vm8, %v3220_v18  ;;  %v3186_v28 = vadd.f32 %v3179_v19, %v3095_v25  ;;  %v3490_v25 = vpop.permute.xlu2 %3489 }
 0x642   :  { %5881 = vmatmul.msk.bf16.vlgmr.msrb.gmra.mxu2 %vm3234_vm8, %v3220_v18  ;;  %3621 = vmatpush.bf16.msrb.mxu0 %v6468_v3 }
 0x643   :  { %v3214_v12 = vadd.f32 %v3205_v26, %v3186_v28 }
 0x645   :  { %v3218_v36 = vmax.f32 %v3214_v12, 0.0 }
 0x646   :  { %3622 = vmatpush.bf16.msrb.mxu0 %v6467_v5 }
 0x648   :  { %v3181_v32 = vpop.f32.mrf.mxu2 }
 0x649   :  { %v3187_v8 = vadd.f32 %v3181_v32, %v3096_v29 }
 0x64b   :  { %v3215_v11 = vadd.f32 %v3210_v9, %v3187_v8  ;;  %v6470_v9 = vld [vmem:[%s8955_s13 + $0x38] sm:$0xff] }
 0x64d   :  { %v3219_v38 = vmax.f32 %v3215_v11, 0.0 }
 0x64f   :  { %v3221_v50 = vpack.c.bf16 %v3219_v38, %v3218_v36 }
 0x651   :  { %5852 = vmatmul.msk.bf16.gmra.mxu3 %vm3234_vm8, %v3221_v50  ;;  %5861 = vmatmul.msk.bf16.gmra.mxu0 %vm3234_vm8, %v3221_v50 }
 0x652   :  { %5882 = vmatmul.msk.bf16.gmra.mxu2 %vm3234_vm8, %v3221_v50 }
 0x661   :  { %5897 = vmatmul.msk.bf16.vlgmr.msra.gmra.mxu0 %vm3234_vm8, %v3220_v18  ;;  %v3485_v18 = vpop.permute.xlu1 %3484 }
 0x671   :  { %5898 = vmatmul.msk.bf16.gmra.mxu0 %vm3234_vm8, %v3221_v50  ;;  %v5928_v50 = vld [vmem:[%s8956_s14 + $0x4] sm:$0xf] }
 0x6be   :  { %v3292_v39 = vpop.f32.mrf.mxu0 }
 0x6c4   :  { %v3253_v40 = vpop.f32.mrf.mxu3 }
 0x6c5   :  { %v3377_v41 = vpop.f32.mrf.mxu2 }
 0x6c6   :  { %v3294_v57 = vpop.f32.mrf.mxu0 }
 0x6c7   :  { %v3305_v45 = vpack.c.bf16 %v3294_v57, %v3292_v39  ;;  %v6469_v39 = vld [vmem:[%s8955_s13 + $0x30] sm:$0xff] }
 0x6cc   :  { %v3255_v42 = vpop.f32.mrf.mxu3 }
 0x6cd   :  { %v3379_v43 = vpop.f32.mrf.mxu2  ;;  %v3265_v49 = vpack.c.bf16 %v3255_v42, %v3253_v40  ;;  %v5944_v40 = vld [vmem:[%s8956_s14 + $0x8] sm:$0xf]  ;;  %v3530_v42 = vld [vmem:[%s8956_s14] sm:$0xf] }
 0x6ce   :  { %v3297_v30 = vpop.f32.mrf.mxu0  ;;  %v3390_v52 = vpack.c.bf16 %v3379_v43, %v3377_v41 }
 0x6d4   :  { %v3258_v20 = vpop.f32.mrf.mxu3 }
 0x6d5   :  { %v3382_v23 = vpop.f32.mrf.mxu2 }
 0x6d6   :  { %v3299_v21 = vpop.f32.mrf.mxu0 }
 0x6d7   :  { %v3306_v44 = vpack.c.bf16 %v3299_v21, %v3297_v30  ;;  %v3717_v30 = vld [vmem:[%s8957_s16 + $0x40] sm:$0xff] }
 0x6d8   :  { %v3744_v21 = vunpack.c.h.b16 %v3717_v30 }
 0x6d9   :  { %3322 = vmatpush.bf16.msra.mxu1 %v3306_v44 }
 0x6dc   :  { %v3260_v31 = vpop.f32.mrf.mxu3 }
 0x6dd   :  { %v3266_v34 = vpack.c.bf16 %v3260_v31, %v3258_v20  ;;  %v3384_v35 = vpop.f32.mrf.mxu2  ;;  %3323 = vmatpush.bf16.msra.mxu1 %v3305_v45  ;;  %v6003_v20 = vld [vmem:[%s8957_s16 + $0x88] sm:$0xff]  ;;  %v5987_v31 = vld [vmem:[%s8957_s16 + $0x30] sm:$0xf] }
 0x6de   :  { %v3391_v46 = vpack.c.bf16 %v3384_v35, %v3382_v23  ;;  %v3441_v47 = vpop.f32.mrf.mxu0  ;;  %v3743_v23 = vunpack.c.l.b16 %v3717_v30  ;;  %v3837_v44 = vunpack.c.l.b16 %v6003_v20 }
 0x6e0   :  { %3406 = vmatpush.bf16.msrb.mxu3 %v3391_v46  ;;  %5868 = vmatmul.msk.bf16.vlgmr.msra.gmra.mxu1 %vm3312_vm9, %v6458_v51  ;;  %v3753_v51 = vpack.c.b16 %v3743_v23, %v3743_v23  ;;  %v3847_v35 = vpack.c.b16 %v3837_v44, %v3837_v44  ;;  %v6478_v46 = vld [vmem:[%s8957_s16 + $0x34] sm:$0xf0]  ;;  %v6006_v23 = vld [vmem:[%s8957_s16 + $0x48] sm:$0xf] }
 0x6e1   :  { %3344 = vmatpush.bf16.msrb.mxu1 %v3266_v34  ;;  %v3754_v34 = vpack.c.b16 %v3744_v21, %v3744_v21  ;;  %v6480_v21 = vld [vmem:[%s8957_s16 + $0x4c] sm:$0xf0] }
 0x6e4   :  { %3407 = vmatpush.bf16.msrb.mxu3 %v3390_v52  ;;  %v6030_v52 = vld [vmem:[%s8957_s16 + $0x78] sm:$0xf] }
 0x6e5   :  { %3345 = vmatpush.bf16.msrb.mxu1 %v3265_v49  ;;  %v5989_v49 = vld [vmem:[%s8957_s16 + $0x38] sm:$0xf0] }
 0x6e6   :  { %v3443_v55 = vpop.f32.mrf.mxu0 }
 0x6e7   :  { %5889 = vmatmul.msk.bf16.vlgmr.msrb.gmra.mxu3 %vm3312_vm9, %v6460_v54  ;;  %v3454_v63 = vpack.c.bf16 %v3443_v55, %v3441_v47  ;;  %v6477_v47 = vld [vmem:[%s8957_s16 + $0x34] sm:$0xf]  ;;  %v6486_v54 = vld [vmem:[%s8957_s16 + $0x7c] sm:$0xf0]  ;;  %v3768_v55 = vsel %vm2320_vm3, %v3753_v51, 0 }
 0x6e8   :  { %3522 = vmatpush.bf16.msra.mxu3 %v6464_v48  ;;  %3776 = vmatpush.bf16.msra.mxu0 %v3768_v55  ;;  %v6475_v48 = vld [vmem:[%s8957_s16 + $0x24] sm:$0xf]  ;;  %v6008_v51 = vld [vmem:[%s8957_s16 + $0x50] sm:$0xf0] }
 0x6ec   :  { %3523 = vmatpush.bf16.msra.mxu3 %v6463_v33  ;;  %v6022_v33 = vld [vmem:[%s8957_s16 + $0x68] sm:$0xf] }
 0x6ee   :  { %v3446_v59 = vpop.f32.mrf.mxu0 }
 0x6f0   :  { %5873 = vmatmul.msk.bf16.vlgmr.msrb.gmra.mxu1 %vm3312_vm9, %v6456_v58  ;;  %v3771_v58 = vsel %vm2320_vm3, %v3754_v34, 0 }
 0x6f6   :  { %v3448_v61 = vpop.f32.mrf.mxu0 }
 0x6f7   :  { %v3455_v37 = vpack.c.bf16 %v3448_v61, %v3446_v59  ;;  %v3858_v59 = vsel %vm2320_vm3, %v3847_v35, 0 }
 0x6f9   :  { %3470 = vmatpush.bf16.msra.mxu1 %v3455_v37  ;;  %v5988_v37 = vor.u32 %v6478_v46, %v5987_v31  ;;  %v6479_v31 = vld [vmem:[%s8957_s16 + $0x4c] sm:$0xf] }
 0x6fa   :  { %v6011_v34 = vor.u32 %v6479_v31, %v6008_v51  ;;  %v6097_v51 = vld [vmem:[%s8957_s16 + $0x118] sm:$0xff] }
 0x6fb   :  { %3777 = vmatpush.bf16.msra.mxu0 %v5988_v37 }
 0x6fd   :  { %3471 = vmatpush.bf16.msra.mxu1 %v3454_v63  ;;  %v5992_v63 = vor.u32 %v6477_v47, %v5989_v49  ;;  %v3704_v47 = vpop.permute.xlu0 %3703 }
 0x700   :  { %5905 = vmatmul.msk.bf16.vlgmr.msra.gmra.mxu1 %vm3312_vm9, %v6462_v0  ;;  %v5979_v0 = vld [vmem:[%s8957_s16 + $0x20] sm:$0xf] }
 0x701   :  { %3555 = vmatpush.bf16.msrb.mxu1 %v6466_v62  ;;  %v5981_v62 = vld [vmem:[%s8957_s16 + $0x28] sm:$0xf0] }
 0x705   :  { %3556 = vmatpush.bf16.msrb.mxu1 %v6465_v4  ;;  %v6484_v4 = vld [vmem:[%s8957_s16 + $0x6c] sm:$0xf0] }
 0x75d   :  { %v3325_v1 = vpop.f32.mrf.mxu1 }
 0x765   :  { %v3327_v2 = vpop.f32.mrf.mxu1 }
 0x76a   :  { %v3409_v10 = vpop.f32.mrf.mxu3 }
 0x76d   :  { %v3347_v6 = vpop.f32.mrf.mxu1 }
 0x76e   :  { %v3348_v13 = vadd.f32 %v3347_v6, %v3325_v1  ;;  %v6031_v1 = vor.u32 %v6486_v54, %v6030_v52 }
 0x770   :  { %v3414_v56 = vadd.f32 %v3409_v10, %v3348_v13  ;;  %v5984_v10 = vor.u32 %v6475_v48, %v5981_v62 }
 0x772   :  { %v3411_v16 = vpop.f32.mrf.mxu3 }
 0x775   :  { %v3349_v7 = vpop.f32.mrf.mxu1 }
 0x776   :  { %v3350_v15 = vadd.f32 %v3349_v7, %v3327_v2  ;;  %v6476_v2 = vld [vmem:[%s8957_s16 + $0x24] sm:$0xf0] }
 0x777   :  { %v5980_v7 = vor.u32 %v6476_v2, %v5979_v0 }
 0x778   :  { %v3415_v17 = vadd.f32 %v3411_v16, %v3350_v15  ;;  %v3838_v16 = vunpack.c.h.b16 %v6003_v20  ;;  %v5965_v20 = vld [vmem:[%s8957_s16 + $0x8] sm:$0xf0] }
 0x779   :  { %3778 = vmatpush.bf16.msra.mxu0 %v5980_v7 }
 0x77d   :  { %v3473_v14 = vpop.f32.mrf.mxu1 }
 0x77e   :  { %v3478_v53 = vadd.f32 %v3473_v14, %v3414_v56  ;;  %v6023_v14 = vor.u32 %v6484_v4, %v6022_v33  ;;  %v3799_v33 = vld [vmem:[%s8958_s17] sm:$0x3] }
 0x780   :  { %v3492_v22 = vadd.f32 %v3485_v18, %v3478_v53  ;;  %v3848_v53 = vpack.c.b16 %v3838_v16, %v3838_v16  ;;  %v6494_v16 = vld [vmem:[%s8957_s16 + $0xc4] sm:$0xf0] }
 0x782   :  { %v3494_v60 = vmax.f32 %v3492_v22, 0.0  ;;  %v6485_v22 = vld [vmem:[%s8957_s16 + $0x7c] sm:$0xf] }
 0x785   :  { %v3475_v19 = vpop.f32.mrf.mxu1 }
 0x786   :  { %v3479_v24 = vadd.f32 %v3475_v19, %v3415_v17  ;;  %v3861_v19 = vsel %vm2320_vm3, %v3848_v53, 0  ;;  %v6493_v53 = vld [vmem:[%s8957_s16 + $0xc4] sm:$0xf] }
 0x788   :  { %v3493_v27 = vadd.f32 %v3490_v25, %v3479_v24  ;;  %v6032_v24 = vld [vmem:[%s8957_s16 + $0x80] sm:$0xf0]  ;;  %v5959_v25 = vld [vmem:[%s8956_s14 + $0xc] sm:$0xf] }
 0x78a   :  { %v3495_v28 = vmax.f32 %v3493_v27, 0.0  ;;  %v6035_v27 = vor.u32 %v6485_v22, %v6032_v24  ;;  %v6038_v22 = vld [vmem:[%s8958_s17 + $0x2] sm:$0x3] }
 0x78c   :  { %v3496_v29 = vpack.c.bf16 %v3495_v28, %v3494_v60  ;;  %v6483_v60 = vld [vmem:[%s8957_s16 + $0x6c] sm:$0xf]  ;;  %v6024_v28 = vld [vmem:[%s8957_s16 + $0x70] sm:$0xf0] }
 0x78e   :  { %5914 = vmatmul.msk.bf16.vlgmr.msra.gmra.mxu3 %vm3312_vm9, %v3496_v29  ;;  %5927 = vmatmul.msk.bf16.vlgmr.msrb.gmra.mxu1 %vm3312_vm9, %v3496_v29 }
 0x78f   :  { %5943 = vmatmul.msk.bf16.vlgmr.msrb.gmra.mxu0 %vm3312_vm9, %v3496_v29 }
 0x80b   :  { %v3558_v26 = vpop.f32.mrf.mxu1 }
 0x80c   :  { %v3624_v32 = vpop.f32.mrf.mxu0 }
 0x811   :  { %v3525_v12 = vpop.f32.mrf.mxu3 }
 0x813   :  { %v3560_v8 = vpop.f32.mrf.mxu1 }
 0x814   :  { %v3565_v11 = vpack.c.bf16 %v3560_v8, %v3558_v26  ;;  %v3626_v36 = vpop.f32.mrf.mxu0  ;;  %v5971_v26 = vld [vmem:[%s8957_s16 + $0x10] sm:$0xf] }
 0x815   :  { %v3631_v38 = vpack.c.bf16 %v3626_v36, %v3624_v32  ;;  %v6474_v32 = vld [vmem:[%s8957_s16 + $0x14] sm:$0xf0]  ;;  %v6482_v36 = vld [vmem:[%s8957_s16 + $0x5c] sm:$0xf0] }
 0x816   :  { %3576 = vmatpush.bf16.msra.mxu2 %v3565_v11  ;;  %v5972_v8 = vor.u32 %v6474_v32, %v5971_v26  ;;  %v6014_v11 = vld [vmem:[%s8957_s16 + $0x58] sm:$0xf] }
 0x817   :  { %3642 = vmatpush.bf16.msra.mxu1 %v3631_v38 }
 0x818   :  { %3779 = vmatpush.bf16.msra.mxu0 %v5972_v8 }
 0x819   :  { %v3527_v41 = vpop.f32.mrf.mxu3  ;;  %5929 = vmatmul.msk.bf16.vlgmr.msra.gmra.mxu2 %vm2945_vm7, %v5928_v50  ;;  %v6015_v50 = vor.u32 %v6482_v36, %v6014_v11  ;;  %v6490_v11 = vld [vmem:[%s8957_s16 + $0xa4] sm:$0xf0]  ;;  %v6489_v36 = vld [vmem:[%s8957_s16 + $0xa4] sm:$0xf] }
 0x81a   :  { %3672 = vmatpush.bf16.msrb.mxu2 %v6470_v9  ;;  %v3531_v57 = vpack.c.bf16 %v3527_v41, %v3525_v12  ;;  %5945 = vmatmul.msk.bf16.vlgmr.msra.gmra.mxu1 %vm2945_vm7, %v5944_v40  ;;  %v6473_v12 = vld [vmem:[%s8957_s16 + $0x14] sm:$0xf]  ;;  %v5973_v9 = vld [vmem:[%s8957_s16 + $0x18] sm:$0xf0]  ;;  %v6016_v40 = vld [vmem:[%s8957_s16 + $0x60] sm:$0xf0] }
 0x81b   :  { %3789 = vmatpush.bf16.msrb.mxu1 %v3771_v58  ;;  %v5976_v38 = vor.u32 %v6473_v12, %v5973_v9  ;;  %v6051_v58 = vld [vmem:[%s8957_s16 + $0xd0] sm:$0xff]  ;;  %v6062_v9 = vld [vmem:[%s8957_s16 + $0xa0] sm:$0xf] }
 0x81c   :  { %3592 = vmatpush.bf16.msrb.mxu3 %v3531_v57  ;;  %v5963_v57 = vld [vmem:[%s8957_s16] sm:$0xf]  ;;  %v3998_v37 = vunpack.c.l.b16 %v6051_v58 }
 0x81e   :  { %3673 = vmatpush.bf16.msrb.mxu2 %v6469_v39  ;;  %v6481_v39 = vld [vmem:[%s8957_s16 + $0x5c] sm:$0xf]  ;;  %v4008_v62 = vpack.c.b16 %v3998_v37, %v3998_v37 }
 0x81f   :  { %5930 = vmatmul.msk.bf16.vlgmr.msrb.gmra.mxu3 %vm2945_vm7, %v3530_v42  ;;  %3790 = vmatpush.bf16.msrb.mxu1 %v5992_v63  ;;  %v6019_v41 = vor.u32 %v6481_v39, %v6016_v40  ;;  %v6472_v42 = vld [vmem:[%s8957_s16 + $0x4] sm:$0xf0]  ;;  %v3999_v63 = vunpack.c.h.b16 %v6051_v58  ;;  %v6054_v40 = vld [vmem:[%s8957_s16 + $0x90] sm:$0xf] }
 0x820   :  { %v5964_v30 = vor.u32 %v6472_v42, %v5963_v57  ;;  %v6487_v57 = vld [vmem:[%s8957_s16 + $0x94] sm:$0xf]  ;;  %v6056_v42 = vld [vmem:[%s8957_s16 + $0x98] sm:$0xf0] }
 0x822   :  { %3866 = vmatpush.bf16.msra.mxu2 %v3858_v59  ;;  %3780 = vmatpush.bf16.msra.mxu0 %v5964_v30  ;;  %v6059_v30 = vor.u32 %v6487_v57, %v6056_v42 }
 0x823   :  { %3791 = vmatpush.bf16.msrb.mxu1 %v5984_v10 }
 0x826   :  { %3867 = vmatpush.bf16.msra.mxu2 %v6031_v1 }
 0x827   :  { %3792 = vmatpush.bf16.msrb.mxu1 %v5976_v38  ;;  %v6064_v38 = vld [vmem:[%s8957_s16 + $0xa8] sm:$0xf0] }
 0x828   :  { %v6067_v39 = vor.u32 %v6489_v36, %v6064_v38 }
 0x829   :  { %5958 = vmatmul.msk.bf16.vlgmr.msrb.gmra.mxu2 %vm3312_vm9, %v3496_v29  ;;  %v6027_v29 = vor.u32 %v6483_v60, %v6024_v28  ;;  %v6492_v60 = vld [vmem:[%s8957_s16 + $0xb4] sm:$0xf0]  ;;  %v6491_v28 = vld [vmem:[%s8957_s16 + $0xb4] sm:$0xf] }
 0x82a   :  { %3868 = vmatpush.bf16.msra.mxu2 %v6023_v14  ;;  %v4019_v14 = vsel %vm2320_vm3, %v4008_v62, 0  ;;  %v6501_v62 = vld [vmem:[%s8957_s16 + $0x10c] sm:$0xf] }
 0x82e   :  { %3869 = vmatpush.bf16.msra.mxu2 %v6015_v50  ;;  %v6063_v50 = vor.u32 %v6490_v11, %v6062_v9 }
 0x897   :  { %v3644_v43 = vpop.f32.mrf.mxu1 }
 0x89c   :  { %v3578_v45 = vpop.f32.mrf.mxu2 }
 0x89f   :  { %v3646_v61 = vpop.f32.mrf.mxu1 }
 0x8a2   :  { %v3594_v3 = vpop.f32.mrf.mxu3 }
 0x8a3   :  { %v3595_v5 = vadd.f32 %v3594_v3, %v3578_v45  ;;  %v6007_v45 = vor.u32 %v6480_v21, %v6006_v23  ;;  %v4009_v3 = vpack.c.b16 %v3999_v63, %v3999_v63 }
 0x8a4   :  { %v3580_v6 = vpop.f32.mrf.mxu2 }
 0x8a5   :  { %v3648_v13 = vadd.f32 %v3644_v43, %v3595_v5  ;;  %v6471_v43 = vld [vmem:[%s8957_s16 + $0x4] sm:$0xf]  ;;  %3870 = vmatpush.bf16.msra.mxu2 %v6007_v45 }
 0x8a6   :  { %v5968_v44 = vor.u32 %v6471_v43, %v5965_v20 }
 0x8a8   :  { %3793 = vmatpush.bf16.msrb.mxu1 %v5968_v44 }
 0x8aa   :  { %v3596_v56 = vpop.f32.mrf.mxu3 }
 0x8ab   :  { %v4022_v56 = vsel %vm2320_vm3, %v4009_v3, 0  ;;  %v6126_v3 = vld [vmem:[%s8957_s16 + $0x110] sm:$0xf0] }
 0x8ac   :  { %v3675_v15 = vpop.f32.mrf.mxu2 }
 0x8b4   :  { %v3677_v17 = vpop.f32.mrf.mxu2 }
 0x8b5   :  { %v3682_v18 = vpack.c.bf16 %v3677_v17, %v3675_v15  ;;  %v6078_v15 = vld [vmem:[%s8957_s16 + $0xc0] sm:$0xf]  ;;  %v6080_v17 = vld [vmem:[%s8957_s16 + $0xc8] sm:$0xf0] }
 0x8b6   :  { %v6079_v24 = vor.u32 %v6494_v16, %v6078_v15 }
 0x8b7   :  { %3693 = vmatpush.bf16.msra.mxu3 %v3682_v18 }
 0x8ba   :  { %5960 = vmatmul.msk.bf16.vlgmr.msra.gmra.mxu3 %vm2945_vm7, %v5959_v25  ;;  %v6083_v25 = vor.u32 %v6493_v53, %v6080_v17 }
 0x8bb   :  { %3879 = vmatpush.bf16.msrb.mxu3 %v3861_v19 }
 0x8bf   :  { %3880 = vmatpush.bf16.msrb.mxu3 %v6035_v27  ;;  %v6070_v27 = vld [vmem:[%s8957_s16 + $0xb0] sm:$0xf] }
 0x8c0   :  { %v6071_v12 = vor.u32 %v6492_v60, %v6070_v27  ;;  %v6100_v60 = vld [vmem:[%s8957_s16 + $0xd8] sm:$0xf] }
 0x8c3   :  { %3881 = vmatpush.bf16.msrb.mxu3 %v6027_v29  ;;  %v6072_v29 = vld [vmem:[%s8957_s16 + $0xb8] sm:$0xf0] }
 0x8c4   :  { %v6075_v8 = vor.u32 %v6491_v28, %v6072_v29  ;;  %v6496_v28 = vld [vmem:[%s8957_s16 + $0xdc] sm:$0xf0]  ;;  %v6495_v29 = vld [vmem:[%s8957_s16 + $0xdc] sm:$0xf] }
 0x8c7   :  { %3882 = vmatpush.bf16.msrb.mxu3 %v6019_v41  ;;  %v6488_v41 = vld [vmem:[%s8957_s16 + $0x94] sm:$0xf0] }
 0x8c8   :  { %v6055_v43 = vor.u32 %v6488_v41, %v6054_v40 }
 0x8cb   :  { %3883 = vmatpush.bf16.msrb.mxu3 %v6011_v34 }
 0x93d   :  { %v3695_v35 = vpop.f32.mrf.mxu3 }
 0x93e   :  { %v3699_v46 = vadd.f32 %v3695_v35, %v3648_v13 }
 0x940   :  { %v3706_v49 = vadd.f32 %v3704_v47, %v3699_v46 }
 0x942   :  { %v3707_v52 = vmax.f32 %v3706_v49, 0.0  ;;  %v4126_v49 = vunpack.c.l.b16 %v6097_v51 }
 0x944   :  { %v8778_v54 = vpack.c.bf16 %v3707_v52, %v3707_v52  ;;  %v4127_v52 = vunpack.c.h.b16 %v6097_v51 }
 0x945   :  { %v3697_v55 = vpop.f32.mrf.mxu3 }
 0x946   :  { %5993 = vmatmul.msk.bf16.vlgmr.msra.gmra.mxu0 %vm3763_vm10, %v8778_v54  ;;  %5994 = vmatmul.msk.bf16.vlgmr.msrb.gmra.mxu1 %vm3763_vm10, %v8778_v54  ;;  %v4136_v55 = vpack.c.b16 %v4126_v49, %v4126_v49  ;;  %v4137_v58 = vpack.c.b16 %v4127_v52, %v4127_v52 }
 0x947   :  { %6036 = vmatmul.msk.bf16.vlgmr.msra.gmra.mxu2 %vm3763_vm10, %v8778_v54  ;;  %6037 = vmatmul.msk.bf16.vlgmr.msrb.gmra.mxu3 %vm3763_vm10, %v8778_v54 }
 0x9c3   :  { %v3782_v59 = vpop.f32.mrf.mxu0  ;;  %v3795_v61 = vpop.f32.mrf.mxu1 }
 0x9c4   :  { %v3800_v0 = vpack.c.bf16 %v3782_v59, %v3782_v59  ;;  %v3801_v1 = vpack.c.bf16 %v3795_v61, %v3795_v61 }
 0x9c6   :  { %v3932_v2 = vsel %vm2320_vm3, %v3800_v0, 0  ;;  %v3935_v48 = vsel %vm2320_vm3, %v3801_v1, 0  ;;  %v4147_v0 = vsel %vm2320_vm3, %v4136_v55, 0  ;;  %v4150_v1 = vsel %vm2320_vm3, %v4137_v58, 0 }
 0x9c7   :  { %3944 = vmatpush.bf16.msrb.mxu2 %v3932_v2  ;;  %3957 = vmatpush.bf16.msra.mxu3 %v3935_v48  ;;  %v6124_v2 = vld [vmem:[%s8957_s16 + $0x108] sm:$0xf]  ;;  %v6502_v48 = vld [vmem:[%s8957_s16 + $0x10c] sm:$0xf0] }
 0x9ca   :  { %v3872_v4 = vpop.f32.mrf.mxu2  ;;  %v3885_v5 = vpop.f32.mrf.mxu3  ;;  %6042 = vmatmul.msk.bf16.vlgmr.msra.gmra.mxu3 %vm2476_vm5, %v3799_v33  ;;  %6041 = vmatmul.msk.bf16.vlgmr.msrb.gmra.mxu2 %vm2476_vm5, %v3799_v33 }
 0x9cb   :  { %v3891_v6 = vpack.c.bf16 %v3872_v4, %v3872_v4  ;;  %v3892_v7 = vpack.c.bf16 %v3885_v5, %v3885_v5  ;;  %v3784_v10 = vpop.f32.mrf.mxu0  ;;  %v3797_v13 = vpop.f32.mrf.mxu1  ;;  %v6086_v5 = vld [vmem:[%s8958_s17 + $0x4] sm:$0x3] }
 0x9cc   :  { %v6116_v10 = vld [vmem:[%s8957_s16 + $0xf8] sm:$0xf]  ;;  %v6500_v13 = vld [vmem:[%s8957_s16 + $0xfc] sm:$0xf0] }
 0x9cd   :  { %v3897_v18 = vsel %vm2320_vm3, %v3891_v6, 0  ;;  %v3900_v19 = vsel %vm2320_vm3, %v3892_v7, 0  ;;  %v6125_v6 = vor.u32 %v6502_v48, %v6124_v2  ;;  %v6129_v7 = vor.u32 %v6501_v62, %v6126_v3 }
 0x9ce   :  { %3909 = vmatpush.bf16.msrb.mxu0 %v3897_v18  ;;  %3922 = vmatpush.bf16.msra.mxu1 %v3900_v19  ;;  %v6117_v53 = vor.u32 %v6500_v13, %v6116_v10  ;;  %v6108_v18 = vld [vmem:[%s8957_s16 + $0xe8] sm:$0xf]  ;;  %v6498_v19 = vld [vmem:[%s8957_s16 + $0xec] sm:$0xf0] }
 0x9d1   :  { %6039 = vmatmul.msk.bf16.vlgmr.msrb.gmra.mxu0 %vm2476_vm5, %v6038_v22  ;;  %6040 = vmatmul.msk.bf16.vlgmr.msra.gmra.mxu1 %vm2476_vm5, %v6038_v22  ;;  %v6497_v22 = vld [vmem:[%s8957_s16 + $0xec] sm:$0xf] }
 0x9d2   :  { %4027 = vmatpush.bf16.msra.mxu0 %v4019_v14  ;;  %4040 = vmatpush.bf16.msrb.mxu1 %v4022_v56  ;;  %v3874_v26 = vpop.f32.mrf.mxu2  ;;  %v3887_v32 = vpop.f32.mrf.mxu3  ;;  %v6499_v14 = vld [vmem:[%s8957_s16 + $0xfc] sm:$0xf]  ;;  %v6118_v56 = vld [vmem:[%s8957_s16 + $0x100] sm:$0xf0] }
 0x9d3   :  { %v6121_v17 = vor.u32 %v6499_v14, %v6118_v56  ;;  %v6102_v26 = vld [vmem:[%s8957_s16 + $0xe0] sm:$0xf0]  ;;  %v6101_v32 = vor.u32 %v6496_v28, %v6100_v60 }
 0x9d6   :  { %4028 = vmatpush.bf16.msra.mxu0 %v6079_v24  ;;  %4041 = vmatpush.bf16.msrb.mxu1 %v6083_v25  ;;  %v6110_v24 = vld [vmem:[%s8957_s16 + $0xf0] sm:$0xf0]  ;;  %v6109_v25 = vor.u32 %v6498_v19, %v6108_v18 }
 0x9d7   :  { %v6113_v27 = vor.u32 %v6497_v22, %v6110_v24 }
 0x9da   :  { %4029 = vmatpush.bf16.msra.mxu0 %v6071_v12  ;;  %4042 = vmatpush.bf16.msrb.mxu1 %v6075_v8  ;;  %v6105_v12 = vor.u32 %v6495_v29, %v6102_v26 }
 0x9de   :  { %4030 = vmatpush.bf16.msra.mxu0 %v6063_v50  ;;  %4043 = vmatpush.bf16.msrb.mxu1 %v6067_v39 }
 0x9e2   :  { %4031 = vmatpush.bf16.msra.mxu0 %v6055_v43  ;;  %4044 = vmatpush.bf16.msrb.mxu1 %v6059_v30 }
 0x9e5   :  { %6084 = vmatmul.msk.bf16.vlgmr.msra.gmra.mxu0 %vm3763_vm10, %v8778_v54  ;;  %6085 = vmatmul.msk.bf16.vlgmr.msrb.gmra.mxu1 %vm3763_vm10, %v8778_v54 }
 0xa4d   :  { %v3959_v20 = vpop.f32.mrf.mxu3  ;;  %v3946_v23 = vpop.f32.mrf.mxu2 }
 0xa4e   :  { %v3911_v21 = vpop.f32.mrf.mxu0  ;;  %v3924_v44 = vpop.f32.mrf.mxu1 }
 0xa4f   :  { %v8859_v45 = vadd.f32 %v3959_v20, %v3924_v44  ;;  %v8861_v31 = vadd.f32 %v3946_v23, %v3911_v21 }
 0xa55   :  { %v3948_v34 = vpop.f32.mrf.mxu2  ;;  %v3961_v35 = vpop.f32.mrf.mxu3 }
 0xa56   :  { %v3913_v46 = vpop.f32.mrf.mxu0  ;;  %v3926_v47 = vpop.f32.mrf.mxu1 }
 0xa62   :  { %v4033_v59 = vpop.f32.mrf.mxu0  ;;  %v4046_v61 = vpop.f32.mrf.mxu1 }
 0xa63   :  { %v4052_v37 = vpack.c.bf16 %v4033_v59, %v4033_v59  ;;  %v4053_v63 = vpack.c.bf16 %v4046_v61, %v4046_v61 }
 0xa65   :  { %v4058_v33 = vsel %vm2320_vm3, %v4052_v37, 0  ;;  %v4061_v4 = vsel %vm2320_vm3, %v4053_v63, 0 }
 0xa66   :  { %4070 = vmatpush.bf16.msra.mxu2 %v4058_v33  ;;  %4083 = vmatpush.bf16.msrb.mxu3 %v4061_v4 }
 0xa69   :  { %6087 = vmatmul.msk.bf16.vlgmr.msra.gmra.mxu2 %vm2476_vm5, %v6086_v5  ;;  %6088 = vmatmul.msk.bf16.vlgmr.msrb.gmra.mxu3 %vm2476_vm5, %v6086_v5 }
 0xa6a   :  { %4155 = vmatpush.bf16.msrb.mxu2 %v4147_v0  ;;  %4168 = vmatpush.bf16.msra.mxu3 %v4150_v1  ;;  %v4035_v15 = vpop.f32.mrf.mxu0  ;;  %v4048_v16 = vpop.f32.mrf.mxu1 }
 0xa6e   :  { %4156 = vmatpush.bf16.msrb.mxu2 %v6125_v6  ;;  %4169 = vmatpush.bf16.msra.mxu3 %v6129_v7 }
 0xa72   :  { %4157 = vmatpush.bf16.msrb.mxu2 %v6117_v53  ;;  %4170 = vmatpush.bf16.msra.mxu3 %v6121_v17 }
 0xa76   :  { %4158 = vmatpush.bf16.msrb.mxu2 %v6109_v25  ;;  %4171 = vmatpush.bf16.msra.mxu3 %v6113_v27 }
 0xa7a   :  { %4159 = vmatpush.bf16.msrb.mxu2 %v6101_v32  ;;  %4172 = vmatpush.bf16.msra.mxu3 %v6105_v12 }
 0xa7d   :  { %6130 = vmatmul.msk.bf16.vlgmr.msrb.gmra.mxu2 %vm3763_vm10, %v8778_v54  ;;  %6131 = vmatmul.msk.bf16.vlgmr.msra.gmra.mxu3 %vm3763_vm10, %v8778_v54  ;;  %v6132_v54 = vld [vmem:[%s8958_s17 + $0x6] sm:$0x3] }
 0xaec   :  { %v4072_v8 = vpop.f32.mrf.mxu2  ;;  %v4085_v9 = vpop.f32.mrf.mxu3 }
 0xaed   :  { %v4089_v11 = vadd.f32 %v4072_v8, %v8861_v31  ;;  %v4090_v36 = vadd.f32 %v4085_v9, %v8859_v45  ;;  %v4223_v31 = vpop.permute.xlu1 %4222 }
 0xaf4   :  { %v4074_v38 = vpop.f32.mrf.mxu2  ;;  %v4087_v50 = vpop.f32.mrf.mxu3 }
 0xb00   :  { %v4161_v39 = vpop.f32.mrf.mxu2  ;;  %v4174_v40 = vpop.f32.mrf.mxu3 }
 0xb01   :  { %v4180_v41 = vpack.c.bf16 %v4161_v39, %v4161_v39  ;;  %v4181_v57 = vpack.c.bf16 %v4174_v40, %v4174_v40 }
 0xb03   :  { %v4186_v42 = vsel %vm2320_vm3, %v4180_v41, 0  ;;  %v4189_v43 = vsel %vm2320_vm3, %v4181_v57, 0 }
 0xb04   :  { %4198 = vmatpush.bf16.msrb.mxu0 %v4186_v42  ;;  %4211 = vmatpush.bf16.msra.mxu1 %v4189_v43 }
 0xb07   :  { %6133 = vmatmul.msk.bf16.vlgmr.msrb.gmra.mxu0 %vm2476_vm5, %v6132_v54  ;;  %6134 = vmatmul.msk.bf16.vlgmr.msra.gmra.mxu1 %vm2476_vm5, %v6132_v54 }
 0xb08   :  { %v4163_v30 = vpop.f32.mrf.mxu2  ;;  %v4176_v20 = vpop.f32.mrf.mxu3 }
 0xb84   :  { %v4200_v23 = vpop.f32.mrf.mxu0  ;;  %v4213_v21 = vpop.f32.mrf.mxu1 }
 0xb85   :  { %v4217_v44 = vadd.f32 %v4200_v23, %v4089_v11  ;;  %v4218_v45 = vadd.f32 %v4213_v21, %v4090_v36 }
 0xb87   :  { %v4226_v51 = vadd.f32 %v4223_v31, %v4218_v45  ;;  %v4225_v34 = vadd.f32 %v4223_v31, %v4217_v44 }
 0xb89   :  { %6508 = vtanh.f32 %v4226_v51 }
 0xb8a   :  { %6510 = vtanh.f32 %v4225_v34 }
 0xb8c   :  { %v4215_v35 = vpop.f32.mrf.mxu1  ;;  %v4202_v46 = vpop.f32.mrf.mxu0 }
 0xb8f   :  { %v6509_v47 = vpop.eup %6508 }
 0xb90   :  { %v4231_v49 = vrot.slane %v6509_v47, 4  ;;  %v6511_v52 = vpop.eup %6510 }
 0xb92   :  { %v4232_v55 = vsel %vm2320_vm3, %v6511_v52, %v4231_v49 }
 0xb93   :  { %4237 = vst.msk [vmem:[%s8959_s19] sm:$0x77] %vm4236_vm13, %v4232_v55 }

</bundles_post_ra>
